<compile_context>
chip_gen: v7x
topology: tpu7x:2x2x1
jax: 0.10.0
libtpu: 0.0.40
codegen_flags: <defaults>
</compile_context>

<pallas_src>
import jax
import jax.numpy as jnp
from jax.experimental import pallas as pl
from jax.experimental.pallas import tpu as pltpu

# Per-call VMEM footprint here is ~3 MiB, so a 32 MiB scoped cap is safe
# headroom on every generation (v7x physical VMEM is 64 MiB).
_VMEM_LIMIT = 32 * 1024 * 1024


def _compiler_params():
    return pltpu.CompilerParams(
        dimension_semantics=("parallel",),   # per-image grid; v7x megacore splits it
        vmem_limit_bytes=_VMEM_LIMIT,
    )


def _spec(shape, index_map, buffers=None):
    """BlockSpec helper with an explicit pipeline buffer depth.

    buffers=1 -> resident operand (constant index_map): no pointless double buffer.
    buffers=3 -> deeper pipeline on a streamed operand (hide HBM fetch latency).
    Falls back to a plain BlockSpec if this JAX build lacks pipeline_mode/Buffered.
    """
    if buffers is not None and hasattr(pl, "Buffered"):
        try:
            return pl.BlockSpec(shape, index_map, pipeline_mode=pl.Buffered(buffers))
        except TypeError:            # older BlockSpec signature
            pass
    return pl.BlockSpec(shape, index_map)


# ----------------------------------------------------------------------------
# Pallas kernels
# ----------------------------------------------------------------------------
def conv_relu_kernel(a_ref, w_ref, b_ref, o_ref):
    """o[0] = relu(a[0] @ w + b).  a:(1,M,K) bf16, w:(K,C) bf16, b:(1,C) f32."""
    acc = jnp.dot(a_ref[0], w_ref[...], preferred_element_type=jnp.float32)
    acc = jnp.maximum(acc + b_ref[...], 0.0)
    o_ref[0] = acc.astype(o_ref.dtype)


def maxpool_kernel(x_ref, o_ref):
    """2x2 / stride-2 max over a zero-padded, pre-split conv1 block.

    x_ref: (1, Ho, 2, Wo, 2*C) -- a free row-major view of the zero-padded
    (1, 2*Ho, 2*Wo, C) activation: the H-pair lives on an outer axis and the
    W-pair on the lane axis, so the pooled (stride-2) result is produced with
    plain slices + maxes and stored densely.  Zero padding == PyTorch's -inf
    padding here because the input is post-ReLU (>= 0).
    """
    c = o_ref.shape[-1]
    r0 = jnp.maximum(x_ref[:, :, 0, :, 0:c], x_ref[:, :, 0, :, c:2 * c])
    r1 = jnp.maximum(x_ref[:, :, 1, :, 0:c], x_ref[:, :, 1, :, c:2 * c])
    o_ref[...] = jnp.maximum(r0, r1)


def tail_kernel(a3_ref, w3_ref, b3_ref, w1_ref, b1_ref, w2_ref, b2_ref, o_ref,
                y3_scr):
    """Fused conv3 + ReLU + fc1 + ReLU + fc2 for one image.

    a3_ref: (1, 25, 576) bf16 im2col of conv3's replicate-padded input.
    w1_ref: (25, 64, 512) bf16 = fc1 weight with rows re-ordered to the NHWC
            (h, w, c) flatten produced by the channels-last conv3 output.
    fc1 is computed as 25 rank-64 MXU updates from the VMEM scratch copy of the
    conv3 output: the 1600-vector and the 512-wide hidden stay on-chip and no
    (25, 64) -> (1, 1600) in-kernel relayout is needed.
    """
    y3 = jnp.dot(a3_ref[0], w3_ref[...], preferred_element_type=jnp.float32)
    y3_scr[...] = jnp.maximum(y3 + b3_ref[...], 0.0).astype(y3_scr.dtype)

    h = jnp.zeros((1, b1_ref.shape[-1]), jnp.float32)
    for r in range(y3_scr.shape[0]):               # 25 static, fully unrolled steps
        h = h + jnp.dot(y3_scr[r:r + 1, :], w1_ref[r],
                        preferred_element_type=jnp.float32)
    h = jnp.maximum(h + b1_ref[...], 0.0)          # fc1 + ReLU, (1, 512) f32

    out = jnp.dot(h.astype(w2_ref.dtype), w2_ref[...],
                  preferred_element_type=jnp.float32)
    o_ref[0] = (out + b2_ref[...]).astype(o_ref.dtype)


# ----------------------------------------------------------------------------
# Pallas wrappers
# ----------------------------------------------------------------------------
def pallas_conv_relu(a, w, b, *, a_buffers=2, out_dtype=jnp.bfloat16):
    """relu(a @ w + b) per image.  a:(N,M,K) bf16, w:(K,C) bf16, b:(1,C) f32."""
    n, m, k = a.shape
    c = w.shape[1]
    a_buf = min(a_buffers, max(2, n))   # no point buffering deeper than the grid
    return pl.pallas_call(
        conv_relu_kernel,
        out_shape=jax.ShapeDtypeStruct((n, m, c), out_dtype),
        grid=(n,),
        in_specs=[
            _spec((1, m, k), lambda i: (i, 0, 0), buffers=a_buf),   # streamed A
            _spec((k, c), lambda i: (0, 0), buffers=1),             # resident W
            _spec((1, c), lambda i: (0, 0), buffers=1),             # resident b
        ],
        out_specs=pl.BlockSpec((1, m, c), lambda i: (i, 0, 0)),
        compiler_params=_compiler_params(),
    )(a, w, b)


def pallas_maxpool_2x2_pad1(y):
    """MaxPool2d(kernel=2, stride=2, padding=1) on NHWC y.

    y MUST be post-ReLU (>= 0): zero padding is then equivalent to PyTorch's
    -inf padding (every pool window contains at least one real element).
    """
    n, h, w, c = y.shape
    assert h % 2 == 0 and w % 2 == 0
    yp = jnp.pad(y, ((0, 0), (1, 1), (1, 1), (0, 0)))        # (N, H+2, W+2, C)
    ho, wo = (h + 2) // 2, (w + 2) // 2
    # Free row-major view: H-pair -> outer axis, W-pair -> lane axis.
    yv = yp.reshape(n, ho, 2, wo, 2 * c)
    return pl.pallas_call(
        maxpool_kernel,
        out_shape=jax.ShapeDtypeStruct((n, ho, wo, c), y.dtype),
        grid=(n,),
        in_specs=[pl.BlockSpec((1, ho, 2, wo, 2 * c), lambda i: (i, 0, 0, 0, 0))],
        out_specs=pl.BlockSpec((1, ho, wo, c), lambda i: (i, 0, 0, 0)),
        compiler_params=_compiler_params(),
    )(yv)


def pallas_tail(a3, w3, b3, w1, b1, w2, b2):
    """Fused conv3 + ReLU + fc1 + ReLU + fc2.  a3:(N,25,576) bf16 -> (N,A) f32."""
    n, m, k3 = a3.shape
    c3 = w3.shape[1]
    hdim = w1.shape[2]
    adim = w2.shape[1]
    assert w1.shape[0] == m and w1.shape[1] == c3
    out = pl.pallas_call(
        tail_kernel,
        out_shape=jax.ShapeDtypeStruct((n, 1, adim), jnp.float32),
        grid=(n,),
        in_specs=[
            pl.BlockSpec((1, m, k3), lambda i: (i, 0, 0)),            # streamed A3
            _spec((k3, c3), lambda i: (0, 0), buffers=1),             # conv3 W
            _spec((1, c3), lambda i: (0, 0), buffers=1),              # conv3 b
            _spec((m, c3, hdim), lambda i: (0, 0, 0), buffers=1),     # fc1 W (resident)
            _spec((1, hdim), lambda i: (0, 0), buffers=1),            # fc1 b
            _spec((hdim, adim), lambda i: (0, 0), buffers=1),         # fc2 W
            _spec((1, adim), lambda i: (0, 0), buffers=1),            # fc2 b
        ],
        out_specs=pl.BlockSpec((1, 1, adim), lambda i: (i, 0, 0)),
        scratch_shapes=[pltpu.VMEM((m, c3), jnp.bfloat16)],           # conv3 output
        compiler_params=_compiler_params(),
    )(a3, w3, b3, w1, b1, w2, b2)
    return out.reshape(n, adim)


# ----------------------------------------------------------------------------
# JAX glue: replicate padding + im2col (NHWC, column order (ki, kj, c)).
# Pure data re-layout on kilobyte tensors; built directly in bf16.
# ----------------------------------------------------------------------------
def replicate_pad(x, p):
    """PyTorch padding_mode='replicate' == jnp edge padding (NHWC)."""
    return jnp.pad(x, ((0, 0), (p, p), (p, p), (0, 0)), mode="edge")


def im2col(xp, k, s):
    """NHWC patches -> (N, Ho*Wo, k*k*C); column order (ki, kj, c)."""
    n, hp, wp, c = xp.shape
    ho = (hp - k) // s + 1
    wo = (wp - k) // s + 1
    patches = [xp[:, i:i + s * ho:s, j:j + s * wo:s, :]
               for i in range(k) for j in range(k)]
    a = jnp.concatenate(patches, axis=-1)          # (N, Ho, Wo, k*k*C)
    return a.reshape(n, ho * wo, k * k * c), ho, wo


# ----------------------------------------------------------------------------
# Parameters (PyTorch layout) + one-time prep (NHWC order, bf16)
# ----------------------------------------------------------------------------
def _uniform(key, shape, fan_in):
    bound = 1.0 / (fan_in ** 0.5)
    return jax.random.uniform(key, shape, jnp.float32, -bound, bound)


def init_params(key, action_dim):
    """PyTorch-layout parameters (as nn.Conv2d / nn.Linear store them)."""
    ks = jax.random.split(key, 10)
    return {
        "conv1_w": _uniform(ks[0], (32, 4, 8, 8), 4 * 8 * 8),
        "conv1_b": _uniform(ks[1], (32,), 4 * 8 * 8),
        "conv2_w": _uniform(ks[2], (64, 32, 4, 4), 32 * 4 * 4),
        "conv2_b": _uniform(ks[3], (64,), 32 * 4 * 4),
        "conv3_w": _uniform(ks[4], (64, 64, 3, 3), 64 * 3 * 3),
        "conv3_b": _uniform(ks[5], (64,), 64 * 3 * 3),
        "fc1_w": _uniform(ks[6], (512, 1600), 1600),
        "fc1_b": _uniform(ks[7], (512,), 1600),
        "fc2_w": _uniform(ks[8], (action_dim, 512), 512),
        "fc2_b": _uniform(ks[9], (action_dim,), 512),
    }


def prepare_params(p):
    """One-time re-layout + bf16 cast so the hot path has zero transposes.

    bf16 weights/activations deviate ~1e-2 relative from the f32 PyTorch
    reference (intentional, MXU); tolerance-checked in __main__.
    """
    def conv_w(w):  # (Cout,Cin,kh,kw) -> (kh*kw*Cin, Cout), rows ordered (ki, kj, c)
        c_out, c_in, kh, kw = w.shape
        return (w.transpose(2, 3, 1, 0)
                 .reshape(kh * kw * c_in, c_out).astype(jnp.bfloat16))

    def bias(b):
        return b.reshape(1, -1).astype(jnp.float32)

    # fc1 columns are NCHW-flat (c, h, w) in PyTorch; re-order once to the
    # (h, w)-major / channel-minor layout consumed by the fused tail kernel.
    w1 = (p["fc1_w"].reshape(512, 64, 5, 5)
          .transpose(2, 3, 1, 0)                 # (h, w, c, n)
          .reshape(25, 64, 512).astype(jnp.bfloat16))
    return {
        "c1w": conv_w(p["conv1_w"]), "c1b": bias(p["conv1_b"]),
        "c2w": conv_w(p["conv2_w"]), "c2b": bias(p["conv2_b"]),
        "c3w": conv_w(p["conv3_w"]), "c3b": bias(p["conv3_b"]),
        "w1": w1, "b1": bias(p["fc1_b"]),
        "w2": p["fc2_w"].T.astype(jnp.bfloat16), "b2": bias(p["fc2_b"]),
    }


# ----------------------------------------------------------------------------
# Forward pass (mirrors ValueNetwork.forward); expects 84x84 inputs (fc1=1600).
# ----------------------------------------------------------------------------
def value_network_forward(prep, x):
    """x: (N, 4, 84, 84) f32 (PyTorch NCHW interface) -> (N, action_dim) f32."""
    n = x.shape[0]
    # One NCHW->NHWC transpose and ONE bf16 cast; every A-matrix below is built
    # directly in bf16 (no extra wrapper-side cast pass over f32 intermediates).
    x = x.transpose(0, 2, 3, 1).astype(jnp.bfloat16)

    # conv1 8x8 / stride 4, replicate pad 1, ReLU               -> (N, 20, 20, 32)
    a1, ho, wo = im2col(replicate_pad(x, 1), 8, 4)
    y1 = pallas_conv_relu(a1, prep["c1w"], prep["c1b"], a_buffers=3)
    y1 = y1.reshape(n, ho, wo, prep["c1w"].shape[1])

    # MaxPool2d(2, 2, padding=1)                                -> (N, 11, 11, 32)
    y1 = pallas_maxpool_2x2_pad1(y1)

    # conv2 4x4 / stride 2, replicate pad 1, ReLU               -> (N, 5, 5, 64)
    a2, ho, wo = im2col(replicate_pad(y1, 1), 4, 2)
    y2 = pallas_conv_relu(a2, prep["c2w"], prep["c2b"])
    y2 = y2.reshape(n, ho, wo, prep["c2w"].shape[1])

    # conv3 3x3 / stride 1, pad 1 + ReLU + fc1 + ReLU + fc2 (one fused kernel)
    a3, _, _ = im2col(replicate_pad(y2, 1), 3, 1)
    return pallas_tail(a3, prep["c3w"], prep["c3b"],
                       prep["w1"], prep["b1"], prep["w2"], prep["b2"])


# ----------------------------------------------------------------------------
# Plain-XLA f32 reference (mirrors the PyTorch module exactly)
# ----------------------------------------------------------------------------
def reference_forward(params, x):
    x = x.transpose(0, 2, 3, 1)                                   # NHWC

    def conv(h, w, b, stride, pad):
        hp = jnp.pad(h, ((0, 0), (pad, pad), (pad, pad), (0, 0)), mode="edge")
        y = jax.lax.conv_general_dilated(
            hp, w.transpose(2, 3, 1, 0), (stride, stride), "VALID",
            dimension_numbers=("NHWC", "HWIO", "NHWC"))
        return jax.nn.relu(y + b)

    h = conv(x, params["conv1_w"], params["conv1_b"], 4, 1)
    h = jax.lax.reduce_window(h, -jnp.inf, jax.lax.max,
                              (1, 2, 2, 1), (1, 2, 2, 1),
                              ((0, 0), (1, 1), (1, 1), (0, 0)))
    h = conv(h, params["conv2_w"], params["conv2_b"], 2, 1)
    h = conv(h, params["conv3_w"], params["conv3_b"], 1, 1)
    h = h.transpose(0, 3, 1, 2).reshape(h.shape[0], -1)           # torch NCHW flatten
    h = jax.nn.relu(h @ params["fc1_w"].T + params["fc1_b"])
    return h @ params["fc2_w"].T + params["fc2_b"]


if __name__ == "__main__":
    action_dim = 6
    key = jax.random.PRNGKey(0)
    k_param, k_x = jax.random.split(key)

    params = init_params(k_param, action_dim)
    prep = prepare_params(params)

    # Input spatial size 84x84 is implied by fc1's in_features = 1600 = 64*5*5.
    x = jax.random.normal(k_x, (2, 4, 84, 84), dtype=jnp.float32)

    fwd = jax.jit(value_network_forward)
    out = jax.block_until_ready(fwd(prep, x))
    assert out.shape == (2, action_dim)
    assert out.dtype == jnp.float32
    assert bool(jnp.isfinite(out).all())

    # Tolerance check of the bf16 Pallas path against the f32 XLA reference.
    ref = jax.block_until_ready(jax.jit(reference_forward)(params, x))
    err = float(jnp.max(jnp.abs(out - ref)))
    tol = 0.1 * float(jnp.maximum(1.0, jnp.max(jnp.abs(ref))))
    assert err < tol, f"max abs error {err} exceeds tolerance {tol}"

    print("KERNEL_OK")
</pallas_src>

<mosaic_0001>
module attributes {stable_mosaic.version = 11 : i64} {
  func.func @conv_relu_kernel(%arg0: i32, %arg1: memref<1x400x256xbf16, #tpu.memory_space<vmem>>, %arg2: memref<256x32xbf16, #tpu.memory_space<vmem>>, %arg3: memref<1x32xf32, #tpu.memory_space<vmem>>, %arg4: memref<1x400x32xbf16, #tpu.memory_space<vmem>>) attributes {dimension_semantics = [#tpu.dimension_semantics<parallel>], iteration_bounds = array<i64: 2>, scalar_prefetch = 0 : i64, scratch_operands = 0 : i64, tpu.core_type = #tpu.core_type<tc>, window_params = [{pipeline_mode = #tpu.pipeline_mode<double_buffered>, transform_indices = @transform_0, window_bounds = array<i64: 1, 400, 256>}, {pipeline_mode = #tpu.pipeline_mode<synchronous>, transform_indices = @transform_1, window_bounds = array<i64: 256, 32>}, {pipeline_mode = #tpu.pipeline_mode<synchronous>, transform_indices = @transform_2, window_bounds = array<i64: 1, 32>}, {transform_indices = @transform_3, window_bounds = array<i64: 1, 400, 32>}]} {
    %c0 = arith.constant 0 : index
    %c0_0 = arith.constant 0 : index
    %c0_1 = arith.constant 0 : index
    %0 = vector.load %arg1[%c0, %c0_0, %c0_1] : memref<1x400x256xbf16, #tpu.memory_space<vmem>>, vector<1x400x256xbf16>
    %1 = vector.shape_cast %0 : vector<1x400x256xbf16> to vector<400x256xbf16>
    %c0_2 = arith.constant 0 : index
    %c0_3 = arith.constant 0 : index
    %2 = vector.load %arg2[%c0_2, %c0_3] : memref<256x32xbf16, #tpu.memory_space<vmem>>, vector<256x32xbf16>
    %cst = arith.constant dense<0.000000e+00> : vector<400x32xf32>
    %3 = tpu.matmul %1, %2, %cst {dimension_numbers = #tpu.dot_dimension_numbers<[1], [0], [0], [1], [0, 0, 1, 1], [], []>} : vector<400x256xbf16>, vector<256x32xbf16>, vector<400x32xf32> -> vector<400x32xf32>
    %c0_4 = arith.constant 0 : index
    %c0_5 = arith.constant 0 : index
    %4 = vector.load %arg3[%c0_4, %c0_5] : memref<1x32xf32, #tpu.memory_space<vmem>>, vector<1x32xf32>
    %5 = vector.broadcast %4 : vector<1x32xf32> to vector<400x32xf32>
    %6 = arith.addf %3, %5 : vector<400x32xf32>
    %cst_6 = arith.constant 0.000000e+00 : f32
    %7 = vector.broadcast %cst_6 : f32 to vector<400x32xf32>
    %8 = arith.maximumf %6, %7 : vector<400x32xf32>
    %9 = arith.truncf %8 : vector<400x32xf32> to vector<400x32xbf16>
    %c0_7 = arith.constant 0 : index
    %c0_8 = arith.constant 0 : index
    %c0_9 = arith.constant 0 : index
    %10 = vector.load %arg4[%c0_7, %c0_8, %c0_9] : memref<1x400x32xbf16, #tpu.memory_space<vmem>>, vector<1x400x32xbf16>
    %11 = vector.shape_cast %10 : vector<1x400x32xbf16> to vector<400x32xbf16>
    %12 = vector.shape_cast %9 : vector<400x32xbf16> to vector<1x400x32xbf16>
    tpu.vector_store %arg4[%c0_7, %c0_8, %c0_9], %12 {strides = array<i32>} : memref<1x400x32xbf16, #tpu.memory_space<vmem>>, vector<1x400x32xbf16>,
    return
  }
  func.func @transform_0(%arg0: i32) -> (i32, i32, i32) {
    %c0_i32 = arith.constant 0 : i32
    %c0_i32_0 = arith.constant 0 : i32
    %c0_i32_1 = arith.constant 0 : i32
    return %arg0, %c0_i32, %c0_i32_0 : i32, i32, i32
  }
  func.func @transform_1(%arg0: i32) -> (i32, i32) {
    %c0_i32 = arith.constant 0 : i32
    %c0_i32_0 = arith.constant 0 : i32
    %c0_i32_1 = arith.constant 0 : i32
    return %c0_i32, %c0_i32_0 : i32, i32
  }
  func.func @transform_2(%arg0: i32) -> (i32, i32) {
    %c0_i32 = arith.constant 0 : i32
    %c0_i32_0 = arith.constant 0 : i32
    %c0_i32_1 = arith.constant 0 : i32
    return %c0_i32, %c0_i32_0 : i32, i32
  }
  func.func @transform_3(%arg0: i32) -> (i32, i32, i32) {
    %c0_i32 = arith.constant 0 : i32
    %c0_i32_0 = arith.constant 0 : i32
    %c0_i32_1 = arith.constant 0 : i32
    return %arg0, %c0_i32, %c0_i32_0 : i32, i32, i32
  }
}

module attributes {stable_mosaic.version = 11 : i64} {
  func.func @maxpool_kernel(%arg0: i32, %arg1: memref<1x11x2x11x64xbf16, #tpu.memory_space<vmem>>, %arg2: memref<1x11x11x32xbf16, #tpu.memory_space<vmem>>) attributes {dimension_semantics = [#tpu.dimension_semantics<parallel>], iteration_bounds = array<i64: 2>, scalar_prefetch = 0 : i64, scratch_operands = 0 : i64, tpu.core_type = #tpu.core_type<tc>, window_params = [{transform_indices = @transform_0, window_bounds = array<i64: 1, 11, 2, 11, 64>}, {transform_indices = @transform_1, window_bounds = array<i64: 1, 11, 11, 32>}]} {
    %c0 = arith.constant 0 : index
    %c0_0 = arith.constant 0 : index
    %c0_1 = arith.constant 0 : index
    %c0_2 = arith.constant 0 : index
    %c0_3 = arith.constant 0 : index
    %0 = vector.load %arg1[%c0, %c0_0, %c0_1, %c0_2, %c0_3] : memref<1x11x2x11x64xbf16, #tpu.memory_space<vmem>>, vector<1x11x1x11x32xbf16>
    %1 = vector.shape_cast %0 : vector<1x11x1x11x32xbf16> to vector<1x11x11x32xbf16>
    %c0_4 = arith.constant 0 : index
    %c0_5 = arith.constant 0 : index
    %c0_6 = arith.constant 0 : index
    %c0_7 = arith.constant 0 : index
    %c32 = arith.constant 32 : index
    %2 = vector.load %arg1[%c0_4, %c0_5, %c0_6, %c0_7, %c32] : memref<1x11x2x11x64xbf16, #tpu.memory_space<vmem>>, vector<1x11x1x11x32xbf16>
    %3 = vector.shape_cast %2 : vector<1x11x1x11x32xbf16> to vector<1x11x11x32xbf16>
    %4 = arith.maximumf %1, %3 : vector<1x11x11x32xbf16>
    %c0_8 = arith.constant 0 : index
    %c0_9 = arith.constant 0 : index
    %c1 = arith.constant 1 : index
    %c0_10 = arith.constant 0 : index
    %c0_11 = arith.constant 0 : index
    %5 = vector.load %arg1[%c0_8, %c0_9, %c1, %c0_10, %c0_11] : memref<1x11x2x11x64xbf16, #tpu.memory_space<vmem>>, vector<1x11x1x11x32xbf16>
    %6 = vector.shape_cast %5 : vector<1x11x1x11x32xbf16> to vector<1x11x11x32xbf16>
    %c0_12 = arith.constant 0 : index
    %c0_13 = arith.constant 0 : index
    %c1_14 = arith.constant 1 : index
    %c0_15 = arith.constant 0 : index
    %c32_16 = arith.constant 32 : index
    %7 = vector.load %arg1[%c0_12, %c0_13, %c1_14, %c0_15, %c32_16] : memref<1x11x2x11x64xbf16, #tpu.memory_space<vmem>>, vector<1x11x1x11x32xbf16>
    %8 = vector.shape_cast %7 : vector<1x11x1x11x32xbf16> to vector<1x11x11x32xbf16>
    %9 = arith.maximumf %6, %8 : vector<1x11x11x32xbf16>
    %10 = arith.maximumf %4, %9 : vector<1x11x11x32xbf16>
    %c0_17 = arith.constant 0 : index
    %c0_18 = arith.constant 0 : index
    %c0_19 = arith.constant 0 : index
    %c0_20 = arith.constant 0 : index
    %11 = vector.load %arg2[%c0_17, %c0_18, %c0_19, %c0_20] : memref<1x11x11x32xbf16, #tpu.memory_space<vmem>>, vector<1x11x11x32xbf16>
    tpu.vector_store %arg2[%c0_17, %c0_18, %c0_19, %c0_20], %10 {strides = array<i32>} : memref<1x11x11x32xbf16, #tpu.memory_space<vmem>>, vector<1x11x11x32xbf16>,
    return
  }
  func.func @transform_0(%arg0: i32) -> (i32, i32, i32, i32, i32) {
    %c0_i32 = arith.constant 0 : i32
    %c0_i32_0 = arith.constant 0 : i32
    %c0_i32_1 = arith.constant 0 : i32
    %c0_i32_2 = arith.constant 0 : i32
    %c0_i32_3 = arith.constant 0 : i32
    return %arg0, %c0_i32, %c0_i32_0, %c0_i32_1, %c0_i32_2 : i32, i32, i32, i32, i32
  }
  func.func @transform_1(%arg0: i32) -> (i32, i32, i32, i32) {
    %c0_i32 = arith.constant 0 : i32
    %c0_i32_0 = arith.constant 0 : i32
    %c0_i32_1 = arith.constant 0 : i32
    %c0_i32_2 = arith.constant 0 : i32
    return %arg0, %c0_i32, %c0_i32_0, %c0_i32_1 : i32, i32, i32, i32
  }
}

module attributes {stable_mosaic.version = 11 : i64} {
  func.func @conv_relu_kernel(%arg0: i32, %arg1: memref<1x25x512xbf16, #tpu.memory_space<vmem>>, %arg2: memref<512x64xbf16, #tpu.memory_space<vmem>>, %arg3: memref<1x64xf32, #tpu.memory_space<vmem>>, %arg4: memref<1x25x64xbf16, #tpu.memory_space<vmem>>) attributes {dimension_semantics = [#tpu.dimension_semantics<parallel>], iteration_bounds = array<i64: 2>, scalar_prefetch = 0 : i64, scratch_operands = 0 : i64, tpu.core_type = #tpu.core_type<tc>, window_params = [{pipeline_mode = #tpu.pipeline_mode<double_buffered>, transform_indices = @transform_0, window_bounds = array<i64: 1, 25, 512>}, {pipeline_mode = #tpu.pipeline_mode<synchronous>, transform_indices = @transform_1, window_bounds = array<i64: 512, 64>}, {pipeline_mode = #tpu.pipeline_mode<synchronous>, transform_indices = @transform_2, window_bounds = array<i64: 1, 64>}, {transform_indices = @transform_3, window_bounds = array<i64: 1, 25, 64>}]} {
    %c0 = arith.constant 0 : index
    %c0_0 = arith.constant 0 : index
    %c0_1 = arith.constant 0 : index
    %0 = vector.load %arg1[%c0, %c0_0, %c0_1] : memref<1x25x512xbf16, #tpu.memory_space<vmem>>, vector<1x25x512xbf16>
    %1 = vector.shape_cast %0 : vector<1x25x512xbf16> to vector<25x512xbf16>
    %c0_2 = arith.constant 0 : index
    %c0_3 = arith.constant 0 : index
    %2 = vector.load %arg2[%c0_2, %c0_3] : memref<512x64xbf16, #tpu.memory_space<vmem>>, vector<512x64xbf16>
    %cst = arith.constant dense<0.000000e+00> : vector<25x64xf32>
    %3 = tpu.matmul %1, %2, %cst {dimension_numbers = #tpu.dot_dimension_numbers<[1], [0], [0], [1], [0, 0, 1, 1], [], []>} : vector<25x512xbf16>, vector<512x64xbf16>, vector<25x64xf32> -> vector<25x64xf32>
    %c0_4 = arith.constant 0 : index
    %c0_5 = arith.constant 0 : index
    %4 = vector.load %arg3[%c0_4, %c0_5] : memref<1x64xf32, #tpu.memory_space<vmem>>, vector<1x64xf32>
    %5 = vector.broadcast %4 : vector<1x64xf32> to vector<25x64xf32>
    %6 = arith.addf %3, %5 : vector<25x64xf32>
    %cst_6 = arith.constant 0.000000e+00 : f32
    %7 = vector.broadcast %cst_6 : f32 to vector<25x64xf32>
    %8 = arith.maximumf %6, %7 : vector<25x64xf32>
    %9 = arith.truncf %8 : vector<25x64xf32> to vector<25x64xbf16>
    %c0_7 = arith.constant 0 : index
    %c0_8 = arith.constant 0 : index
    %c0_9 = arith.constant 0 : index
    %10 = vector.load %arg4[%c0_7, %c0_8, %c0_9] : memref<1x25x64xbf16, #tpu.memory_space<vmem>>, vector<1x25x64xbf16>
    %11 = vector.shape_cast %10 : vector<1x25x64xbf16> to vector<25x64xbf16>
    %12 = vector.shape_cast %9 : vector<25x64xbf16> to vector<1x25x64xbf16>
    tpu.vector_store %arg4[%c0_7, %c0_8, %c0_9], %12 {strides = array<i32>} : memref<1x25x64xbf16, #tpu.memory_space<vmem>>, vector<1x25x64xbf16>,
    return
  }
  func.func @transform_0(%arg0: i32) -> (i32, i32, i32) {
    %c0_i32 = arith.constant 0 : i32
    %c0_i32_0 = arith.constant 0 : i32
    %c0_i32_1 = arith.constant 0 : i32
    return %arg0, %c0_i32, %c0_i32_0 : i32, i32, i32
  }
  func.func @transform_1(%arg0: i32) -> (i32, i32) {
    %c0_i32 = arith.constant 0 : i32
    %c0_i32_0 = arith.constant 0 : i32
    %c0_i32_1 = arith.constant 0 : i32
    return %c0_i32, %c0_i32_0 : i32, i32
  }
  func.func @transform_2(%arg0: i32) -> (i32, i32) {
    %c0_i32 = arith.constant 0 : i32
    %c0_i32_0 = arith.constant 0 : i32
    %c0_i32_1 = arith.constant 0 : i32
    return %c0_i32, %c0_i32_0 : i32, i32
  }
  func.func @transform_3(%arg0: i32) -> (i32, i32, i32) {
    %c0_i32 = arith.constant 0 : i32
    %c0_i32_0 = arith.constant 0 : i32
    %c0_i32_1 = arith.constant 0 : i32
    return %arg0, %c0_i32, %c0_i32_0 : i32, i32, i32
  }
}

module attributes {stable_mosaic.version = 11 : i64} {
  func.func @tail_kernel(%arg0: i32, %arg1: memref<1x25x576xbf16, #tpu.memory_space<vmem>>, %arg2: memref<576x64xbf16, #tpu.memory_space<vmem>>, %arg3: memref<1x64xf32, #tpu.memory_space<vmem>>, %arg4: memref<25x64x512xbf16, #tpu.memory_space<vmem>>, %arg5: memref<1x512xf32, #tpu.memory_space<vmem>>, %arg6: memref<512x6xbf16, #tpu.memory_space<vmem>>, %arg7: memref<1x6xf32, #tpu.memory_space<vmem>>, %arg8: memref<1x1x6xf32, #tpu.memory_space<vmem>>, %arg9: memref<25x64xbf16, #tpu.memory_space<vmem>>) attributes {dimension_semantics = [#tpu.dimension_semantics<parallel>], iteration_bounds = array<i64: 2>, scalar_prefetch = 0 : i64, scratch_operands = 1 : i64, tpu.core_type = #tpu.core_type<tc>, window_params = [{transform_indices = @transform_0, window_bounds = array<i64: 1, 25, 576>}, {pipeline_mode = #tpu.pipeline_mode<synchronous>, transform_indices = @transform_1, window_bounds = array<i64: 576, 64>}, {pipeline_mode = #tpu.pipeline_mode<synchronous>, transform_indices = @transform_2, window_bounds = array<i64: 1, 64>}, {pipeline_mode = #tpu.pipeline_mode<synchronous>, transform_indices = @transform_3, window_bounds = array<i64: 25, 64, 512>}, {pipeline_mode = #tpu.pipeline_mode<synchronous>, transform_indices = @transform_4, window_bounds = array<i64: 1, 512>}, {pipeline_mode = #tpu.pipeline_mode<synchronous>, transform_indices = @transform_5, window_bounds = array<i64: 512, 6>}, {pipeline_mode = #tpu.pipeline_mode<synchronous>, transform_indices = @transform_6, window_bounds = array<i64: 1, 6>}, {transform_indices = @transform_7, window_bounds = array<i64: 1, 1, 6>}]} {
    %c0 = arith.constant 0 : index
    %c0_0 = arith.constant 0 : index
    %c0_1 = arith.constant 0 : index
    %0 = vector.load %arg1[%c0, %c0_0, %c0_1] : memref<1x25x576xbf16, #tpu.memory_space<vmem>>, vector<1x25x576xbf16>
    %1 = vector.shape_cast %0 : vector<1x25x576xbf16> to vector<25x576xbf16>
    %c0_2 = arith.constant 0 : index
    %c0_3 = arith.constant 0 : index
    %2 = vector.load %arg2[%c0_2, %c0_3] : memref<576x64xbf16, #tpu.memory_space<vmem>>, vector<576x64xbf16>
    %cst = arith.constant dense<0.000000e+00> : vector<25x64xf32>
    %3 = tpu.matmul %1, %2, %cst {dimension_numbers = #tpu.dot_dimension_numbers<[1], [0], [0], [1], [0, 0, 1, 1], [], []>} : vector<25x576xbf16>, vector<576x64xbf16>, vector<25x64xf32> -> vector<25x64xf32>
    %c0_4 = arith.constant 0 : index
    %c0_5 = arith.constant 0 : index
    %4 = vector.load %arg3[%c0_4, %c0_5] : memref<1x64xf32, #tpu.memory_space<vmem>>, vector<1x64xf32>
    %5 = vector.broadcast %4 : vector<1x64xf32> to vector<25x64xf32>
    %6 = arith.addf %3, %5 : vector<25x64xf32>
    %cst_6 = arith.constant 0.000000e+00 : f32
    %7 = vector.broadcast %cst_6 : f32 to vector<25x64xf32>
    %8 = arith.maximumf %6, %7 : vector<25x64xf32>
    %9 = arith.truncf %8 : vector<25x64xf32> to vector<25x64xbf16>
    %c0_7 = arith.constant 0 : index
    %c0_8 = arith.constant 0 : index
    %10 = vector.load %arg9[%c0_7, %c0_8] : memref<25x64xbf16, #tpu.memory_space<vmem>>, vector<25x64xbf16>
    tpu.vector_store %arg9[%c0_7, %c0_8], %9 {strides = array<i32>} : memref<25x64xbf16, #tpu.memory_space<vmem>>, vector<25x64xbf16>,
    %cst_9 = arith.constant 0.000000e+00 : f32
    %11 = vector.broadcast %cst_9 : f32 to vector<1x512xf32>
    %c0_10 = arith.constant 0 : index
    %c0_11 = arith.constant 0 : index
    %12 = vector.load %arg9[%c0_10, %c0_11] : memref<25x64xbf16, #tpu.memory_space<vmem>>, vector<1x64xbf16>
    %c0_12 = arith.constant 0 : index
    %c0_13 = arith.constant 0 : index
    %c0_14 = arith.constant 0 : index
    %13 = vector.load %arg4[%c0_12, %c0_13, %c0_14] : memref<25x64x512xbf16, #tpu.memory_space<vmem>>, vector<1x64x512xbf16>
    %14 = vector.shape_cast %13 : vector<1x64x512xbf16> to vector<64x512xbf16>
    %cst_15 = arith.constant dense<0.000000e+00> : vector<1x512xf32>
    %15 = tpu.matmul %12, %14, %cst_15 {dimension_numbers = #tpu.dot_dimension_numbers<[1], [0], [0], [1], [0, 0, 1, 1], [], []>} : vector<1x64xbf16>, vector<64x512xbf16>, vector<1x512xf32> -> vector<1x512xf32>
    %16 = arith.addf %11, %15 : vector<1x512xf32>
    %c1 = arith.constant 1 : index
    %c0_16 = arith.constant 0 : index
    %17 = vector.load %arg9[%c1, %c0_16] : memref<25x64xbf16, #tpu.memory_space<vmem>>, vector<1x64xbf16>
    %c1_17 = arith.constant 1 : index
    %c0_18 = arith.constant 0 : index
    %c0_19 = arith.constant 0 : index
    %18 = vector.load %arg4[%c1_17, %c0_18, %c0_19] : memref<25x64x512xbf16, #tpu.memory_space<vmem>>, vector<1x64x512xbf16>
    %19 = vector.shape_cast %18 : vector<1x64x512xbf16> to vector<64x512xbf16>
    %cst_20 = arith.constant dense<0.000000e+00> : vector<1x512xf32>
    %20 = tpu.matmul %17, %19, %cst_20 {dimension_numbers = #tpu.dot_dimension_numbers<[1], [0], [0], [1], [0, 0, 1, 1], [], []>} : vector<1x64xbf16>, vector<64x512xbf16>, vector<1x512xf32> -> vector<1x512xf32>
    %21 = arith.addf %16, %20 : vector<1x512xf32>
    %c2 = arith.constant 2 : index
    %c0_21 = arith.constant 0 : index
    %22 = vector.load %arg9[%c2, %c0_21] : memref<25x64xbf16, #tpu.memory_space<vmem>>, vector<1x64xbf16>
    %c2_22 = arith.constant 2 : index
    %c0_23 = arith.constant 0 : index
    %c0_24 = arith.constant 0 : index
    %23 = vector.load %arg4[%c2_22, %c0_23, %c0_24] : memref<25x64x512xbf16, #tpu.memory_space<vmem>>, vector<1x64x512xbf16>
    %24 = vector.shape_cast %23 : vector<1x64x512xbf16> to vector<64x512xbf16>
    %cst_25 = arith.constant dense<0.000000e+00> : vector<1x512xf32>
    %25 = tpu.matmul %22, %24, %cst_25 {dimension_numbers = #tpu.dot_dimension_numbers<[1], [0], [0], [1], [0, 0, 1, 1], [], []>} : vector<1x64xbf16>, vector<64x512xbf16>, vector<1x512xf32> -> vector<1x512xf32>
    %26 = arith.addf %21, %25 : vector<1x512xf32>
    %c3 = arith.constant 3 : index
    %c0_26 = arith.constant 0 : index
    %27 = vector.load %arg9[%c3, %c0_26] : memref<25x64xbf16, #tpu.memory_space<vmem>>, vector<1x64xbf16>
    %c3_27 = arith.constant 3 : index
    %c0_28 = arith.constant 0 : index
    %c0_29 = arith.constant 0 : index
    %28 = vector.load %arg4[%c3_27, %c0_28, %c0_29] : memref<25x64x512xbf16, #tpu.memory_space<vmem>>, vector<1x64x512xbf16>
    %29 = vector.shape_cast %28 : vector<1x64x512xbf16> to vector<64x512xbf16>
    %cst_30 = arith.constant dense<0.000000e+00> : vector<1x512xf32>
    %30 = tpu.matmul %27, %29, %cst_30 {dimension_numbers = #tpu.dot_dimension_numbers<[1], [0], [0], [1], [0, 0, 1, 1], [], []>} : vector<1x64xbf16>, vector<64x512xbf16>, vector<1x512xf32> -> vector<1x512xf32>
    %31 = arith.addf %26, %30 : vector<1x512xf32>
    %c4 = arith.constant 4 : index
    %c0_31 = arith.constant 0 : index
    %32 = vector.load %arg9[%c4, %c0_31] : memref<25x64xbf16, #tpu.memory_space<vmem>>, vector<1x64xbf16>
    %c4_32 = arith.constant 4 : index
    %c0_33 = arith.constant 0 : index
    %c0_34 = arith.constant 0 : index
    %33 = vector.load %arg4[%c4_32, %c0_33, %c0_34] : memref<25x64x512xbf16, #tpu.memory_space<vmem>>, vector<1x64x512xbf16>
    %34 = vector.shape_cast %33 : vector<1x64x512xbf16> to vector<64x512xbf16>
    %cst_35 = arith.constant dense<0.000000e+00> : vector<1x512xf32>
    %35 = tpu.matmul %32, %34, %cst_35 {dimension_numbers = #tpu.dot_dimension_numbers<[1], [0], [0], [1], [0, 0, 1, 1], [], []>} : vector<1x64xbf16>, vector<64x512xbf16>, vector<1x512xf32> -> vector<1x512xf32>
    %36 = arith.addf %31, %35 : vector<1x512xf32>
    %c5 = arith.constant 5 : index
    %c0_36 = arith.constant 0 : index
    %37 = vector.load %arg9[%c5, %c0_36] : memref<25x64xbf16, #tpu.memory_space<vmem>>, vector<1x64xbf16>
    %c5_37 = arith.constant 5 : index
    %c0_38 = arith.constant 0 : index
    %c0_39 = arith.constant 0 : index
    %38 = vector.load %arg4[%c5_37, %c0_38, %c0_39] : memref<25x64x512xbf16, #tpu.memory_space<vmem>>, vector<1x64x512xbf16>
    %39 = vector.shape_cast %38 : vector<1x64x512xbf16> to vector<64x512xbf16>
    %cst_40 = arith.constant dense<0.000000e+00> : vector<1x512xf32>
    %40 = tpu.matmul %37, %39, %cst_40 {dimension_numbers = #tpu.dot_dimension_numbers<[1], [0], [0], [1], [0, 0, 1, 1], [], []>} : vector<1x64xbf16>, vector<64x512xbf16>, vector<1x512xf32> -> vector<1x512xf32>
    %41 = arith.addf %36, %40 : vector<1x512xf32>
    %c6 = arith.constant 6 : index
    %c0_41 = arith.constant 0 : index
    %42 = vector.load %arg9[%c6, %c0_41] : memref<25x64xbf16, #tpu.memory_space<vmem>>, vector<1x64xbf16>
    %c6_42 = arith.constant 6 : index
    %c0_43 = arith.constant 0 : index
    %c0_44 = arith.constant 0 : index
    %43 = vector.load %arg4[%c6_42, %c0_43, %c0_44] : memref<25x64x512xbf16, #tpu.memory_space<vmem>>, vector<1x64x512xbf16>
    %44 = vector.shape_cast %43 : vector<1x64x512xbf16> to vector<64x512xbf16>
    %cst_45 = arith.constant dense<0.000000e+00> : vector<1x512xf32>
    %45 = tpu.matmul %42, %44, %cst_45 {dimension_numbers = #tpu.dot_dimension_numbers<[1], [0], [0], [1], [0, 0, 1, 1], [], []>} : vector<1x64xbf16>, vector<64x512xbf16>, vector<1x512xf32> -> vector<1x512xf32>
    %46 = arith.addf %41, %45 : vector<1x512xf32>
    %c7 = arith.constant 7 : index
    %c0_46 = arith.constant 0 : index
    %47 = vector.load %arg9[%c7, %c0_46] : memref<25x64xbf16, #tpu.memory_space<vmem>>, vector<1x64xbf16>
    %c7_47 = arith.constant 7 : index
    %c0_48 = arith.constant 0 : index
    %c0_49 = arith.constant 0 : index
    %48 = vector.load %arg4[%c7_47, %c0_48, %c0_49] : memref<25x64x512xbf16, #tpu.memory_space<vmem>>, vector<1x64x512xbf16>
    %49 = vector.shape_cast %48 : vector<1x64x512xbf16> to vector<64x512xbf16>
    %cst_50 = arith.constant dense<0.000000e+00> : vector<1x512xf32>
    %50 = tpu.matmul %47, %49, %cst_50 {dimension_numbers = #tpu.dot_dimension_numbers<[1], [0], [0], [1], [0, 0, 1, 1], [], []>} : vector<1x64xbf16>, vector<64x512xbf16>, vector<1x512xf32> -> vector<1x512xf32>
    %51 = arith.addf %46, %50 : vector<1x512xf32>
    %c8 = arith.constant 8 : index
    %c0_51 = arith.constant 0 : index
    %52 = vector.load %arg9[%c8, %c0_51] : memref<25x64xbf16, #tpu.memory_space<vmem>>, vector<1x64xbf16>
    %c8_52 = arith.constant 8 : index
    %c0_53 = arith.constant 0 : index
    %c0_54 = arith.constant 0 : index
    %53 = vector.load %arg4[%c8_52, %c0_53, %c0_54] : memref<25x64x512xbf16, #tpu.memory_space<vmem>>, vector<1x64x512xbf16>
    %54 = vector.shape_cast %53 : vector<1x64x512xbf16> to vector<64x512xbf16>
    %cst_55 = arith.constant dense<0.000000e+00> : vector<1x512xf32>
    %55 = tpu.matmul %52, %54, %cst_55 {dimension_numbers = #tpu.dot_dimension_numbers<[1], [0], [0], [1], [0, 0, 1, 1], [], []>} : vector<1x64xbf16>, vector<64x512xbf16>, vector<1x512xf32> -> vector<1x512xf32>
    %56 = arith.addf %51, %55 : vector<1x512xf32>
    %c9 = arith.constant 9 : index
    %c0_56 = arith.constant 0 : index
    %57 = vector.load %arg9[%c9, %c0_56] : memref<25x64xbf16, #tpu.memory_space<vmem>>, vector<1x64xbf16>
    %c9_57 = arith.constant 9 : index
    %c0_58 = arith.constant 0 : index
    %c0_59 = arith.constant 0 : index
    %58 = vector.load %arg4[%c9_57, %c0_58, %c0_59] : memref<25x64x512xbf16, #tpu.memory_space<vmem>>, vector<1x64x512xbf16>
    %59 = vector.shape_cast %58 : vector<1x64x512xbf16> to vector<64x512xbf16>
    %cst_60 = arith.constant dense<0.000000e+00> : vector<1x512xf32>
    %60 = tpu.matmul %57, %59, %cst_60 {dimension_numbers = #tpu.dot_dimension_numbers<[1], [0], [0], [1], [0, 0, 1, 1], [], []>} : vector<1x64xbf16>, vector<64x512xbf16>, vector<1x512xf32> -> vector<1x512xf32>
    %61 = arith.addf %56, %60 : vector<1x512xf32>
    %c10 = arith.constant 10 : index
    %c0_61 = arith.constant 0 : index
    %62 = vector.load %arg9[%c10, %c0_61] : memref<25x64xbf16, #tpu.memory_space<vmem>>, vector<1x64xbf16>
    %c10_62 = arith.constant 10 : index
    %c0_63 = arith.constant 0 : index
    %c0_64 = arith.constant 0 : index
    %63 = vector.load %arg4[%c10_62, %c0_63, %c0_64] : memref<25x64x512xbf16, #tpu.memory_space<vmem>>, vector<1x64x512xbf16>
    %64 = vector.shape_cast %63 : vector<1x64x512xbf16> to vector<64x512xbf16>
    %cst_65 = arith.constant dense<0.000000e+00> : vector<1x512xf32>
    %65 = tpu.matmul %62, %64, %cst_65 {dimension_numbers = #tpu.dot_dimension_numbers<[1], [0], [0], [1], [0, 0, 1, 1], [], []>} : vector<1x64xbf16>, vector<64x512xbf16>, vector<1x512xf32> -> vector<1x512xf32>
    %66 = arith.addf %61, %65 : vector<1x512xf32>
    %c11 = arith.constant 11 : index
    %c0_66 = arith.constant 0 : index
    %67 = vector.load %arg9[%c11, %c0_66] : memref<25x64xbf16, #tpu.memory_space<vmem>>, vector<1x64xbf16>
    %c11_67 = arith.constant 11 : index
    %c0_68 = arith.constant 0 : index
    %c0_69 = arith.constant 0 : index
    %68 = vector.load %arg4[%c11_67, %c0_68, %c0_69] : memref<25x64x512xbf16, #tpu.memory_space<vmem>>, vector<1x64x512xbf16>
    %69 = vector.shape_cast %68 : vector<1x64x512xbf16> to vector<64x512xbf16>
    %cst_70 = arith.constant dense<0.000000e+00> : vector<1x512xf32>
    %70 = tpu.matmul %67, %69, %cst_70 {dimension_numbers = #tpu.dot_dimension_numbers<[1], [0], [0], [1], [0, 0, 1, 1], [], []>} : vector<1x64xbf16>, vector<64x512xbf16>, vector<1x512xf32> -> vector<1x512xf32>
    %71 = arith.addf %66, %70 : vector<1x512xf32>
    %c12 = arith.constant 12 : index
    %c0_71 = arith.constant 0 : index
    %72 = vector.load %arg9[%c12, %c0_71] : memref<25x64xbf16, #tpu.memory_space<vmem>>, vector<1x64xbf16>
    %c12_72 = arith.constant 12 : index
    %c0_73 = arith.constant 0 : index
    %c0_74 = arith.constant 0 : index
    %73 = vector.load %arg4[%c12_72, %c0_73, %c0_74] : memref<25x64x512xbf16, #tpu.memory_space<vmem>>, vector<1x64x512xbf16>
    %74 = vector.shape_cast %73 : vector<1x64x512xbf16> to vector<64x512xbf16>
    %cst_75 = arith.constant dense<0.000000e+00> : vector<1x512xf32>
    %75 = tpu.matmul %72, %74, %cst_75 {dimension_numbers = #tpu.dot_dimension_numbers<[1], [0], [0], [1], [0, 0, 1, 1], [], []>} : vector<1x64xbf16>, vector<64x512xbf16>, vector<1x512xf32> -> vector<1x512xf32>
    %76 = arith.addf %71, %75 : vector<1x512xf32>
    %c13 = arith.constant 13 : index
    %c0_76 = arith.constant 0 : index
    %77 = vector.load %arg9[%c13, %c0_76] : memref<25x64xbf16, #tpu.memory_space<vmem>>, vector<1x64xbf16>
    %c13_77 = arith.constant 13 : index
    %c0_78 = arith.constant 0 : index
    %c0_79 = arith.constant 0 : index
    %78 = vector.load %arg4[%c13_77, %c0_78, %c0_79] : memref<25x64x512xbf16, #tpu.memory_space<vmem>>, vector<1x64x512xbf16>
    %79 = vector.shape_cast %78 : vector<1x64x512xbf16> to vector<64x512xbf16>
    %cst_80 = arith.constant dense<0.000000e+00> : vector<1x512xf32>
    %80 = tpu.matmul %77, %79, %cst_80 {dimension_numbers = #tpu.dot_dimension_numbers<[1], [0], [0], [1], [0, 0, 1, 1], [], []>} : vector<1x64xbf16>, vector<64x512xbf16>, vector<1x512xf32> -> vector<1x512xf32>
    %81 = arith.addf %76, %80 : vector<1x512xf32>
    %c14 = arith.constant 14 : index
    %c0_81 = arith.constant 0 : index
    %82 = vector.load %arg9[%c14, %c0_81] : memref<25x64xbf16, #tpu.memory_space<vmem>>, vector<1x64xbf16>
    %c14_82 = arith.constant 14 : index
    %c0_83 = arith.constant 0 : index
    %c0_84 = arith.constant 0 : index
    %83 = vector.load %arg4[%c14_82, %c0_83, %c0_84] : memref<25x64x512xbf16, #tpu.memory_space<vmem>>, vector<1x64x512xbf16>
    %84 = vector.shape_cast %83 : vector<1x64x512xbf16> to vector<64x512xbf16>
    %cst_85 = arith.constant dense<0.000000e+00> : vector<1x512xf32>
    %85 = tpu.matmul %82, %84, %cst_85 {dimension_numbers = #tpu.dot_dimension_numbers<[1], [0], [0], [1], [0, 0, 1, 1], [], []>} : vector<1x64xbf16>, vector<64x512xbf16>, vector<1x512xf32> -> vector<1x512xf32>
    %86 = arith.addf %81, %85 : vector<1x512xf32>
    %c15 = arith.constant 15 : index
    %c0_86 = arith.constant 0 : index
    %87 = vector.load %arg9[%c15, %c0_86] : memref<25x64xbf16, #tpu.memory_space<vmem>>, vector<1x64xbf16>
    %c15_87 = arith.constant 15 : index
    %c0_88 = arith.constant 0 : index
    %c0_89 = arith.constant 0 : index
    %88 = vector.load %arg4[%c15_87, %c0_88, %c0_89] : memref<25x64x512xbf16, #tpu.memory_space<vmem>>, vector<1x64x512xbf16>
    %89 = vector.shape_cast %88 : vector<1x64x512xbf16> to vector<64x512xbf16>
    %cst_90 = arith.constant dense<0.000000e+00> : vector<1x512xf32>
    %90 = tpu.matmul %87, %89, %cst_90 {dimension_numbers = #tpu.dot_dimension_numbers<[1], [0], [0], [1], [0, 0, 1, 1], [], []>} : vector<1x64xbf16>, vector<64x512xbf16>, vector<1x512xf32> -> vector<1x512xf32>
    %91 = arith.addf %86, %90 : vector<1x512xf32>
    %c16 = arith.constant 16 : index
    %c0_91 = arith.constant 0 : index
    %92 = vector.load %arg9[%c16, %c0_91] : memref<25x64xbf16, #tpu.memory_space<vmem>>, vector<1x64xbf16>
    %c16_92 = arith.constant 16 : index
    %c0_93 = arith.constant 0 : index
    %c0_94 = arith.constant 0 : index
    %93 = vector.load %arg4[%c16_92, %c0_93, %c0_94] : memref<25x64x512xbf16, #tpu.memory_space<vmem>>, vector<1x64x512xbf16>
    %94 = vector.shape_cast %93 : vector<1x64x512xbf16> to vector<64x512xbf16>
    %cst_95 = arith.constant dense<0.000000e+00> : vector<1x512xf32>
    %95 = tpu.matmul %92, %94, %cst_95 {dimension_numbers = #tpu.dot_dimension_numbers<[1], [0], [0], [1], [0, 0, 1, 1], [], []>} : vector<1x64xbf16>, vector<64x512xbf16>, vector<1x512xf32> -> vector<1x512xf32>
    %96 = arith.addf %91, %95 : vector<1x512xf32>
    %c17 = arith.constant 17 : index
    %c0_96 = arith.constant 0 : index
    %97 = vector.load %arg9[%c17, %c0_96] : memref<25x64xbf16, #tpu.memory_space<vmem>>, vector<1x64xbf16>
    %c17_97 = arith.constant 17 : index
    %c0_98 = arith.constant 0 : index
    %c0_99 = arith.constant 0 : index
    %98 = vector.load %arg4[%c17_97, %c0_98, %c0_99] : memref<25x64x512xbf16, #tpu.memory_space<vmem>>, vector<1x64x512xbf16>
    %99 = vector.shape_cast %98 : vector<1x64x512xbf16> to vector<64x512xbf16>
    %cst_100 = arith.constant dense<0.000000e+00> : vector<1x512xf32>
    %100 = tpu.matmul %97, %99, %cst_100 {dimension_numbers = #tpu.dot_dimension_numbers<[1], [0], [0], [1], [0, 0, 1, 1], [], []>} : vector<1x64xbf16>, vector<64x512xbf16>, vector<1x512xf32> -> vector<1x512xf32>
    %101 = arith.addf %96, %100 : vector<1x512xf32>
    %c18 = arith.constant 18 : index
    %c0_101 = arith.constant 0 : index
    %102 = vector.load %arg9[%c18, %c0_101] : memref<25x64xbf16, #tpu.memory_space<vmem>>, vector<1x64xbf16>
    %c18_102 = arith.constant 18 : index
    %c0_103 = arith.constant 0 : index
    %c0_104 = arith.constant 0 : index
    %103 = vector.load %arg4[%c18_102, %c0_103, %c0_104] : memref<25x64x512xbf16, #tpu.memory_space<vmem>>, vector<1x64x512xbf16>
    %104 = vector.shape_cast %103 : vector<1x64x512xbf16> to vector<64x512xbf16>
    %cst_105 = arith.constant dense<0.000000e+00> : vector<1x512xf32>
    %105 = tpu.matmul %102, %104, %cst_105 {dimension_numbers = #tpu.dot_dimension_numbers<[1], [0], [0], [1], [0, 0, 1, 1], [], []>} : vector<1x64xbf16>, vector<64x512xbf16>, vector<1x512xf32> -> vector<1x512xf32>
    %106 = arith.addf %101, %105 : vector<1x512xf32>
    %c19 = arith.constant 19 : index
    %c0_106 = arith.constant 0 : index
    %107 = vector.load %arg9[%c19, %c0_106] : memref<25x64xbf16, #tpu.memory_space<vmem>>, vector<1x64xbf16>
    %c19_107 = arith.constant 19 : index
    %c0_108 = arith.constant 0 : index
    %c0_109 = arith.constant 0 : index
    %108 = vector.load %arg4[%c19_107, %c0_108, %c0_109] : memref<25x64x512xbf16, #tpu.memory_space<vmem>>, vector<1x64x512xbf16>
    %109 = vector.shape_cast %108 : vector<1x64x512xbf16> to vector<64x512xbf16>
    %cst_110 = arith.constant dense<0.000000e+00> : vector<1x512xf32>
    %110 = tpu.matmul %107, %109, %cst_110 {dimension_numbers = #tpu.dot_dimension_numbers<[1], [0], [0], [1], [0, 0, 1, 1], [], []>} : vector<1x64xbf16>, vector<64x512xbf16>, vector<1x512xf32> -> vector<1x512xf32>
    %111 = arith.addf %106, %110 : vector<1x512xf32>
    %c20 = arith.constant 20 : index
    %c0_111 = arith.constant 0 : index
    %112 = vector.load %arg9[%c20, %c0_111] : memref<25x64xbf16, #tpu.memory_space<vmem>>, vector<1x64xbf16>
    %c20_112 = arith.constant 20 : index
    %c0_113 = arith.constant 0 : index
    %c0_114 = arith.constant 0 : index
    %113 = vector.load %arg4[%c20_112, %c0_113, %c0_114] : memref<25x64x512xbf16, #tpu.memory_space<vmem>>, vector<1x64x512xbf16>
    %114 = vector.shape_cast %113 : vector<1x64x512xbf16> to vector<64x512xbf16>
    %cst_115 = arith.constant dense<0.000000e+00> : vector<1x512xf32>
    %115 = tpu.matmul %112, %114, %cst_115 {dimension_numbers = #tpu.dot_dimension_numbers<[1], [0], [0], [1], [0, 0, 1, 1], [], []>} : vector<1x64xbf16>, vector<64x512xbf16>, vector<1x512xf32> -> vector<1x512xf32>
    %116 = arith.addf %111, %115 : vector<1x512xf32>
    %c21 = arith.constant 21 : index
    %c0_116 = arith.constant 0 : index
    %117 = vector.load %arg9[%c21, %c0_116] : memref<25x64xbf16, #tpu.memory_space<vmem>>, vector<1x64xbf16>
    %c21_117 = arith.constant 21 : index
    %c0_118 = arith.constant 0 : index
    %c0_119 = arith.constant 0 : index
    %118 = vector.load %arg4[%c21_117, %c0_118, %c0_119] : memref<25x64x512xbf16, #tpu.memory_space<vmem>>, vector<1x64x512xbf16>
    %119 = vector.shape_cast %118 : vector<1x64x512xbf16> to vector<64x512xbf16>
    %cst_120 = arith.constant dense<0.000000e+00> : vector<1x512xf32>
    %120 = tpu.matmul %117, %119, %cst_120 {dimension_numbers = #tpu.dot_dimension_numbers<[1], [0], [0], [1], [0, 0, 1, 1], [], []>} : vector<1x64xbf16>, vector<64x512xbf16>, vector<1x512xf32> -> vector<1x512xf32>
    %121 = arith.addf %116, %120 : vector<1x512xf32>
    %c22 = arith.constant 22 : index
    %c0_121 = arith.constant 0 : index
    %122 = vector.load %arg9[%c22, %c0_121] : memref<25x64xbf16, #tpu.memory_space<vmem>>, vector<1x64xbf16>
    %c22_122 = arith.constant 22 : index
    %c0_123 = arith.constant 0 : index
    %c0_124 = arith.constant 0 : index
    %123 = vector.load %arg4[%c22_122, %c0_123, %c0_124] : memref<25x64x512xbf16, #tpu.memory_space<vmem>>, vector<1x64x512xbf16>
    %124 = vector.shape_cast %123 : vector<1x64x512xbf16> to vector<64x512xbf16>
    %cst_125 = arith.constant dense<0.000000e+00> : vector<1x512xf32>
    %125 = tpu.matmul %122, %124, %cst_125 {dimension_numbers = #tpu.dot_dimension_numbers<[1], [0], [0], [1], [0, 0, 1, 1], [], []>} : vector<1x64xbf16>, vector<64x512xbf16>, vector<1x512xf32> -> vector<1x512xf32>
    %126 = arith.addf %121, %125 : vector<1x512xf32>
    %c23 = arith.constant 23 : index
    %c0_126 = arith.constant 0 : index
    %127 = vector.load %arg9[%c23, %c0_126] : memref<25x64xbf16, #tpu.memory_space<vmem>>, vector<1x64xbf16>
    %c23_127 = arith.constant 23 : index
    %c0_128 = arith.constant 0 : index
    %c0_129 = arith.constant 0 : index
    %128 = vector.load %arg4[%c23_127, %c0_128, %c0_129] : memref<25x64x512xbf16, #tpu.memory_space<vmem>>, vector<1x64x512xbf16>
    %129 = vector.shape_cast %128 : vector<1x64x512xbf16> to vector<64x512xbf16>
    %cst_130 = arith.constant dense<0.000000e+00> : vector<1x512xf32>
    %130 = tpu.matmul %127, %129, %cst_130 {dimension_numbers = #tpu.dot_dimension_numbers<[1], [0], [0], [1], [0, 0, 1, 1], [], []>} : vector<1x64xbf16>, vector<64x512xbf16>, vector<1x512xf32> -> vector<1x512xf32>
    %131 = arith.addf %126, %130 : vector<1x512xf32>
    %c24 = arith.constant 24 : index
    %c0_131 = arith.constant 0 : index
    %132 = vector.load %arg9[%c24, %c0_131] : memref<25x64xbf16, #tpu.memory_space<vmem>>, vector<1x64xbf16>
    %c24_132 = arith.constant 24 : index
    %c0_133 = arith.constant 0 : index
    %c0_134 = arith.constant 0 : index
    %133 = vector.load %arg4[%c24_132, %c0_133, %c0_134] : memref<25x64x512xbf16, #tpu.memory_space<vmem>>, vector<1x64x512xbf16>
    %134 = vector.shape_cast %133 : vector<1x64x512xbf16> to vector<64x512xbf16>
    %cst_135 = arith.constant dense<0.000000e+00> : vector<1x512xf32>
    %135 = tpu.matmul %132, %134, %cst_135 {dimension_numbers = #tpu.dot_dimension_numbers<[1], [0], [0], [1], [0, 0, 1, 1], [], []>} : vector<1x64xbf16>, vector<64x512xbf16>, vector<1x512xf32> -> vector<1x512xf32>
    %136 = arith.addf %131, %135 : vector<1x512xf32>
    %c0_136 = arith.constant 0 : index
    %c0_137 = arith.constant 0 : index
    %137 = vector.load %arg5[%c0_136, %c0_137] : memref<1x512xf32, #tpu.memory_space<vmem>>, vector<1x512xf32>
    %138 = arith.addf %136, %137 : vector<1x512xf32>
    %cst_138 = arith.constant 0.000000e+00 : f32
    %139 = vector.broadcast %cst_138 : f32 to vector<1x512xf32>
    %140 = arith.maximumf %138, %139 : vector<1x512xf32>
    %141 = arith.truncf %140 : vector<1x512xf32> to vector<1x512xbf16>
    %c0_139 = arith.constant 0 : index
    %c0_140 = arith.constant 0 : index
    %142 = vector.load %arg6[%c0_139, %c0_140] : memref<512x6xbf16, #tpu.memory_space<vmem>>, vector<512x6xbf16>
    %cst_141 = arith.constant dense<0.000000e+00> : vector<1x6xf32>
    %143 = tpu.matmul %141, %142, %cst_141 {dimension_numbers = #tpu.dot_dimension_numbers<[1], [0], [0], [1], [0, 0, 1, 1], [], []>} : vector<1x512xbf16>, vector<512x6xbf16>, vector<1x6xf32> -> vector<1x6xf32>
    %c0_142 = arith.constant 0 : index
    %c0_143 = arith.constant 0 : index
    %144 = vector.load %arg7[%c0_142, %c0_143] : memref<1x6xf32, #tpu.memory_space<vmem>>, vector<1x6xf32>
    %145 = arith.addf %143, %144 : vector<1x6xf32>
    %c0_144 = arith.constant 0 : index
    %c0_145 = arith.constant 0 : index
    %c0_146 = arith.constant 0 : index
    %146 = vector.load %arg8[%c0_144, %c0_145, %c0_146] : memref<1x1x6xf32, #tpu.memory_space<vmem>>, vector<1x1x6xf32>
    %147 = vector.shape_cast %146 : vector<1x1x6xf32> to vector<1x6xf32>
    %148 = vector.shape_cast %145 : vector<1x6xf32> to vector<1x1x6xf32>
    tpu.vector_store %arg8[%c0_144, %c0_145, %c0_146], %148 {strides = array<i32>} : memref<1x1x6xf32, #tpu.memory_space<vmem>>, vector<1x1x6xf32>,
    return
  }
  func.func @transform_0(%arg0: i32) -> (i32, i32, i32) {
    %c0_i32 = arith.constant 0 : i32
    %c0_i32_0 = arith.constant 0 : i32
    %c0_i32_1 = arith.constant 0 : i32
    return %arg0, %c0_i32, %c0_i32_0 : i32, i32, i32
  }
  func.func @transform_1(%arg0: i32) -> (i32, i32) {
    %c0_i32 = arith.constant 0 : i32
    %c0_i32_0 = arith.constant 0 : i32
    %c0_i32_1 = arith.constant 0 : i32
    return %c0_i32, %c0_i32_0 : i32, i32
  }
  func.func @transform_2(%arg0: i32) -> (i32, i32) {
    %c0_i32 = arith.constant 0 : i32
    %c0_i32_0 = arith.constant 0 : i32
    %c0_i32_1 = arith.constant 0 : i32
    return %c0_i32, %c0_i32_0 : i32, i32
  }
  func.func @transform_3(%arg0: i32) -> (i32, i32, i32) {
    %c0_i32 = arith.constant 0 : i32
    %c0_i32_0 = arith.constant 0 : i32
    %c0_i32_1 = arith.constant 0 : i32
    %c0_i32_2 = arith.constant 0 : i32
    return %c0_i32, %c0_i32_0, %c0_i32_1 : i32, i32, i32
  }
  func.func @transform_4(%arg0: i32) -> (i32, i32) {
    %c0_i32 = arith.constant 0 : i32
    %c0_i32_0 = arith.constant 0 : i32
    %c0_i32_1 = arith.constant 0 : i32
    return %c0_i32, %c0_i32_0 : i32, i32
  }
  func.func @transform_5(%arg0: i32) -> (i32, i32) {
    %c0_i32 = arith.constant 0 : i32
    %c0_i32_0 = arith.constant 0 : i32
    %c0_i32_1 = arith.constant 0 : i32
    return %c0_i32, %c0_i32_0 : i32, i32
  }
  func.func @transform_6(%arg0: i32) -> (i32, i32) {
    %c0_i32 = arith.constant 0 : i32
    %c0_i32_0 = arith.constant 0 : i32
    %c0_i32_1 = arith.constant 0 : i32
    return %c0_i32, %c0_i32_0 : i32, i32
  }
  func.func @transform_7(%arg0: i32) -> (i32, i32, i32) {
    %c0_i32 = arith.constant 0 : i32
    %c0_i32_0 = arith.constant 0 : i32
    %c0_i32_1 = arith.constant 0 : i32
    return %arg0, %c0_i32, %c0_i32_0 : i32, i32, i32
  }
}

</mosaic_0001>

<bundles_post_ra>
// kernel: value_network_forward.4
= control target key start
LH: loop header
LB: loop body
LE: loop exit
PB: predicated region body
PF: predicated region fallthrough
CT: control target
= control target key end

     0   :  { %s1535_s12 = smov 0   ;;  %s1845_s0 = inlined_call_operand.vmem [shape: bf16[2,400,256], index: 0, kind: input, shape index: {}]   ;;  %s1846_s1 = inlined_call_operand.vmem [shape: bf16[256,32], index: 1, kind: input, shape index: {}]   ;;  %s1847_s2 = inlined_call_operand.vmem [shape: f32[1,32], index: 2, kind: input, shape index: {}]   ;;  %s1848_s3 = inlined_call_operand.vmem [shape: bf16[2,400,32], index: 3, kind: output, shape index: {}]  }
   0x1 LB: > { %s1196_s13 = sadd.s32 4294967295, %s1512_s12   ;;  %p1200_p0 = scmp.ge.s32.totalorder %s1512_s12, 1  ;;  %s1512_s12 = sphi %s1535_s12, %s13_s12  }
   0x2   : > { %p137_p1 = scmp.lt.s32.totalorder %s1512_s12, 3 }
   0x4   : > { %p138_p2 = pnand %p1200_p0, %p137_p1 }
   0x5   : > { %v1415_v0 = vld [vmem:[%s1846_s1] sm:$0xff] (!%p138_p2)   ;;  %v1514_v1 = vmov (!%p138_p2), 0   ;;  %v1416_v2 = vld [vmem:[%s1846_s1 + $0x8] sm:$0xff] (!%p138_p2)   ;;  %p161_p3 = scmp.lt.s32.totalorder (!%p138_p2), %s1196_s13, 1  ;;  %v1417_v3 = vld [vmem:[%s1846_s1 + $0x10] sm:$0xff] (!%p138_p2)   ;;  %vm1090_vm0 = vcmask (!%p138_p2), 257024  }
   0x6   : > { %141 = sbr.rel (%p138_p2) target bundleno = 387 (0x183), region = 32  ;;  %607 = vmatprep.subr.bf16.mxu0 (!%p138_p2), %v1514_v1  ;;  %1372 = vmatprep.subr.bf16.mxu1 (!%p138_p2), %v1514_v1  ;;  %v1418_v4 = vld [vmem:[%s1846_s1 + $0x18] sm:$0xff] (!%p138_p2)   ;;  %v1419_v5 = vld [vmem:[%s1846_s1 + $0x20] sm:$0xff] (!%p138_p2)   ;;  %v1420_v7 = vld [vmem:[%s1846_s1 + $0x28] sm:$0xff] (!%p138_p2)  }
   0x7   : > { %608 = vmatpush1.bf16.msra.mxu0 (!%p138_p2), %v1415_v0  ;;  %1388 = vmatpush1.bf16.msra.mxu1 (!%p138_p2), %v1415_v0  ;;  %v1421_v9 = vld [vmem:[%s1846_s1 + $0x30] sm:$0xff] (!%p138_p2)   ;;  %v1422_v10 = vld [vmem:[%s1846_s1 + $0x38] sm:$0xff] (!%p138_p2)   ;;  %v1423_v11 = vld [vmem:[%s1846_s1 + $0x40] sm:$0xff] (!%p138_p2)  }
   0x8   : > { %609 = vmatprep.subr.bf16.mxu0 (!%p138_p2), %v1514_v1  ;;  %1373 = vmatprep.subr.bf16.mxu1 (!%p138_p2), %v1514_v1  ;;  %v1424_v12 = vld [vmem:[%s1846_s1 + $0x48] sm:$0xff] (!%p138_p2)   ;;  %v1425_v13 = vld [vmem:[%s1846_s1 + $0x50] sm:$0xff] (!%p138_p2)   ;;  %v1426_v14 = vld [vmem:[%s1846_s1 + $0x58] sm:$0xff] (!%p138_p2)  }
   0x9   : > { %v1427_v15 = vld [vmem:[%s1846_s1 + $0x60] sm:$0xff] (!%p138_p2)   ;;  %v1428_v16 = vld [vmem:[%s1846_s1 + $0x68] sm:$0xff] (!%p138_p2)   ;;  %v1429_v17 = vld [vmem:[%s1846_s1 + $0x70] sm:$0xff] (!%p138_p2)  }
   0xa   : > { %v1430_v18 = vld [vmem:[%s1846_s1 + $0x78] sm:$0xff] (!%p138_p2)  }
   0xb   : > { %610 = vmatpush1.bf16.msra.mxu0 (!%p138_p2), %v1416_v2  ;;  %1389 = vmatpush1.bf16.msra.mxu1 (!%p138_p2), %v1416_v2 }
   0xc   : > { %611 = vmatprep.subr.bf16.mxu0 (!%p138_p2), %v1514_v1  ;;  %1374 = vmatprep.subr.bf16.mxu1 (!%p138_p2), %v1514_v1 }
   0xd   : > { %s1850_s13 = smov (!%p161_p3, %s1196_s13), 1 }
   0xe   : > { %s1404_s22 = smul.u32 400, %s1850_s13 }
   0xf   : > { %612 = vmatpush1.bf16.msra.mxu0 %v1417_v3  ;;  %1390 = vmatpush1.bf16.msra.mxu1 %v1417_v3  ;;  %v1684_v3 = vld [vmem:[%s1847_s2] ss:$0 sm:$0xff]  ;;  %s1405_s28 = smul.u32 200, %s1850_s13 }
  0x10   : > { %613 = vmatprep.subr.bf16.mxu0 %v1514_v1  ;;  %1375 = vmatprep.subr.bf16.mxu1 %v1514_v1  ;;  %s1572_s27 = scalar_lea.vmem %s1845_s0, %s1404_s22 }
  0x11   : > { %v1433_v6 = vld [vmem:[%s1572_s27 + $0x4] ss:$8 sps:$4 sm:$0xff]   ;;  %v1436_v8 = vld [vmem:[%s1572_s27 + $0xd4] ss:$8 sps:$4 sm:$0xff]   ;;  %v1431_v19 = vld [vmem:[%s1572_s27] ss:$8 sps:$4 sm:$0xff]   ;;  %s1694_s29 = scalar_lea.vmem %s1848_s3, %s1405_s28 }
  0x12   : > { %639 = vmatprep.mubr.bf16.mxu0 %v1433_v6  ;;  %743 = vmatprep.mubr.bf16.mxu1 %v1436_v8  ;;  %v1434_v20 = vld [vmem:[%s1572_s27 + $0xd0] ss:$8 sps:$4 sm:$0xff]   ;;  %v1437_v21 = vld [vmem:[%s1572_s27 + $0x14] ss:$8 sps:$4 sm:$0xff]   ;;  %v1440_v22 = vld [vmem:[%s1572_s27 + $0xe4] ss:$8 sps:$4 sm:$0xff]  }
  0x13   : > { %614 = vmatpush1.bf16.msra.mxu0 %v1418_v4  ;;  %1391 = vmatpush1.bf16.msra.mxu1 %v1418_v4  ;;  %v1439_v23 = vld [vmem:[%s1572_s27 + $0x10] ss:$8 sps:$4 sm:$0xff]   ;;  %v1442_v24 = vld [vmem:[%s1572_s27 + $0xe0] ss:$8 sps:$4 sm:$0xff]   ;;  %v1443_v25 = vld [vmem:[%s1572_s27 + $0x24] ss:$8 sps:$4 sm:$0xff]  }
  0x14   : > { %615 = vmatprep.subr.bf16.mxu0 %v1514_v1  ;;  %1376 = vmatprep.subr.bf16.mxu1 %v1514_v1  ;;  %v1446_v26 = vld [vmem:[%s1572_s27 + $0xf4] ss:$8 sps:$4 sm:$0xff]   ;;  %v1445_v27 = vld [vmem:[%s1572_s27 + $0x20] ss:$8 sps:$4 sm:$0xff]   ;;  %v1448_v28 = vld [vmem:[%s1572_s27 + $0xf0] ss:$8 sps:$4 sm:$0xff]  }
  0x15   : > { %v1449_v29 = vld [vmem:[%s1572_s27 + $0x34] ss:$8 sps:$4 sm:$0xff]   ;;  %v1452_v30 = vld [vmem:[%s1572_s27 + $0x104] ss:$8 sps:$4 sm:$0xff]   ;;  %v1451_v31 = vld [vmem:[%s1572_s27 + $0x30] ss:$8 sps:$4 sm:$0xff]  }
  0x16   : > { %v1454_v32 = vld [vmem:[%s1572_s27 + $0x100] ss:$8 sps:$4 sm:$0xff]   ;;  %v1455_v33 = vld [vmem:[%s1572_s27 + $0x44] ss:$8 sps:$4 sm:$0xff]   ;;  %v1458_v34 = vld [vmem:[%s1572_s27 + $0x114] ss:$8 sps:$4 sm:$0xff]  }
  0x17   : > { %616 = vmatpush1.bf16.msra.mxu0 %v1419_v5  ;;  %1392 = vmatpush1.bf16.msra.mxu1 %v1419_v5  ;;  %v1457_v35 = vld [vmem:[%s1572_s27 + $0x40] ss:$8 sps:$4 sm:$0xff]   ;;  %v1460_v36 = vld [vmem:[%s1572_s27 + $0x110] ss:$8 sps:$4 sm:$0xff]   ;;  %v1461_v37 = vld [vmem:[%s1572_s27 + $0x54] ss:$8 sps:$4 sm:$0xff]  }
  0x18   : > { %617 = vmatprep.subr.bf16.mxu0 %v1514_v1  ;;  %1377 = vmatprep.subr.bf16.mxu1 %v1514_v1  ;;  %v1464_v38 = vld [vmem:[%s1572_s27 + $0x124] ss:$8 sps:$4 sm:$0xff]   ;;  %v1463_v39 = vld [vmem:[%s1572_s27 + $0x50] ss:$8 sps:$4 sm:$0xff]   ;;  %v1466_v40 = vld [vmem:[%s1572_s27 + $0x120] ss:$8 sps:$4 sm:$0xff]  }
  0x19   : > { %v1467_v41 = vld [vmem:[%s1572_s27 + $0x64] ss:$8 sps:$4 sm:$0xff]   ;;  %v1470_v42 = vld [vmem:[%s1572_s27 + $0x134] ss:$8 sps:$4 sm:$0xff]   ;;  %v1469_v43 = vld [vmem:[%s1572_s27 + $0x60] ss:$8 sps:$4 sm:$0xff]  }
  0x1a   : > { %v1472_v44 = vld [vmem:[%s1572_s27 + $0x130] ss:$8 sps:$4 sm:$0xff]   ;;  %v1473_v45 = vld [vmem:[%s1572_s27 + $0x74] ss:$8 sps:$4 sm:$0xff]   ;;  %v1476_v46 = vld [vmem:[%s1572_s27 + $0x144] ss:$8 sps:$4 sm:$0xff]  }
  0x1b   : > { %618 = vmatpush1.bf16.msra.mxu0 %v1420_v7  ;;  %1393 = vmatpush1.bf16.msra.mxu1 %v1420_v7  ;;  %v1475_v47 = vld [vmem:[%s1572_s27 + $0x70] ss:$8 sps:$4 sm:$0xff]   ;;  %v1478_v48 = vld [vmem:[%s1572_s27 + $0x140] ss:$8 sps:$4 sm:$0xff]   ;;  %v1479_v49 = vld [vmem:[%s1572_s27 + $0x84] ss:$8 sps:$4 sm:$0xff]  }
  0x1c   : > { %619 = vmatprep.subr.bf16.mxu0 %v1514_v1  ;;  %1378 = vmatprep.subr.bf16.mxu1 %v1514_v1  ;;  %v1482_v50 = vld [vmem:[%s1572_s27 + $0x154] ss:$8 sps:$4 sm:$0xff]   ;;  %v1481_v51 = vld [vmem:[%s1572_s27 + $0x80] ss:$8 sps:$4 sm:$0xff]   ;;  %v1484_v52 = vld [vmem:[%s1572_s27 + $0x150] ss:$8 sps:$4 sm:$0xff]  }
  0x1d   : > { %v1485_v53 = vld [vmem:[%s1572_s27 + $0x94] ss:$8 sps:$4 sm:$0xff]   ;;  %v1488_v54 = vld [vmem:[%s1572_s27 + $0x164] ss:$8 sps:$4 sm:$0xff]   ;;  %v1487_v55 = vld [vmem:[%s1572_s27 + $0x90] ss:$8 sps:$4 sm:$0xff]  }
  0x1e   : > { %v1490_v56 = vld [vmem:[%s1572_s27 + $0x160] ss:$8 sps:$4 sm:$0xff]   ;;  %v1491_v57 = vld [vmem:[%s1572_s27 + $0xa4] ss:$8 sps:$4 sm:$0xff]   ;;  %v1494_v58 = vld [vmem:[%s1572_s27 + $0x174] ss:$8 sps:$4 sm:$0xff]  }
  0x1f   : > { %620 = vmatpush1.bf16.msra.mxu0 %v1421_v9  ;;  %1394 = vmatpush1.bf16.msra.mxu1 %v1421_v9  ;;  %v1493_v59 = vld [vmem:[%s1572_s27 + $0xa0] ss:$8 sps:$4 sm:$0xff]   ;;  %v1496_v60 = vld [vmem:[%s1572_s27 + $0x170] ss:$8 sps:$4 sm:$0xff]   ;;  %v1497_v61 = vld [vmem:[%s1572_s27 + $0xb4] ss:$8 sps:$4 sm:$0xff]  }
  0x20   : > { %621 = vmatprep.subr.bf16.mxu0 %v1514_v1  ;;  %1379 = vmatprep.subr.bf16.mxu1 %v1514_v1  ;;  %v1500_v62 = vld [vmem:[%s1572_s27 + $0x184] ss:$8 sps:$4 sm:$0xff]   ;;  %v1499_v63 = vld [vmem:[%s1572_s27 + $0xb0] ss:$8 sps:$4 sm:$0xff]   ;;  %v1502_v0 = vld [vmem:[%s1572_s27 + $0x180] ss:$8 sps:$4 sm:$0xff]  }
  0x21   : > { %v1505_v2 = vld [vmem:[%s1572_s27 + $0xc0] ss:$8 sps:$4 sm:$0xff]  }
  0x23   : > { %622 = vmatpush1.bf16.msra.mxu0 %v1422_v10  ;;  %1395 = vmatpush1.bf16.msra.mxu1 %v1422_v10 }
  0x24   : > { %623 = vmatprep.subr.bf16.mxu0 %v1514_v1  ;;  %1380 = vmatprep.subr.bf16.mxu1 %v1514_v1 }
  0x27   : > { %624 = vmatpush1.bf16.msra.mxu0 %v1423_v11  ;;  %1396 = vmatpush1.bf16.msra.mxu1 %v1423_v11 }
  0x28   : > { %625 = vmatprep.subr.bf16.mxu0 %v1514_v1  ;;  %1381 = vmatprep.subr.bf16.mxu1 %v1514_v1 }
  0x2b   : > { %626 = vmatpush1.bf16.msra.mxu0 %v1424_v12  ;;  %1397 = vmatpush1.bf16.msra.mxu1 %v1424_v12 }
  0x2c   : > { %627 = vmatprep.subr.bf16.mxu0 %v1514_v1  ;;  %1382 = vmatprep.subr.bf16.mxu1 %v1514_v1 }
  0x2f   : > { %628 = vmatpush1.bf16.msra.mxu0 %v1425_v13  ;;  %1398 = vmatpush1.bf16.msra.mxu1 %v1425_v13 }
  0x30   : > { %629 = vmatprep.subr.bf16.mxu0 %v1514_v1  ;;  %1383 = vmatprep.subr.bf16.mxu1 %v1514_v1 }
  0x33   : > { %630 = vmatpush1.bf16.msra.mxu0 %v1426_v14  ;;  %1399 = vmatpush1.bf16.msra.mxu1 %v1426_v14 }
  0x34   : > { %631 = vmatprep.subr.bf16.mxu0 %v1514_v1  ;;  %1384 = vmatprep.subr.bf16.mxu1 %v1514_v1 }
  0x37   : > { %632 = vmatpush1.bf16.msra.mxu0 %v1427_v15  ;;  %1400 = vmatpush1.bf16.msra.mxu1 %v1427_v15 }
  0x38   : > { %633 = vmatprep.subr.bf16.mxu0 %v1514_v1  ;;  %1385 = vmatprep.subr.bf16.mxu1 %v1514_v1 }
  0x3b   : > { %634 = vmatpush1.bf16.msra.mxu0 %v1428_v16  ;;  %1401 = vmatpush1.bf16.msra.mxu1 %v1428_v16 }
  0x3c   : > { %635 = vmatprep.subr.bf16.mxu0 %v1514_v1  ;;  %1386 = vmatprep.subr.bf16.mxu1 %v1514_v1 }
  0x3f   : > { %636 = vmatpush1.bf16.msra.mxu0 %v1429_v17  ;;  %1402 = vmatpush1.bf16.msra.mxu1 %v1429_v17 }
  0x40   : > { %637 = vmatprep.subr.bf16.mxu0 %v1514_v1  ;;  %1387 = vmatprep.subr.bf16.mxu1 %v1514_v1  ;;  %v1503_v1 = vld [vmem:[%s1572_s27 + $0xc4] ss:$8 sps:$4 sm:$0xff]  }
  0x43   : > { %638 = vmatpush1.bf16.msra.mxu0 %v1430_v18  ;;  %1403 = vmatpush1.bf16.msra.mxu1 %v1430_v18 }
  0x46   : > { %640 = vmatmul.mubr.bf16.vlgmr.msra.gmra.mrb[0].mxu0 %v1431_v19  ;;  %744 = vmatmul.mubr.bf16.vlgmr.msra.gmra.mrb[0].mxu1 %v1434_v20 }
  0x47   : > { %647 = vmatprep.mubr.bf16.mxu0 %v1437_v21  ;;  %751 = vmatprep.mubr.bf16.mxu1 %v1440_v22 }
  0x4e   : > { %648 = vmatmul.mubr.bf16.gmra.mrb[4].mxu0 %v1439_v23  ;;  %752 = vmatmul.mubr.bf16.gmra.mrb[4].mxu1 %v1442_v24 }
  0x4f   : > { %655 = vmatprep.mubr.bf16.mxu0 %v1443_v25  ;;  %759 = vmatprep.mubr.bf16.mxu1 %v1446_v26 }
  0x56   : > { %656 = vmatmul.mubr.bf16.gmra.mrb[8].mxu0 %v1445_v27  ;;  %760 = vmatmul.mubr.bf16.gmra.mrb[8].mxu1 %v1448_v28 }
  0x57   : > { %663 = vmatprep.mubr.bf16.mxu0 %v1449_v29  ;;  %767 = vmatprep.mubr.bf16.mxu1 %v1452_v30 }
  0x5e   : > { %664 = vmatmul.mubr.bf16.gmra.mrb[12].mxu0 %v1451_v31  ;;  %768 = vmatmul.mubr.bf16.gmra.mrb[12].mxu1 %v1454_v32 }
  0x5f   : > { %671 = vmatprep.mubr.bf16.mxu0 %v1455_v33  ;;  %775 = vmatprep.mubr.bf16.mxu1 %v1458_v34 }
  0x66   : > { %672 = vmatmul.mubr.bf16.gmra.mrb[16].mxu0 %v1457_v35  ;;  %776 = vmatmul.mubr.bf16.gmra.mrb[16].mxu1 %v1460_v36 }
  0x67   : > { %679 = vmatprep.mubr.bf16.mxu0 %v1461_v37  ;;  %783 = vmatprep.mubr.bf16.mxu1 %v1464_v38 }
  0x6e   : > { %680 = vmatmul.mubr.bf16.gmra.mrb[20].mxu0 %v1463_v39  ;;  %784 = vmatmul.mubr.bf16.gmra.mrb[20].mxu1 %v1466_v40 }
  0x6f   : > { %687 = vmatprep.mubr.bf16.mxu0 %v1467_v41  ;;  %791 = vmatprep.mubr.bf16.mxu1 %v1470_v42 }
  0x76   : > { %688 = vmatmul.mubr.bf16.gmra.mrb[24].mxu0 %v1469_v43  ;;  %792 = vmatmul.mubr.bf16.gmra.mrb[24].mxu1 %v1472_v44 }
  0x77   : > { %695 = vmatprep.mubr.bf16.mxu0 %v1473_v45  ;;  %799 = vmatprep.mubr.bf16.mxu1 %v1476_v46 }
  0x7e   : > { %696 = vmatmul.mubr.bf16.gmra.mrb[28].mxu0 %v1475_v47  ;;  %800 = vmatmul.mubr.bf16.gmra.mrb[28].mxu1 %v1478_v48 }
  0x7f   : > { %703 = vmatprep.mubr.bf16.mxu0 %v1479_v49  ;;  %807 = vmatprep.mubr.bf16.mxu1 %v1482_v50 }
  0x86   : > { %704 = vmatmul.mubr.bf16.gmra.mrb[32].mxu0 %v1481_v51  ;;  %808 = vmatmul.mubr.bf16.gmra.mrb[32].mxu1 %v1484_v52 }
  0x87   : > { %711 = vmatprep.mubr.bf16.mxu0 %v1485_v53  ;;  %815 = vmatprep.mubr.bf16.mxu1 %v1488_v54 }
  0x8e   : > { %712 = vmatmul.mubr.bf16.gmra.mrb[36].mxu0 %v1487_v55  ;;  %816 = vmatmul.mubr.bf16.gmra.mrb[36].mxu1 %v1490_v56 }
  0x8f   : > { %719 = vmatprep.mubr.bf16.mxu0 %v1491_v57  ;;  %823 = vmatprep.mubr.bf16.mxu1 %v1494_v58 }
  0x96   : > { %720 = vmatmul.mubr.bf16.gmra.mrb[40].mxu0 %v1493_v59  ;;  %824 = vmatmul.mubr.bf16.gmra.mrb[40].mxu1 %v1496_v60 }
  0x97   : > { %727 = vmatprep.mubr.bf16.mxu0 %v1497_v61  ;;  %831 = vmatprep.mubr.bf16.mxu1 %v1500_v62 }
  0x9e   : > { %728 = vmatmul.mubr.bf16.gmra.mrb[44].mxu0 %v1499_v63  ;;  %832 = vmatmul.mubr.bf16.gmra.mrb[44].mxu1 %v1502_v0 }
  0x9f   : > { %735 = vmatprep.mubr.bf16.mxu0 %v1503_v1 }
  0xa6   : > { %736 = vmatmul.mubr.bf16.gmra.mrb[48].mxu0 %v1505_v2 }
 0x119   : > { %v641_v4 = vpop.f32.mrb[0].mxu0  ;;  %v745_v5 = vpop.f32.mrb[0].mxu1 }
 0x11a   : > { %v642_v6 = vadd.f32 %v1684_v3, %v641_v4  ;;  %v643_v7 = vpop.f32.mrb[1].mxu0  ;;  %v746_v8 = vadd.f32 %v1684_v3, %v745_v5  ;;  %v747_v9 = vpop.f32.mrb[1].mxu1 }
 0x11b   : > { %v644_v10 = vpop.f32.mrb[2].mxu0  ;;  %v748_v11 = vpop.f32.mrb[2].mxu1 }
 0x11c   : > { %v840_v12 = vmax.f32 %v642_v6, 0.0  ;;  %v645_v13 = vadd.f32 %v1684_v3, %v644_v10  ;;  %v646_v14 = vpop.f32.mrb[3].mxu0  ;;  %v866_v15 = vmax.f32 %v746_v8, 0.0  ;;  %v749_v16 = vadd.f32 %v1684_v3, %v748_v11  ;;  %v750_v17 = vpop.f32.mrb[3].mxu1 }
 0x11e   : > { %v1322_v18 = vpack.c.bf16 %v840_v12, %v840_v12  ;;  %v841_v19 = vmax.f32 %v645_v13, 0.0  ;;  %v1348_v20 = vpack.c.bf16 %v866_v15, %v866_v15  ;;  %v867_v21 = vmax.f32 %v749_v16, 0.0 }
 0x120   : > { %1091 = vst.msk [vmem:[%s1694_s29] sm:$0xf] %vm1090_vm0, %v1322_v18  ;;  %v1323_v22 = vpack.c.bf16 %v841_v19, %v841_v19  ;;  %1117 = vst.msk [vmem:[%s1694_s29 + $0x68] sm:$0xf] %vm1090_vm0, %v1348_v20  ;;  %v1349_v23 = vpack.c.bf16 %v867_v21, %v867_v21 }
 0x121   : > { %v649_v24 = vpop.f32.mrb[4].mxu0  ;;  %v753_v25 = vpop.f32.mrb[4].mxu1 }
 0x122   : > { %1092 = vst.msk [vmem:[%s1694_s29 + $0x4] sm:$0xf] %vm1090_vm0, %v1323_v22  ;;  %1118 = vst.msk [vmem:[%s1694_s29 + $0x6c] sm:$0xf] %vm1090_vm0, %v1349_v23  ;;  %v650_v26 = vadd.f32 %v1684_v3, %v649_v24  ;;  %v651_v27 = vpop.f32.mrb[5].mxu0  ;;  %v754_v28 = vadd.f32 %v1684_v3, %v753_v25  ;;  %v755_v29 = vpop.f32.mrb[5].mxu1 }
 0x123   : > { %v652_v30 = vpop.f32.mrb[6].mxu0  ;;  %v756_v31 = vpop.f32.mrb[6].mxu1 }
 0x124   : > { %v842_v32 = vmax.f32 %v650_v26, 0.0  ;;  %v653_v33 = vadd.f32 %v1684_v3, %v652_v30  ;;  %v654_v34 = vpop.f32.mrb[7].mxu0  ;;  %v868_v35 = vmax.f32 %v754_v28, 0.0  ;;  %v757_v36 = vadd.f32 %v1684_v3, %v756_v31  ;;  %v758_v37 = vpop.f32.mrb[7].mxu1 }
 0x126   : > { %v1324_v38 = vpack.c.bf16 %v842_v32, %v842_v32  ;;  %v843_v39 = vmax.f32 %v653_v33, 0.0  ;;  %v1350_v40 = vpack.c.bf16 %v868_v35, %v868_v35  ;;  %v869_v41 = vmax.f32 %v757_v36, 0.0 }
 0x128   : > { %1093 = vst.msk [vmem:[%s1694_s29 + $0x8] sm:$0xf] %vm1090_vm0, %v1324_v38  ;;  %v1325_v42 = vpack.c.bf16 %v843_v39, %v843_v39  ;;  %1119 = vst.msk [vmem:[%s1694_s29 + $0x70] sm:$0xf] %vm1090_vm0, %v1350_v40  ;;  %v1351_v43 = vpack.c.bf16 %v869_v41, %v869_v41 }
 0x129   : > { %v657_v44 = vpop.f32.mrb[8].mxu0  ;;  %v761_v45 = vpop.f32.mrb[8].mxu1 }
 0x12a   : > { %1094 = vst.msk [vmem:[%s1694_s29 + $0xc] sm:$0xf] %vm1090_vm0, %v1325_v42  ;;  %1120 = vst.msk [vmem:[%s1694_s29 + $0x74] sm:$0xf] %vm1090_vm0, %v1351_v43  ;;  %v658_v46 = vadd.f32 %v1684_v3, %v657_v44  ;;  %v659_v47 = vpop.f32.mrb[9].mxu0  ;;  %v762_v48 = vadd.f32 %v1684_v3, %v761_v45  ;;  %v763_v49 = vpop.f32.mrb[9].mxu1 }
 0x12b   : > { %v660_v50 = vpop.f32.mrb[10].mxu0  ;;  %v764_v51 = vpop.f32.mrb[10].mxu1 }
 0x12c   : > { %v844_v52 = vmax.f32 %v658_v46, 0.0  ;;  %v661_v53 = vadd.f32 %v1684_v3, %v660_v50  ;;  %v662_v54 = vpop.f32.mrb[11].mxu0  ;;  %v870_v55 = vmax.f32 %v762_v48, 0.0  ;;  %v765_v56 = vadd.f32 %v1684_v3, %v764_v51  ;;  %v766_v57 = vpop.f32.mrb[11].mxu1 }
 0x12e   : > { %v1326_v58 = vpack.c.bf16 %v844_v52, %v844_v52  ;;  %v845_v59 = vmax.f32 %v661_v53, 0.0  ;;  %v1352_v60 = vpack.c.bf16 %v870_v55, %v870_v55  ;;  %v871_v61 = vmax.f32 %v765_v56, 0.0 }
 0x130   : > { %1095 = vst.msk [vmem:[%s1694_s29 + $0x10] sm:$0xf] %vm1090_vm0, %v1326_v58  ;;  %v1327_v62 = vpack.c.bf16 %v845_v59, %v845_v59  ;;  %1121 = vst.msk [vmem:[%s1694_s29 + $0x78] sm:$0xf] %vm1090_vm0, %v1352_v60  ;;  %v1353_v63 = vpack.c.bf16 %v871_v61, %v871_v61 }
 0x131   : > { %v665_v0 = vpop.f32.mrb[12].mxu0  ;;  %v769_v1 = vpop.f32.mrb[12].mxu1 }
 0x132   : > { %1096 = vst.msk [vmem:[%s1694_s29 + $0x14] sm:$0xf] %vm1090_vm0, %v1327_v62  ;;  %1122 = vst.msk [vmem:[%s1694_s29 + $0x7c] sm:$0xf] %vm1090_vm0, %v1353_v63  ;;  %v666_v2 = vadd.f32 %v1684_v3, %v665_v0  ;;  %v667_v4 = vpop.f32.mrb[13].mxu0  ;;  %v770_v5 = vadd.f32 %v1684_v3, %v769_v1  ;;  %v771_v6 = vpop.f32.mrb[13].mxu1 }
 0x133   : > { %v668_v7 = vpop.f32.mrb[14].mxu0  ;;  %v772_v8 = vpop.f32.mrb[14].mxu1 }
 0x134   : > { %v846_v9 = vmax.f32 %v666_v2, 0.0  ;;  %v669_v10 = vadd.f32 %v1684_v3, %v668_v7  ;;  %v670_v11 = vpop.f32.mrb[15].mxu0  ;;  %v872_v12 = vmax.f32 %v770_v5, 0.0  ;;  %v773_v13 = vadd.f32 %v1684_v3, %v772_v8  ;;  %v774_v14 = vpop.f32.mrb[15].mxu1 }
 0x136   : > { %v1328_v15 = vpack.c.bf16 %v846_v9, %v846_v9  ;;  %v847_v16 = vmax.f32 %v669_v10, 0.0  ;;  %v1354_v17 = vpack.c.bf16 %v872_v12, %v872_v12  ;;  %v873_v18 = vmax.f32 %v773_v13, 0.0 }
 0x138   : > { %1097 = vst.msk [vmem:[%s1694_s29 + $0x18] sm:$0xf] %vm1090_vm0, %v1328_v15  ;;  %v1329_v19 = vpack.c.bf16 %v847_v16, %v847_v16  ;;  %1123 = vst.msk [vmem:[%s1694_s29 + $0x80] sm:$0xf] %vm1090_vm0, %v1354_v17  ;;  %v1355_v20 = vpack.c.bf16 %v873_v18, %v873_v18 }
 0x139   : > { %v673_v21 = vpop.f32.mrb[16].mxu0  ;;  %v777_v22 = vpop.f32.mrb[16].mxu1 }
 0x13a   : > { %1098 = vst.msk [vmem:[%s1694_s29 + $0x1c] sm:$0xf] %vm1090_vm0, %v1329_v19  ;;  %1124 = vst.msk [vmem:[%s1694_s29 + $0x84] sm:$0xf] %vm1090_vm0, %v1355_v20  ;;  %v674_v23 = vadd.f32 %v1684_v3, %v673_v21  ;;  %v675_v24 = vpop.f32.mrb[17].mxu0  ;;  %v778_v25 = vadd.f32 %v1684_v3, %v777_v22  ;;  %v779_v26 = vpop.f32.mrb[17].mxu1 }
 0x13b   : > { %v676_v27 = vpop.f32.mrb[18].mxu0  ;;  %v780_v28 = vpop.f32.mrb[18].mxu1 }
 0x13c   : > { %v848_v29 = vmax.f32 %v674_v23, 0.0  ;;  %v677_v30 = vadd.f32 %v1684_v3, %v676_v27  ;;  %v678_v31 = vpop.f32.mrb[19].mxu0  ;;  %v874_v32 = vmax.f32 %v778_v25, 0.0  ;;  %v781_v33 = vadd.f32 %v1684_v3, %v780_v28  ;;  %v782_v34 = vpop.f32.mrb[19].mxu1 }
 0x13e   : > { %v1330_v35 = vpack.c.bf16 %v848_v29, %v848_v29  ;;  %v849_v36 = vmax.f32 %v677_v30, 0.0  ;;  %v1356_v37 = vpack.c.bf16 %v874_v32, %v874_v32  ;;  %v875_v38 = vmax.f32 %v781_v33, 0.0 }
 0x140   : > { %1099 = vst.msk [vmem:[%s1694_s29 + $0x20] sm:$0xf] %vm1090_vm0, %v1330_v35  ;;  %v1331_v39 = vpack.c.bf16 %v849_v36, %v849_v36  ;;  %1125 = vst.msk [vmem:[%s1694_s29 + $0x88] sm:$0xf] %vm1090_vm0, %v1356_v37  ;;  %v1357_v40 = vpack.c.bf16 %v875_v38, %v875_v38 }
 0x141   : > { %v681_v41 = vpop.f32.mrb[20].mxu0  ;;  %v785_v42 = vpop.f32.mrb[20].mxu1 }
 0x142   : > { %1100 = vst.msk [vmem:[%s1694_s29 + $0x24] sm:$0xf] %vm1090_vm0, %v1331_v39  ;;  %1126 = vst.msk [vmem:[%s1694_s29 + $0x8c] sm:$0xf] %vm1090_vm0, %v1357_v40  ;;  %v682_v43 = vadd.f32 %v1684_v3, %v681_v41  ;;  %v683_v44 = vpop.f32.mrb[21].mxu0  ;;  %v786_v45 = vadd.f32 %v1684_v3, %v785_v42  ;;  %v787_v46 = vpop.f32.mrb[21].mxu1 }
 0x143   : > { %v684_v47 = vpop.f32.mrb[22].mxu0  ;;  %v788_v48 = vpop.f32.mrb[22].mxu1 }
 0x144   : > { %v850_v49 = vmax.f32 %v682_v43, 0.0  ;;  %v685_v50 = vadd.f32 %v1684_v3, %v684_v47  ;;  %v686_v51 = vpop.f32.mrb[23].mxu0  ;;  %v876_v52 = vmax.f32 %v786_v45, 0.0  ;;  %v789_v53 = vadd.f32 %v1684_v3, %v788_v48  ;;  %v790_v54 = vpop.f32.mrb[23].mxu1 }
 0x146   : > { %v1332_v55 = vpack.c.bf16 %v850_v49, %v850_v49  ;;  %v851_v56 = vmax.f32 %v685_v50, 0.0  ;;  %v1358_v57 = vpack.c.bf16 %v876_v52, %v876_v52  ;;  %v877_v58 = vmax.f32 %v789_v53, 0.0 }
 0x148   : > { %1101 = vst.msk [vmem:[%s1694_s29 + $0x28] sm:$0xf] %vm1090_vm0, %v1332_v55  ;;  %v1333_v59 = vpack.c.bf16 %v851_v56, %v851_v56  ;;  %1127 = vst.msk [vmem:[%s1694_s29 + $0x90] sm:$0xf] %vm1090_vm0, %v1358_v57  ;;  %v1359_v60 = vpack.c.bf16 %v877_v58, %v877_v58 }
 0x149   : > { %v689_v61 = vpop.f32.mrb[24].mxu0  ;;  %v793_v62 = vpop.f32.mrb[24].mxu1 }
 0x14a   : > { %1102 = vst.msk [vmem:[%s1694_s29 + $0x2c] sm:$0xf] %vm1090_vm0, %v1333_v59  ;;  %1128 = vst.msk [vmem:[%s1694_s29 + $0x94] sm:$0xf] %vm1090_vm0, %v1359_v60  ;;  %v690_v63 = vadd.f32 %v1684_v3, %v689_v61  ;;  %v691_v0 = vpop.f32.mrb[25].mxu0  ;;  %v794_v1 = vadd.f32 %v1684_v3, %v793_v62  ;;  %v795_v2 = vpop.f32.mrb[25].mxu1 }
 0x14b   : > { %v692_v4 = vpop.f32.mrb[26].mxu0  ;;  %v796_v5 = vpop.f32.mrb[26].mxu1 }
 0x14c   : > { %v852_v6 = vmax.f32 %v690_v63, 0.0  ;;  %v693_v7 = vadd.f32 %v1684_v3, %v692_v4  ;;  %v694_v8 = vpop.f32.mrb[27].mxu0  ;;  %v878_v9 = vmax.f32 %v794_v1, 0.0  ;;  %v797_v10 = vadd.f32 %v1684_v3, %v796_v5  ;;  %v798_v11 = vpop.f32.mrb[27].mxu1 }
 0x14e   : > { %v1334_v12 = vpack.c.bf16 %v852_v6, %v852_v6  ;;  %v853_v13 = vmax.f32 %v693_v7, 0.0  ;;  %v1360_v14 = vpack.c.bf16 %v878_v9, %v878_v9  ;;  %v879_v15 = vmax.f32 %v797_v10, 0.0 }
 0x150   : > { %1103 = vst.msk [vmem:[%s1694_s29 + $0x30] sm:$0xf] %vm1090_vm0, %v1334_v12  ;;  %v1335_v16 = vpack.c.bf16 %v853_v13, %v853_v13  ;;  %1129 = vst.msk [vmem:[%s1694_s29 + $0x98] sm:$0xf] %vm1090_vm0, %v1360_v14  ;;  %v1361_v17 = vpack.c.bf16 %v879_v15, %v879_v15 }
 0x151   : > { %v697_v18 = vpop.f32.mrb[28].mxu0  ;;  %v801_v19 = vpop.f32.mrb[28].mxu1 }
 0x152   : > { %1104 = vst.msk [vmem:[%s1694_s29 + $0x34] sm:$0xf] %vm1090_vm0, %v1335_v16  ;;  %1130 = vst.msk [vmem:[%s1694_s29 + $0x9c] sm:$0xf] %vm1090_vm0, %v1361_v17  ;;  %v698_v20 = vadd.f32 %v1684_v3, %v697_v18  ;;  %v699_v21 = vpop.f32.mrb[29].mxu0  ;;  %v802_v22 = vadd.f32 %v1684_v3, %v801_v19  ;;  %v803_v23 = vpop.f32.mrb[29].mxu1 }
 0x153   : > { %v700_v24 = vpop.f32.mrb[30].mxu0  ;;  %v804_v25 = vpop.f32.mrb[30].mxu1 }
 0x154   : > { %v854_v26 = vmax.f32 %v698_v20, 0.0  ;;  %v701_v27 = vadd.f32 %v1684_v3, %v700_v24  ;;  %v702_v28 = vpop.f32.mrb[31].mxu0  ;;  %v880_v29 = vmax.f32 %v802_v22, 0.0  ;;  %v805_v30 = vadd.f32 %v1684_v3, %v804_v25  ;;  %v806_v31 = vpop.f32.mrb[31].mxu1 }
 0x156   : > { %v1336_v32 = vpack.c.bf16 %v854_v26, %v854_v26  ;;  %v855_v33 = vmax.f32 %v701_v27, 0.0  ;;  %v1362_v34 = vpack.c.bf16 %v880_v29, %v880_v29  ;;  %v881_v35 = vmax.f32 %v805_v30, 0.0 }
 0x158   : > { %1105 = vst.msk [vmem:[%s1694_s29 + $0x38] sm:$0xf] %vm1090_vm0, %v1336_v32  ;;  %v1337_v36 = vpack.c.bf16 %v855_v33, %v855_v33  ;;  %1131 = vst.msk [vmem:[%s1694_s29 + $0xa0] sm:$0xf] %vm1090_vm0, %v1362_v34  ;;  %v1363_v37 = vpack.c.bf16 %v881_v35, %v881_v35 }
 0x159   : > { %v705_v38 = vpop.f32.mrb[32].mxu0  ;;  %v809_v39 = vpop.f32.mrb[32].mxu1 }
 0x15a   : > { %1106 = vst.msk [vmem:[%s1694_s29 + $0x3c] sm:$0xf] %vm1090_vm0, %v1337_v36  ;;  %1132 = vst.msk [vmem:[%s1694_s29 + $0xa4] sm:$0xf] %vm1090_vm0, %v1363_v37  ;;  %v706_v40 = vadd.f32 %v1684_v3, %v705_v38  ;;  %v707_v41 = vpop.f32.mrb[33].mxu0  ;;  %v810_v42 = vadd.f32 %v1684_v3, %v809_v39  ;;  %v811_v43 = vpop.f32.mrb[33].mxu1 }
 0x15b   : > { %v708_v44 = vpop.f32.mrb[34].mxu0  ;;  %v812_v45 = vpop.f32.mrb[34].mxu1 }
 0x15c   : > { %v856_v46 = vmax.f32 %v706_v40, 0.0  ;;  %v709_v47 = vadd.f32 %v1684_v3, %v708_v44  ;;  %v710_v48 = vpop.f32.mrb[35].mxu0  ;;  %v882_v49 = vmax.f32 %v810_v42, 0.0  ;;  %v813_v50 = vadd.f32 %v1684_v3, %v812_v45  ;;  %v814_v51 = vpop.f32.mrb[35].mxu1 }
 0x15e   : > { %v1338_v52 = vpack.c.bf16 %v856_v46, %v856_v46  ;;  %v857_v53 = vmax.f32 %v709_v47, 0.0  ;;  %v1364_v54 = vpack.c.bf16 %v882_v49, %v882_v49  ;;  %v883_v55 = vmax.f32 %v813_v50, 0.0 }
 0x160   : > { %1107 = vst.msk [vmem:[%s1694_s29 + $0x40] sm:$0xf] %vm1090_vm0, %v1338_v52  ;;  %v1339_v56 = vpack.c.bf16 %v857_v53, %v857_v53  ;;  %1133 = vst.msk [vmem:[%s1694_s29 + $0xa8] sm:$0xf] %vm1090_vm0, %v1364_v54  ;;  %v1365_v57 = vpack.c.bf16 %v883_v55, %v883_v55 }
 0x161   : > { %v713_v58 = vpop.f32.mrb[36].mxu0  ;;  %v817_v59 = vpop.f32.mrb[36].mxu1 }
 0x162   : > { %1108 = vst.msk [vmem:[%s1694_s29 + $0x44] sm:$0xf] %vm1090_vm0, %v1339_v56  ;;  %1134 = vst.msk [vmem:[%s1694_s29 + $0xac] sm:$0xf] %vm1090_vm0, %v1365_v57  ;;  %v714_v60 = vadd.f32 %v1684_v3, %v713_v58  ;;  %v715_v61 = vpop.f32.mrb[37].mxu0  ;;  %v818_v62 = vadd.f32 %v1684_v3, %v817_v59  ;;  %v819_v63 = vpop.f32.mrb[37].mxu1 }
 0x163   : > { %v716_v0 = vpop.f32.mrb[38].mxu0  ;;  %v820_v1 = vpop.f32.mrb[38].mxu1 }
 0x164   : > { %v858_v2 = vmax.f32 %v714_v60, 0.0  ;;  %v717_v4 = vadd.f32 %v1684_v3, %v716_v0  ;;  %v718_v5 = vpop.f32.mrb[39].mxu0  ;;  %v884_v6 = vmax.f32 %v818_v62, 0.0  ;;  %v821_v7 = vadd.f32 %v1684_v3, %v820_v1  ;;  %v822_v8 = vpop.f32.mrb[39].mxu1 }
 0x166   : > { %v1340_v9 = vpack.c.bf16 %v858_v2, %v858_v2  ;;  %v859_v10 = vmax.f32 %v717_v4, 0.0  ;;  %v1366_v11 = vpack.c.bf16 %v884_v6, %v884_v6  ;;  %v885_v12 = vmax.f32 %v821_v7, 0.0 }
 0x168   : > { %1109 = vst.msk [vmem:[%s1694_s29 + $0x48] sm:$0xf] %vm1090_vm0, %v1340_v9  ;;  %v1341_v13 = vpack.c.bf16 %v859_v10, %v859_v10  ;;  %1135 = vst.msk [vmem:[%s1694_s29 + $0xb0] sm:$0xf] %vm1090_vm0, %v1366_v11  ;;  %v1367_v14 = vpack.c.bf16 %v885_v12, %v885_v12 }
 0x169   : > { %v721_v15 = vpop.f32.mrb[40].mxu0  ;;  %v825_v16 = vpop.f32.mrb[40].mxu1 }
 0x16a   : > { %1110 = vst.msk [vmem:[%s1694_s29 + $0x4c] sm:$0xf] %vm1090_vm0, %v1341_v13  ;;  %1136 = vst.msk [vmem:[%s1694_s29 + $0xb4] sm:$0xf] %vm1090_vm0, %v1367_v14  ;;  %v722_v17 = vadd.f32 %v1684_v3, %v721_v15  ;;  %v723_v18 = vpop.f32.mrb[41].mxu0  ;;  %v826_v19 = vadd.f32 %v1684_v3, %v825_v16  ;;  %v827_v20 = vpop.f32.mrb[41].mxu1 }
 0x16b   : > { %v724_v21 = vpop.f32.mrb[42].mxu0  ;;  %v828_v22 = vpop.f32.mrb[42].mxu1 }
 0x16c   : > { %v860_v23 = vmax.f32 %v722_v17, 0.0  ;;  %v725_v24 = vadd.f32 %v1684_v3, %v724_v21  ;;  %v726_v25 = vpop.f32.mrb[43].mxu0  ;;  %v886_v26 = vmax.f32 %v826_v19, 0.0  ;;  %v829_v27 = vadd.f32 %v1684_v3, %v828_v22  ;;  %v830_v28 = vpop.f32.mrb[43].mxu1 }
 0x16e   : > { %v1342_v29 = vpack.c.bf16 %v860_v23, %v860_v23  ;;  %v861_v30 = vmax.f32 %v725_v24, 0.0  ;;  %v1368_v31 = vpack.c.bf16 %v886_v26, %v886_v26  ;;  %v887_v32 = vmax.f32 %v829_v27, 0.0 }
 0x170   : > { %1111 = vst.msk [vmem:[%s1694_s29 + $0x50] sm:$0xf] %vm1090_vm0, %v1342_v29  ;;  %v1343_v33 = vpack.c.bf16 %v861_v30, %v861_v30  ;;  %1137 = vst.msk [vmem:[%s1694_s29 + $0xb8] sm:$0xf] %vm1090_vm0, %v1368_v31  ;;  %v1369_v34 = vpack.c.bf16 %v887_v32, %v887_v32 }
 0x171   : > { %v729_v35 = vpop.f32.mrb[44].mxu0  ;;  %v833_v36 = vpop.f32.mrb[44].mxu1 }
 0x172   : > { %1112 = vst.msk [vmem:[%s1694_s29 + $0x54] sm:$0xf] %vm1090_vm0, %v1343_v33  ;;  %1138 = vst.msk [vmem:[%s1694_s29 + $0xbc] sm:$0xf] %vm1090_vm0, %v1369_v34  ;;  %v730_v37 = vadd.f32 %v1684_v3, %v729_v35  ;;  %v731_v38 = vpop.f32.mrb[45].mxu0  ;;  %v834_v39 = vadd.f32 %v1684_v3, %v833_v36  ;;  %v835_v40 = vpop.f32.mrb[45].mxu1 }
 0x173   : > { %v732_v41 = vpop.f32.mrb[46].mxu0  ;;  %v836_v42 = vpop.f32.mrb[46].mxu1 }
 0x174   : > { %v862_v43 = vmax.f32 %v730_v37, 0.0  ;;  %v733_v44 = vadd.f32 %v1684_v3, %v732_v41  ;;  %v734_v45 = vpop.f32.mrb[47].mxu0  ;;  %v888_v46 = vmax.f32 %v834_v39, 0.0  ;;  %v837_v47 = vadd.f32 %v1684_v3, %v836_v42  ;;  %v838_v48 = vpop.f32.mrb[47].mxu1 }
 0x176   : > { %v1344_v49 = vpack.c.bf16 %v862_v43, %v862_v43  ;;  %v863_v50 = vmax.f32 %v733_v44, 0.0  ;;  %v1370_v51 = vpack.c.bf16 %v888_v46, %v888_v46  ;;  %v889_v52 = vmax.f32 %v837_v47, 0.0 }
 0x178   : > { %1113 = vst.msk [vmem:[%s1694_s29 + $0x58] sm:$0xf] %vm1090_vm0, %v1344_v49  ;;  %v1345_v53 = vpack.c.bf16 %v863_v50, %v863_v50  ;;  %1139 = vst.msk [vmem:[%s1694_s29 + $0xc0] sm:$0xf] %vm1090_vm0, %v1370_v51  ;;  %v1371_v54 = vpack.c.bf16 %v889_v52, %v889_v52 }
 0x179   : > { %v737_v55 = vpop.f32.mrb[48].mxu0 }
 0x17a   : > { %1114 = vst.msk [vmem:[%s1694_s29 + $0x5c] sm:$0xf] %vm1090_vm0, %v1345_v53  ;;  %1140 = vst.msk [vmem:[%s1694_s29 + $0xc4] sm:$0xf] %vm1090_vm0, %v1371_v54  ;;  %v738_v56 = vadd.f32 %v1684_v3, %v737_v55  ;;  %v739_v57 = vpop.f32.mrb[49].mxu0 }
 0x17b   : > { %v740_v58 = vpop.f32.mrb[50].mxu0 }
 0x17c   : > { %v864_v59 = vmax.f32 %v738_v56, 0.0  ;;  %v741_v60 = vadd.f32 %v1684_v3, %v740_v58  ;;  %v742_v61 = vpop.f32.mrb[51].mxu0 }
 0x17e   : > { %v1346_v62 = vpack.c.bf16 %v864_v59, %v864_v59  ;;  %v865_v63 = vmax.f32 %v741_v60, 0.0 }
 0x180   : > { %1115 = vst.msk [vmem:[%s1694_s29 + $0x60] sm:$0xf] %vm1090_vm0, %v1346_v62  ;;  %v1347_v0 = vpack.c.bf16 %v865_v63, %v865_v63 }
 0x182   : > { %1116 = vst.msk [vmem:[%s1694_s29 + $0x64] sm:$0xf] %vm1090_vm0, %v1347_v0 }
 0x183 PF: > { %s13_s12 = sadd.s32 1, %s1512_s12  }
 0x184   : > { %p10_p4 = scmp.ge.s32.totalorder %s13_s12, 4  }
 0x186   :  { %12 = sbr.rel (!%p10_p4) target bundleno = 1 (0x1), region = 62 }

// kernel: value_network_forward.5
= control target key start
LH: loop header
LB: loop body
LE: loop exit
PB: predicated region body
PF: predicated region fallthrough
CT: control target
= control target key end

     0   :  { %s568_s6 = smov 0   ;;  %s960_s0 = inlined_call_operand.vmem [shape: bf16[2,11,2,11,64], index: 0, kind: input, shape index: {}]   ;;  %s961_s1 = inlined_call_operand.vmem [shape: bf16[2,11,11,32], index: 1, kind: output, shape index: {}]  }
   0x1 LB: > { %s507_s7 = sadd.s32 4294967295, %s555_s6   ;;  %p511_p0 = scmp.ge.s32.totalorder %s555_s6, 1  ;;  %s555_s6 = sphi %s568_s6, %s11_s6  }
   0x2   : > { %p87_p1 = scmp.lt.s32.totalorder %s555_s6, 3 }
   0x4   : > { %p88_p2 = pnand %p511_p0, %p87_p1 }
   0x6   : > { %91 = sbr.rel (%p88_p2) target bundleno = 224 (0xe0), region = 24 }
   0xd   : > { %p107_p3 = scmp.lt.s32.totalorder %s507_s7, 1  ;;  %s557_s12 = smov 96   ;;  %vm406_vm0 = vcmask 254976   ;;  %vm407_vm1 = vsmask.f32 1280  ;;  %vm404_vm3 = vcmask 257024  }
   0xe   : > { %vm836_vm2 = vmand %vm406_vm0, %vm407_vm1 }
   0xf   : > { %s992_s7 = smov (!%p107_p3, %s507_s7), 1 }
  0x10   : > { %s538_s8 = smul.u32 176, %s992_s7 }
  0x11   : > { %s539_s13 = smul.u32 88, %s992_s7 }
  0x12   : > { %s582_s11 = scalar_lea.vmem %s960_s0, %s538_s8 }
  0x13   : > { %v585_v0 = vld [vmem:[%s582_s11 + $0x10] sm:$0xf]  ;;  %v588_v1 = vld [vmem:[%s582_s11] sm:$0xf]  ;;  %v595_v2 = vld [vmem:[%s582_s11 + $0x14] sm:$0x3]  ;;  %s830_s16 = scalar_lea.vmem %s961_s1, %s539_s13 }
  0x14   : > { %165 = vrot.lane.b32.xlu1 %v585_v0, %s557_s12  ;;  %161 = vrot.lane.b32.xlu0 %v588_v1, %s557_s12  ;;  %v598_v3 = vld [vmem:[%s582_s11 + $0x4] sm:$0x3]  ;;  %v608_v5 = vld [vmem:[%s582_s11 + $0x20] sm:$0xf] }
  0x15   : > { %v605_v4 = vld [vmem:[%s582_s11 + $0x24] sm:$0x3]  ;;  %v615_v6 = vld [vmem:[%s582_s11 + $0x34] sm:$0x3]  ;;  %v618_v7 = vld [vmem:[%s582_s11 + $0x30] sm:$0xf] }
  0x16   : > { %v625_v8 = vld [vmem:[%s582_s11 + $0x44] sm:$0x3]  ;;  %v628_v9 = vld [vmem:[%s582_s11 + $0x40] sm:$0xf]  ;;  %v635_v10 = vld [vmem:[%s582_s11 + $0x54] sm:$0x3] }
  0x17   : > { %v638_v11 = vld [vmem:[%s582_s11 + $0x50] sm:$0xf]  ;;  %v645_v12 = vld [vmem:[%s582_s11 + $0x64] sm:$0x3]  ;;  %v648_v13 = vld [vmem:[%s582_s11 + $0x60] sm:$0xf] }
  0x18   : > { %167 = vrot.lane.b32.xlu1 %v595_v2, %s557_s12  ;;  %163 = vrot.lane.b32.xlu0 %v598_v3, %s557_s12  ;;  %v655_v14 = vld [vmem:[%s582_s11 + $0x84] sm:$0x3]  ;;  %v658_v15 = vld [vmem:[%s582_s11 + $0x74] sm:$0x3] }
  0x19   : > { %v665_v16 = vld [vmem:[%s582_s11 + $0xa4] sm:$0x3]  ;;  %v668_v17 = vld [vmem:[%s582_s11 + $0x94] sm:$0x3]  ;;  %v675_v18 = vld [vmem:[%s582_s11 + $0x1c] sm:$0x3] }
  0x1a   : > { %v678_v19 = vld [vmem:[%s582_s11 + $0xc] sm:$0x3]  ;;  %v685_v20 = vld [vmem:[%s582_s11 + $0x3c] sm:$0x3]  ;;  %v725_v28 = vld [vmem:[%s582_s11 + $0x70] sm:$0xf] }
  0x1b   : > { %v688_v21 = vld [vmem:[%s582_s11 + $0x2c] sm:$0x3]  ;;  %v695_v22 = vld [vmem:[%s582_s11 + $0x5c] sm:$0x3]  ;;  %971 = vst [vmem:[#allocation2_spill] sm:$0xff] %v725_v28 }
  0x1c   : > { %171 = vrot.lane.b32.xlu1 %v605_v4, %s557_s12  ;;  %169 = vrot.lane.b32.xlu0 %v608_v5, %s557_s12  ;;  %v698_v23 = vld [vmem:[%s582_s11 + $0x4c] sm:$0x3]  ;;  %v705_v24 = vld [vmem:[%s582_s11 + $0x7c] sm:$0x3] }
  0x1d   : > { %v708_v25 = vld [vmem:[%s582_s11 + $0x6c] sm:$0x3]  ;;  %v715_v26 = vld [vmem:[%s582_s11 + $0x9c] sm:$0x3]  ;;  %v735_v30 = vld [vmem:[%s582_s11 + $0x90] sm:$0xf] }
  0x1e   : > { %v718_v27 = vld [vmem:[%s582_s11 + $0x8c] sm:$0x3]  ;;  %972 = vst [vmem:[#allocation3_spill] sm:$0xff] %v735_v30  ;;  %v738_v31 = vld [vmem:[%s582_s11 + $0x80] sm:$0xf] }
  0x1f   : > { %v728_v29 = vld [vmem:[%s582_s11 + $0xac] sm:$0x3]  ;;  %973 = vst [vmem:[#allocation4_spill] sm:$0xff] %v738_v31  ;;  %v745_v32 = vld [vmem:[%s582_s11 + $0x8] sm:$0xf] }
  0x20   : > { %175 = vrot.lane.b32.xlu1 %v615_v6, %s557_s12  ;;  %173 = vrot.lane.b32.xlu0 %v618_v7, %s557_s12  ;;  %v748_v33 = vld [vmem:[%s582_s11 + $0xa0] sm:$0xf]  ;;  %v755_v34 = vld [vmem:[%s582_s11 + $0x28] sm:$0xf] }
  0x21   : > { %974 = vst [vmem:[#allocation5_spill] sm:$0xff] %v748_v33  ;;  %v758_v35 = vld [vmem:[%s582_s11 + $0x18] sm:$0xf]  ;;  %v765_v36 = vld [vmem:[%s582_s11 + $0x48] sm:$0xf] }
  0x22   : > { %v768_v37 = vld [vmem:[%s582_s11 + $0x38] sm:$0xf]  ;;  %v775_v38 = vld [vmem:[%s582_s11 + $0x68] sm:$0xf] }
  0x23   : > { %v778_v39 = vld [vmem:[%s582_s11 + $0x58] sm:$0xf]  ;;  %v785_v40 = vld [vmem:[%s582_s11 + $0x88] sm:$0xf] }
  0x24   : > { %179 = vrot.lane.b32.xlu1 %v625_v8, %s557_s12  ;;  %177 = vrot.lane.b32.xlu0 %v628_v9, %s557_s12  ;;  %975 = vst [vmem:[#allocation6_spill] sm:$0xff] %v778_v39  ;;  %976 = vst [vmem:[#allocation7_spill] sm:$0xff] %v785_v40  ;;  %v788_v41 = vld [vmem:[%s582_s11 + $0x78] sm:$0xf]  ;;  %v795_v42 = vld [vmem:[%s582_s11 + $0xa8] sm:$0xf] }
  0x25   : > { %977 = vst [vmem:[#allocation8_spill] sm:$0xff] %v788_v41  ;;  %978 = vst [vmem:[#allocation9_spill] sm:$0xff] %v795_v42  ;;  %v798_v43 = vld [vmem:[%s582_s11 + $0x98] sm:$0xf] }
  0x26   : > { %979 = vst [vmem:[#allocation10_spill] sm:$0xff] %v798_v43 }
  0x28   : > { %183 = vrot.lane.b32.xlu1 %v635_v10, %s557_s12  ;;  %181 = vrot.lane.b32.xlu0 %v638_v11, %s557_s12 }
  0x2c   : > { %187 = vrot.lane.b32.xlu1 %v645_v12, %s557_s12  ;;  %185 = vrot.lane.b32.xlu0 %v648_v13, %s557_s12 }
  0x30   : > { %195 = vrot.lane.b32.xlu1 %v655_v14, %s557_s12  ;;  %191 = vrot.lane.b32.xlu0 %v658_v15, %s557_s12 }
  0x34   : > { %203 = vrot.lane.b32.xlu1 %v665_v16, %s557_s12  ;;  %199 = vrot.lane.b32.xlu0 %v668_v17, %s557_s12 }
  0x38   : > { %300 = vrot.lane.b32.xlu1 %v675_v18, %s557_s12  ;;  %296 = vrot.lane.b32.xlu0 %v678_v19, %s557_s12 }
  0x3c   : > { %308 = vrot.lane.b32.xlu1 %v685_v20, %s557_s12  ;;  %304 = vrot.lane.b32.xlu0 %v688_v21, %s557_s12 }
  0x40   : > { %316 = vrot.lane.b32.xlu1 %v695_v22, %s557_s12  ;;  %312 = vrot.lane.b32.xlu0 %v698_v23, %s557_s12 }
  0x44   : > { %324 = vrot.lane.b32.xlu1 %v705_v24, %s557_s12  ;;  %320 = vrot.lane.b32.xlu0 %v708_v25, %s557_s12 }
  0x48   : > { %332 = vrot.lane.b32.xlu1 %v715_v26, %s557_s12  ;;  %328 = vrot.lane.b32.xlu0 %v718_v27, %s557_s12 }
  0x4c   : > { %189 = vrot.lane.b32.xlu1 %v725_v28, %s557_s12  ;;  %336 = vrot.lane.b32.xlu0 %v728_v29, %s557_s12 }
  0x50   : > { %197 = vrot.lane.b32.xlu1 %v735_v30, %s557_s12  ;;  %193 = vrot.lane.b32.xlu0 %v738_v31, %s557_s12  ;;  %v409_v31 = vld [vmem:[%s830_s16 + $0x4] sm:$0x3] }
  0x54   : > { %294 = vrot.lane.b32.xlu1 %v745_v32, %s557_s12  ;;  %201 = vrot.lane.b32.xlu0 %v748_v33, %s557_s12 }
  0x58   : > { %302 = vrot.lane.b32.xlu1 %v755_v34, %s557_s12  ;;  %298 = vrot.lane.b32.xlu0 %v758_v35, %s557_s12 }
  0x5c   : > { %310 = vrot.lane.b32.xlu1 %v765_v36, %s557_s12  ;;  %306 = vrot.lane.b32.xlu0 %v768_v37, %s557_s12 }
  0x60   : > { %318 = vrot.lane.b32.xlu1 %v775_v38, %s557_s12  ;;  %314 = vrot.lane.b32.xlu0 %v778_v39, %s557_s12 }
  0x64   : > { %326 = vrot.lane.b32.xlu1 %v785_v40, %s557_s12  ;;  %322 = vrot.lane.b32.xlu0 %v788_v41, %s557_s12  ;;  %v413_v40 = vld [vmem:[%s830_s16 + $0xc] sm:$0x3] }
  0x68   : > { %334 = vrot.lane.b32.xlu1 %v795_v42, %s557_s12  ;;  %330 = vrot.lane.b32.xlu0 %v798_v43, %s557_s12 }
  0x86   : > { %v804_v44 = vpop.permute.xlu1 %165  ;;  %v806_v45 = vpop.permute.xlu0 %161 }
  0x8a   : > { %v168_v46 = vpop.permute.xlu1 %167  ;;  %v164_v47 = vpop.permute.xlu0 %163 }
  0x8b   : > { %v230_v43 = vmax.bf16 %v168_v46, %v595_v2  ;;  %v228_v42 = vmax.bf16 %v164_v47, %v598_v3 }
  0x8e   : > { %v172_v48 = vpop.permute.xlu1 %171  ;;  %v808_v49 = vpop.permute.xlu0 %169 }
  0x8f   : > { %v232_v2 = vmax.bf16 %v172_v48, %v605_v4  ;;  %v421_v4 = vld [vmem:[%s830_s16 + $0x1c] sm:$0x3]  ;;  %v231_v41 = vmax.bf16 %v808_v49, %v608_v5 }
  0x92   : > { %v176_v50 = vpop.permute.xlu1 %175  ;;  %v810_v51 = vpop.permute.xlu0 %173 }
  0x93   : > { %v234_v3 = vmax.bf16 %v176_v50, %v615_v6  ;;  %v417_v6 = vld [vmem:[%s830_s16 + $0x14] sm:$0x3] }
  0x96   : > { %v180_v52 = vpop.permute.xlu1 %179  ;;  %v812_v53 = vpop.permute.xlu0 %177 }
  0x9a   : > { %v184_v54 = vpop.permute.xlu1 %183  ;;  %v814_v55 = vpop.permute.xlu0 %181 }
  0x9e   : > { %v816_v56 = vpop.permute.xlu1 %187  ;;  %v818_v57 = vpop.permute.xlu0 %185 }
  0xa2   : > { %v820_v58 = vpop.permute.xlu1 %195  ;;  %v192_v59 = vpop.permute.xlu0 %191 }
  0xa6   : > { %v823_v60 = vpop.permute.xlu1 %203  ;;  %v825_v61 = vpop.permute.xlu0 %199 }
  0xaa   : > { %v301_v62 = vpop.permute.xlu1 %300  ;;  %v297_v63 = vpop.permute.xlu0 %296 }
  0xab   : > { %v363_v33 = vmax.bf16 %v675_v18, %v301_v62  ;;  %v361_v30 = vmax.bf16 %v678_v19, %v297_v63 }
  0xad   : > { %v385_v28 = vmax.bf16 %v363_v33, %v230_v43  ;;  %v383_v39 = vmax.bf16 %v361_v30, %v228_v42  ;;  %v236_v42 = vmax.bf16 %v180_v52, %v625_v8  ;;  %v429_v8 = vld [vmem:[%s830_s16 + $0x2c] sm:$0x3]  ;;  %v240_v52 = vmax.bf16 %v816_v56, %v645_v12  ;;  %v437_v12 = vld [vmem:[%s830_s16 + $0x3c] sm:$0x3] }
  0xae   : > { %v309_v46 = vpop.permute.xlu1 %308  ;;  %v305_v47 = vpop.permute.xlu0 %304 }
  0xaf   : > { %v414_v18 = vsel %vm836_vm2, %v385_v28, %v413_v40  ;;  %v410_v19 = vsel %vm836_vm2, %v383_v39, %v409_v31  ;;  %v367_v62 = vmax.bf16 %v685_v20, %v309_v46  ;;  %v365_v63 = vmax.bf16 %v688_v21, %v305_v47 }
  0xb0   : > { %415 = vst [vmem:[%s830_s16 + $0xc] sm:$0x3] %v414_v18  ;;  %411 = vst [vmem:[%s830_s16 + $0x4] sm:$0x3] %v410_v19  ;;  %v238_v28 = vmax.bf16 %v184_v54, %v635_v10  ;;  %v425_v10 = vld [vmem:[%s830_s16 + $0x24] sm:$0x3]  ;;  %v242_v54 = vmax.bf16 %v192_v59, %v658_v15  ;;  %v244_v18 = vmax.bf16 %v820_v58, %v655_v14 }
  0xb1   : > { %v389_v30 = vmax.bf16 %v367_v62, %v234_v3  ;;  %v387_v33 = vmax.bf16 %v365_v63, %v232_v2  ;;  %v433_v15 = vld [vmem:[%s830_s16 + $0x34] sm:$0x3]  ;;  %v246_v19 = vmax.bf16 %v825_v61, %v668_v17  ;;  %v445_v14 = vld [vmem:[%s830_s16 + $0x4c] sm:$0x3]  ;;  %v441_v58 = vld [vmem:[%s830_s16 + $0x44] sm:$0x3] }
  0xb2   : > { %v317_v40 = vpop.permute.xlu1 %316  ;;  %v313_v31 = vpop.permute.xlu0 %312 }
  0xb3   : > { %v422_v20 = vsel %vm836_vm2, %v389_v30, %v421_v4  ;;  %v418_v21 = vsel %vm836_vm2, %v387_v33, %v417_v6  ;;  %v371_v39 = vmax.bf16 %v695_v22, %v317_v40  ;;  %v369_v43 = vmax.bf16 %v698_v23, %v313_v31  ;;  %v449_v40 = vld [vmem:[%s830_s16 + $0x54] sm:$0x3] }
  0xb4   : > { %423 = vst [vmem:[%s830_s16 + $0x1c] sm:$0x3] %v422_v20  ;;  %419 = vst [vmem:[%s830_s16 + $0x14] sm:$0x3] %v418_v21 }
  0xb5   : > { %v393_v48 = vmax.bf16 %v371_v39, %v238_v28  ;;  %v391_v50 = vmax.bf16 %v369_v43, %v236_v42  ;;  %v248_v42 = vmax.bf16 %v823_v60, %v665_v16  ;;  %v227_v43 = vmax.bf16 %v806_v45, %v588_v1 }
  0xb6   : > { %v325_v2 = vpop.permute.xlu1 %324  ;;  %v321_v3 = vpop.permute.xlu0 %320 }
  0xb7   : > { %v430_v22 = vsel %vm836_vm2, %v393_v48, %v429_v8  ;;  %v426_v23 = vsel %vm836_vm2, %v391_v50, %v425_v10  ;;  %v375_v46 = vmax.bf16 %v705_v24, %v325_v2  ;;  %v373_v47 = vmax.bf16 %v708_v25, %v321_v3 }
  0xb8   : > { %431 = vst [vmem:[%s830_s16 + $0x2c] sm:$0x3] %v430_v22  ;;  %427 = vst [vmem:[%s830_s16 + $0x24] sm:$0x3] %v426_v23  ;;  %v229_v50 = vmax.bf16 %v804_v44, %v585_v0  ;;  %v233_v3 = vmax.bf16 %v810_v51, %v618_v7  ;;  %v235_v0 = vmax.bf16 %v812_v53, %v628_v9  ;;  %v982_v51 = vld [vmem:[#allocation6_spill] sm:$0xff] }
  0xb9   : > { %v397_v56 = vmax.bf16 %v375_v46, %v242_v54  ;;  %v395_v59 = vmax.bf16 %v373_v47, %v240_v52  ;;  %v237_v7 = vmax.bf16 %v814_v55, %v638_v11  ;;  %v239_v9 = vmax.bf16 %v818_v57, %v648_v13  ;;  %v984_v11 = vld [vmem:[#allocation4_spill] sm:$0xff]  ;;  %v985_v13 = vld [vmem:[#allocation7_spill] sm:$0xff] }
  0xba   : > { %v333_v62 = vpop.permute.xlu1 %332  ;;  %v329_v24 = vpop.permute.xlu0 %328  ;;  %v986_v57 = vld [vmem:[#allocation8_spill] sm:$0xff] }
  0xbb   : > { %v438_v25 = vsel %vm836_vm2, %v397_v56, %v437_v12  ;;  %v434_v63 = vsel %vm836_vm2, %v395_v59, %v433_v15  ;;  %v379_v4 = vmax.bf16 %v715_v26, %v333_v62  ;;  %v377_v6 = vmax.bf16 %v718_v27, %v329_v24  ;;  %v983_v12 = vld [vmem:[#allocation2_spill] sm:$0xff]  ;;  %v987_v24 = vld [vmem:[#allocation3_spill] sm:$0xff] }
  0xbc   : > { %439 = vst [vmem:[%s830_s16 + $0x3c] sm:$0x3] %v438_v25  ;;  %435 = vst [vmem:[%s830_s16 + $0x34] sm:$0x3] %v434_v63  ;;  %v988_v63 = vld [vmem:[#allocation5_spill] sm:$0xff] }
  0xbd   : > { %v401_v17 = vmax.bf16 %v379_v4, %v246_v19  ;;  %v399_v61 = vmax.bf16 %v377_v6, %v244_v18  ;;  %v989_v6 = vld [vmem:[#allocation9_spill] sm:$0xff] }
  0xbe   : > { %v190_v30 = vpop.permute.xlu1 %189  ;;  %v337_v33 = vpop.permute.xlu0 %336 }
  0xbf   : > { %v446_v28 = vsel %vm836_vm2, %v401_v17, %v445_v14  ;;  %v442_v26 = vsel %vm836_vm2, %v399_v61, %v441_v58  ;;  %v381_v27 = vmax.bf16 %v728_v29, %v337_v33  ;;  %v241_v15 = vmax.bf16 %v190_v30, %v983_v12  ;;  %v990_v58 = vld [vmem:[#allocation10_spill] sm:$0xff] }
  0xc0   : > { %447 = vst [vmem:[%s830_s16 + $0x4c] sm:$0x3] %v446_v28  ;;  %443 = vst [vmem:[%s830_s16 + $0x44] sm:$0x3] %v442_v26 }
  0xc1   : > { %v403_v31 = vmax.bf16 %v381_v27, %v248_v42 }
  0xc2   : > { %v198_v20 = vpop.permute.xlu1 %197  ;;  %v194_v21 = vpop.permute.xlu0 %193 }
  0xc3   : > { %v450_v39 = vsel %vm836_vm2, %v403_v31, %v449_v40  ;;  %v243_v55 = vmax.bf16 %v194_v21, %v984_v11  ;;  %v245_v25 = vmax.bf16 %v198_v20, %v987_v24 }
  0xc4   : > { %451 = vst [vmem:[%s830_s16 + $0x54] sm:$0x3] %v450_v39 }
  0xc6   : > { %v295_v16 = vpop.permute.xlu1 %294  ;;  %v202_v60 = vpop.permute.xlu0 %201 }
  0xc7   : > { %v360_v8 = vmax.bf16 %v745_v32, %v295_v16  ;;  %v247_v4 = vmax.bf16 %v202_v60, %v988_v63 }
  0xc9   : > { %v382_v29 = vmax.bf16 %v360_v8, %v227_v43 }
  0xca   : > { %v303_v10 = vpop.permute.xlu1 %302  ;;  %v299_v48 = vpop.permute.xlu0 %298 }
  0xcb   : > { %405 = vst.msk [vmem:[%s830_s16] sm:$0xf] %vm404_vm3, %v382_v29  ;;  %v364_v52 = vmax.bf16 %v755_v34, %v303_v10  ;;  %v362_v1 = vmax.bf16 %v758_v35, %v299_v48 }
  0xcd   : > { %v386_v45 = vmax.bf16 %v364_v52, %v231_v41  ;;  %v384_v32 = vmax.bf16 %v362_v1, %v229_v50 }
  0xce   : > { %v311_v54 = vpop.permute.xlu1 %310  ;;  %v307_v2 = vpop.permute.xlu0 %306 }
  0xcf   : > { %416 = vst.msk [vmem:[%s830_s16 + $0x10] sm:$0xf] %vm404_vm3, %v386_v45  ;;  %412 = vst.msk [vmem:[%s830_s16 + $0x8] sm:$0xf] %vm404_vm3, %v384_v32  ;;  %v368_v5 = vmax.bf16 %v765_v36, %v311_v54  ;;  %v366_v34 = vmax.bf16 %v768_v37, %v307_v2 }
  0xd1   : > { %v390_v35 = vmax.bf16 %v368_v5, %v235_v0  ;;  %v388_v44 = vmax.bf16 %v366_v34, %v233_v3 }
  0xd2   : > { %v319_v49 = vpop.permute.xlu1 %318  ;;  %v315_v22 = vpop.permute.xlu0 %314 }
  0xd3   : > { %424 = vst.msk [vmem:[%s830_s16 + $0x20] sm:$0xf] %vm404_vm3, %v390_v35  ;;  %420 = vst.msk [vmem:[%s830_s16 + $0x18] sm:$0xf] %vm404_vm3, %v388_v44  ;;  %v372_v36 = vmax.bf16 %v775_v38, %v319_v49  ;;  %v370_v37 = vmax.bf16 %v982_v51, %v315_v22 }
  0xd5   : > { %v394_v53 = vmax.bf16 %v372_v36, %v239_v9  ;;  %v392_v23 = vmax.bf16 %v370_v37, %v237_v7 }
  0xd6   : > { %v327_v46 = vpop.permute.xlu1 %326  ;;  %v323_v47 = vpop.permute.xlu0 %322 }
  0xd7   : > { %432 = vst.msk [vmem:[%s830_s16 + $0x30] sm:$0xf] %vm404_vm3, %v394_v53  ;;  %428 = vst.msk [vmem:[%s830_s16 + $0x28] sm:$0xf] %vm404_vm3, %v392_v23  ;;  %v376_v38 = vmax.bf16 %v985_v13, %v327_v46  ;;  %v374_v56 = vmax.bf16 %v986_v57, %v323_v47 }
  0xd9   : > { %v398_v59 = vmax.bf16 %v376_v38, %v243_v55  ;;  %v396_v18 = vmax.bf16 %v374_v56, %v241_v15 }
  0xda   : > { %v335_v19 = vpop.permute.xlu1 %334  ;;  %v331_v62 = vpop.permute.xlu0 %330 }
  0xdb   : > { %440 = vst.msk [vmem:[%s830_s16 + $0x40] sm:$0xf] %vm404_vm3, %v398_v59  ;;  %436 = vst.msk [vmem:[%s830_s16 + $0x38] sm:$0xf] %vm404_vm3, %v396_v18  ;;  %v380_v14 = vmax.bf16 %v989_v6, %v335_v19  ;;  %v378_v17 = vmax.bf16 %v990_v58, %v331_v62 }
  0xdd   : > { %v402_v61 = vmax.bf16 %v380_v14, %v247_v4  ;;  %v400_v30 = vmax.bf16 %v378_v17, %v245_v25 }
  0xdf   : > { %448 = vst.msk [vmem:[%s830_s16 + $0x50] sm:$0xf] %vm404_vm3, %v402_v61  ;;  %444 = vst.msk [vmem:[%s830_s16 + $0x48] sm:$0xf] %vm404_vm3, %v400_v30 }
  0xe0 PF: > { %s11_s6 = sadd.s32 1, %s555_s6  }
  0xe1   : > { %p8_p4 = scmp.ge.s32.totalorder %s11_s6, 4  }
  0xe3   :  { %10 = sbr.rel (!%p8_p4) target bundleno = 1 (0x1), region = 55 }

// kernel: value_network_forward.6
= control target key start
LH: loop header
LB: loop body
LE: loop exit
PB: predicated region body
PF: predicated region fallthrough
CT: control target
= control target key end

     0   :  { %s864_s12 = smov 0   ;;  %s998_s0 = inlined_call_operand.vmem [shape: bf16[2,25,512], index: 0, kind: input, shape index: {}]   ;;  %s999_s1 = inlined_call_operand.vmem [shape: bf16[512,64], index: 1, kind: input, shape index: {}]   ;;  %s1000_s2 = inlined_call_operand.vmem [shape: f32[1,64], index: 2, kind: input, shape index: {}]   ;;  %s1001_s3 = inlined_call_operand.vmem [shape: bf16[2,25,64], index: 3, kind: output, shape index: {}]  }
   0x1 LB: > { %s666_s13 = sadd.s32 4294967295, %s842_s12   ;;  %p670_p0 = scmp.ge.s32.totalorder %s842_s12, 1  ;;  %s842_s12 = sphi %s864_s12, %s13_s12  }
   0x2   : > { %p137_p1 = scmp.lt.s32.totalorder %s842_s12, 3 }
   0x4   : > { %p138_p2 = pnand %p670_p0, %p137_p1 }
   0x5   : > { %v792_v0 = vld [vmem:[%s999_s1 + $0x40] sm:$0xff] (!%p138_p2)   ;;  %v796_v4 = vld [vmem:[%s999_s1 + $0x48] sm:$0xff] (!%p138_p2)   ;;  %v800_v8 = vld [vmem:[%s999_s1 + $0x50] sm:$0xff] (!%p138_p2)   ;;  %p161_p3 = scmp.lt.s32.totalorder (!%p138_p2), %s666_s13, 1  ;;  %vm601_vm0 = vcmask (!%p138_p2), 519168   ;;  %vm605_vm1 = vcmask (!%p138_p2), 516096  }
   0x6   : > { %141 = sbr.rel (%p138_p2) target bundleno = 274 (0x112), region = 32  ;;  %v793_v1 = vld [vmem:[%s999_s1 + $0xc0] sm:$0xff] (!%p138_p2)   ;;  %728 = vmatprep.subr.bf16.mxu0 (!%p138_p2), %v792_v0  ;;  %v797_v5 = vld [vmem:[%s999_s1 + $0xc8] sm:$0xff] (!%p138_p2)   ;;  %v801_v9 = vld [vmem:[%s999_s1 + $0xd0] sm:$0xff] (!%p138_p2)   ;;  %vm606_vm2 = vsmask.f32 (!%p138_p2), 256 }
   0x7   : > { %v794_v2 = vld [vmem:[%s999_s1] sm:$0xff] (!%p138_p2)   ;;  %756 = vmatprep.subr.bf16.mxu1 (!%p138_p2), %v793_v1  ;;  %v798_v6 = vld [vmem:[%s999_s1 + $0x8] sm:$0xff] (!%p138_p2)   ;;  %v802_v10 = vld [vmem:[%s999_s1 + $0x10] sm:$0xff] (!%p138_p2)  }
   0x8   : > { %v795_v3 = vld [vmem:[%s999_s1 + $0x80] sm:$0xff] (!%p138_p2)   ;;  %729 = vmatpush3.bf16.msra.mxu0 (!%p138_p2), %v794_v2  ;;  %v799_v7 = vld [vmem:[%s999_s1 + $0x88] sm:$0xff] (!%p138_p2)   ;;  %v803_v11 = vld [vmem:[%s999_s1 + $0x90] sm:$0xff] (!%p138_p2)  }
   0x9   : > { %757 = vmatpush3.bf16.msra.mxu1 (!%p138_p2), %v795_v3  ;;  %730 = vmatprep.subr.bf16.mxu0 (!%p138_p2), %v796_v4  ;;  %v804_v12 = vld [vmem:[%s999_s1 + $0x58] sm:$0xff] (!%p138_p2)   ;;  %v808_v16 = vld [vmem:[%s999_s1 + $0x60] sm:$0xff] (!%p138_p2)   ;;  %v812_v20 = vld [vmem:[%s999_s1 + $0x68] sm:$0xff] (!%p138_p2)  }
   0xa   : > { %758 = vmatprep.subr.bf16.mxu1 (!%p138_p2), %v797_v5  ;;  %v805_v13 = vld [vmem:[%s999_s1 + $0xd8] sm:$0xff] (!%p138_p2)   ;;  %v809_v17 = vld [vmem:[%s999_s1 + $0xe0] sm:$0xff] (!%p138_p2)   ;;  %v813_v21 = vld [vmem:[%s999_s1 + $0xe8] sm:$0xff] (!%p138_p2)  }
   0xb   : > { %v806_v14 = vld [vmem:[%s999_s1 + $0x18] sm:$0xff] (!%p138_p2)   ;;  %v810_v18 = vld [vmem:[%s999_s1 + $0x20] sm:$0xff] (!%p138_p2)   ;;  %v814_v22 = vld [vmem:[%s999_s1 + $0x28] sm:$0xff] (!%p138_p2)  }
   0xc   : > { %731 = vmatpush3.bf16.msra.mxu0 (!%p138_p2), %v798_v6  ;;  %v807_v15 = vld [vmem:[%s999_s1 + $0x98] sm:$0xff] (!%p138_p2)   ;;  %v811_v19 = vld [vmem:[%s999_s1 + $0xa0] sm:$0xff] (!%p138_p2)   ;;  %v815_v23 = vld [vmem:[%s999_s1 + $0xa8] sm:$0xff] (!%p138_p2)  }
   0xd   : > { %759 = vmatpush3.bf16.msra.mxu1 %v799_v7  ;;  %732 = vmatprep.subr.bf16.mxu0 %v800_v8  ;;  %s1003_s13 = smov (!%p161_p3, %s666_s13), 1  ;;  %v816_v24 = vld [vmem:[%s999_s1 + $0x70] sm:$0xff]   ;;  %v820_v28 = vld [vmem:[%s999_s1 + $0x78] sm:$0xff]   ;;  %v675_v42 = vld [vmem:[%s1000_s2] ss:$0 sm:$0xff] }
   0xe   : > { %760 = vmatprep.subr.bf16.mxu1 %v801_v9  ;;  %v817_v25 = vld [vmem:[%s999_s1 + $0xf0] sm:$0xff]   ;;  %s722_s18 = sshll.u32 %s1003_s13, 6  ;;  %v821_v29 = vld [vmem:[%s999_s1 + $0xf8] sm:$0xff]   ;;  %s723_s7 = sshll.u32 %s1003_s13, 4  ;;  %vm607_vm3 = vmand %vm605_vm1, %vm606_vm2 }
   0xf   : > { %v818_v26 = vld [vmem:[%s999_s1 + $0x30] sm:$0xff]   ;;  %s165_s27 = scalar_lea.vmem %s998_s0, %s722_s18  ;;  %v822_v30 = vld [vmem:[%s999_s1 + $0x38] sm:$0xff]   ;;  %s985_s10 = scalar_lea.vmem %s1001_s3, %s723_s7 }
  0x10   : > { %733 = vmatpush3.bf16.msra.mxu0 %v802_v10  ;;  %v819_v27 = vld [vmem:[%s999_s1 + $0xb0] sm:$0xff]   ;;  %v823_v31 = vld [vmem:[%s999_s1 + $0xb8] sm:$0xff]  }
  0x11   : > { %761 = vmatpush3.bf16.msra.mxu1 %v803_v11  ;;  %734 = vmatprep.subr.bf16.mxu0 %v804_v12  ;;  %v824_v32 = vld [vmem:[%s165_s27] ss:$16 sps:$4 sm:$0xff]   ;;  %v826_v33 = vld [vmem:[%s165_s27 + $0x4] ss:$16 sps:$4 sm:$0xff]   ;;  %v827_v34 = vld [vmem:[%s165_s27 + $0x8] ss:$16 sps:$4 sm:$0xff]  }
  0x12   : > { %762 = vmatprep.subr.bf16.mxu1 %v805_v13  ;;  %v829_v35 = vld [vmem:[%s165_s27 + $0xc] ss:$16 sps:$4 sm:$0xff]   ;;  %515 = vmatprep.mubr.bf16.mxu0 %v826_v33  ;;  %v830_v36 = vld [vmem:[%s165_s27 + $0x24] ss:$16 sps:$4 sm:$0x1f]  }
  0x13   : > { %564 = vmatprep.mubr.bf16.mxu1 %v829_v35  ;;  %v832_v37 = vld [vmem:[%s165_s27 + $0x2c] ss:$16 sps:$4 sm:$0x1f]   ;;  %v834_v38 = vld [vmem:[%s165_s27 + $0x20] ss:$16 sps:$4 sm:$0x1f]  }
  0x14   : > { %735 = vmatpush3.bf16.msra.mxu0 %v806_v14  ;;  %v835_v39 = vld [vmem:[%s165_s27 + $0x28] ss:$16 sps:$4 sm:$0x1f]  }
  0x15   : > { %763 = vmatpush3.bf16.msra.mxu1 %v807_v15  ;;  %736 = vmatprep.subr.bf16.mxu0 %v808_v16  ;;  %v608_v16 = vld [vmem:[%s985_s10 + $0xc] sm:$0x1] }
  0x16   : > { %764 = vmatprep.subr.bf16.mxu1 %v809_v17 }
  0x18   : > { %737 = vmatpush3.bf16.msra.mxu0 %v810_v18 }
  0x19   : > { %765 = vmatpush3.bf16.msra.mxu1 %v811_v19  ;;  %738 = vmatprep.subr.bf16.mxu0 %v812_v20 }
  0x1a   : > { %766 = vmatprep.subr.bf16.mxu1 %v813_v21 }
  0x1c   : > { %739 = vmatpush3.bf16.msra.mxu0 %v814_v22 }
  0x1d   : > { %767 = vmatpush3.bf16.msra.mxu1 %v815_v23  ;;  %740 = vmatprep.subr.bf16.mxu0 %v816_v24 }
  0x1e   : > { %768 = vmatprep.subr.bf16.mxu1 %v817_v25 }
  0x20   : > { %741 = vmatpush3.bf16.msra.mxu0 %v818_v26 }
  0x21   : > { %769 = vmatpush3.bf16.msra.mxu1 %v819_v27  ;;  %742 = vmatprep.subr.bf16.mxu0 %v820_v28 }
  0x22   : > { %770 = vmatprep.subr.bf16.mxu1 %v821_v29 }
  0x24   : > { %743 = vmatpush3.bf16.msra.mxu0 %v822_v30 }
  0x25   : > { %771 = vmatpush3.bf16.msra.mxu1 %v823_v31 }
  0x27   : > { %516 = vmatmul.mubr.bf16.vlgmr.msra.gmra.mrb[0].mxu0 %v824_v32 }
  0x28   : > { %565 = vmatmul.mubr.bf16.vlgmr.msra.gmra.mrb[0].mxu1 %v827_v34  ;;  %523 = vmatprep.mubr.bf16.mxu0 %v830_v36 }
  0x29   : > { %572 = vmatprep.mubr.bf16.mxu1 %v832_v37 }
  0x2f   : > { %524 = vmatmul.mubr.bf16.gmra.mrb[4].mxu0 %v834_v38 }
  0x30   : > { %573 = vmatmul.mubr.bf16.gmra.mrb[4].mxu1 %v835_v39 }
  0xfa   : > { %v744_v40 = vpop.f32.mrb[0].mxu0 }
  0xfb   : > { %v772_v41 = vpop.f32.mrb[0].mxu1  ;;  %v745_v43 = vpop.f32.mrb[1].mxu0 }
  0xfc   : > { %v746_v44 = vadd.f32 %v745_v43, %v744_v40  ;;  %v773_v45 = vpop.f32.mrb[1].mxu1  ;;  %v747_v46 = vpop.f32.mrb[2].mxu0 }
  0xfd   : > { %v774_v47 = vadd.f32 %v773_v45, %v772_v41  ;;  %v775_v48 = vpop.f32.mrb[2].mxu1  ;;  %v748_v49 = vpop.f32.mrb[3].mxu0 }
  0xfe   : > { %v518_v50 = vadd.f32 %v746_v44, %v675_v42  ;;  %v749_v51 = vadd.f32 %v748_v49, %v747_v46  ;;  %v776_v52 = vpop.f32.mrb[3].mxu1 }
  0xff   : > { %v777_v53 = vadd.f32 %v776_v52, %v775_v48 }
 0x100   : > { %v567_v54 = vadd.f32 %v774_v47, %v518_v50  ;;  %v521_v55 = vadd.f32 %v749_v51, %v675_v42 }
 0x102   : > { %v581_v56 = vmax.f32 %v567_v54, 0.0  ;;  %v570_v57 = vadd.f32 %v777_v53, %v521_v55  ;;  %v750_v58 = vpop.f32.mrb[4].mxu0 }
 0x103   : > { %v778_v59 = vpop.f32.mrb[4].mxu1  ;;  %v751_v60 = vpop.f32.mrb[5].mxu0 }
 0x104   : > { %v724_v61 = vpack.c.bf16 %v581_v56, %v581_v56  ;;  %v582_v62 = vmax.f32 %v570_v57, 0.0  ;;  %v752_v63 = vadd.f32 %v751_v60, %v750_v58  ;;  %v779_v0 = vpop.f32.mrb[5].mxu1  ;;  %v753_v1 = vpop.f32.mrb[6].mxu0 }
 0x105   : > { %v780_v2 = vadd.f32 %v779_v0, %v778_v59  ;;  %v781_v3 = vpop.f32.mrb[6].mxu1  ;;  %v754_v4 = vpop.f32.mrb[7].mxu0 }
 0x106   : > { %602 = vst.msk [vmem:[%s985_s10] sm:$0xf] %vm601_vm0, %v724_v61  ;;  %v725_v5 = vpack.c.bf16 %v582_v62, %v582_v62  ;;  %v526_v6 = vadd.f32 %v752_v63, %v675_v42  ;;  %v755_v7 = vadd.f32 %v754_v4, %v753_v1  ;;  %v782_v8 = vpop.f32.mrb[7].mxu1 }
 0x107   : > { %v783_v9 = vadd.f32 %v782_v8, %v781_v3 }
 0x108   : > { %603 = vst.msk [vmem:[%s985_s10 + $0x4] sm:$0xf] %vm601_vm0, %v725_v5  ;;  %v575_v10 = vadd.f32 %v780_v2, %v526_v6  ;;  %v529_v11 = vadd.f32 %v755_v7, %v675_v42 }
 0x10a   : > { %v583_v12 = vmax.f32 %v575_v10, 0.0  ;;  %v578_v13 = vadd.f32 %v783_v9, %v529_v11 }
 0x10c   : > { %v726_v14 = vpack.c.bf16 %v583_v12, %v583_v12  ;;  %v584_v15 = vmax.f32 %v578_v13, 0.0 }
 0x10e   : > { %604 = vst.msk [vmem:[%s985_s10 + $0x8] sm:$0xf] %vm601_vm0, %v726_v14  ;;  %v727_v17 = vpack.c.bf16 %v584_v15, %v584_v15 }
 0x110   : > { %v609_v18 = vsel %vm607_vm3, %v727_v17, %v608_v16 }
 0x111   : > { %610 = vst [vmem:[%s985_s10 + $0xc] sm:$0x1] %v609_v18 }
 0x112 PF: > { %s13_s12 = sadd.s32 1, %s842_s12  }
 0x113   : > { %p10_p4 = scmp.ge.s32.totalorder %s13_s12, 4  }
 0x115   :  { %12 = sbr.rel (!%p10_p4) target bundleno = 1 (0x1), region = 62 }

// kernel: value_network_forward.7
= control target key start
LH: loop header
LB: loop body
LE: loop exit
PB: predicated region body
PF: predicated region fallthrough
CT: control target
= control target key end

     0   :  { %12 = vsyncpa [#allocation4], 0  ;;  %s9548_s0 = inlined_call_operand.vmem [shape: bf16[2,25,576], index: 0, kind: input, shape index: {}]   ;;  %s9549_s1 = inlined_call_operand.vmem [shape: bf16[576,64], index: 1, kind: input, shape index: {}]   ;;  %s9550_s2 = inlined_call_operand.vmem [shape: f32[1,64], index: 2, kind: input, shape index: {}]   ;;  %s9551_s3 = inlined_call_operand.vmem [shape: bf16[25,64,512], index: 3, kind: input, shape index: {}]   ;;  %s9552_s4 = inlined_call_operand.vmem [shape: f32[1,512], index: 4, kind: input, shape index: {}]   ;;  %s9553_s5 = inlined_call_operand.vmem [shape: bf16[512,6], index: 5, kind: input, shape index: {}]   ;;  %s9554_s6 = inlined_call_operand.vmem [shape: f32[1,6], index: 6, kind: input, shape index: {}]   ;;  %s9555_s7 = inlined_call_operand.hbm [shape: f32[2,1,6], index: 7, kind: output, shape index: {}]  }
   0x1   :  { %14 = vsyncpa [#allocation4 + $0x1], 0  ;;  %s7905_s24 = smov 0   ;;  %s7907_s25 = smov 0  }
   0x2   :  { %s7909_s26 = smov 0   ;;  %s7911_s27 = smov 0  }
   0x3 LB: > { %s7926_s28 = sadd.s32 4294967295, %s7861_s27   ;;  %s6003_s29 = sadd.s32 4294967294, %s7861_s27   ;;  %s7861_s27 = sphi %s7911_s27, %s9561_s27   ;;  %s7857_s26 = sphi %s7909_s26, %s9560_s26   ;;  %s7853_s25 = sphi %s7907_s25, %s9559_s25   ;;  %s7849_s24 = sphi %s7905_s24, %s9558_s24  }
   0x4   : > { %s7930_s30 = sadd.s32 1, %s7861_s27   ;;  %s179_s8 = sadd.s32 1, %s7857_s26 }
   0x5   : > { %s176_s9 = ssub.s32 %s7861_s27, %s7930_s30  ;;  %p189_p0 = scmp.ne.s32.totalorder %s7857_s26, %s7853_s25 }
   0x6   : > { %p177_p1 = scmp.eq.s32.totalorder %s176_s9, 0  ;;  %p190_p2 = scmp.eq.s32.totalorder %s7926_s28, 1 }
   0x7   : > { %p195_p3 = scmp.ne.s32.totalorder %s7853_s25, %s7849_s24  ;;  %p196_p4 = scmp.eq.s32.totalorder %s6003_s29, 1 }
   0x8   : > { %s7941_s10 = scalar_select %p177_p1, %s7857_s26, %s179_s8  }
   0x9   : > { %p7943_p5 = por %p190_p2, %p189_p0  ;;  %p7947_p6 = por %p196_p4, %p195_p3 }
   0xa   : > { %p6006_p7 = scmp.ge.s32.totalorder %s7861_s27, 1  ;;  %p240_p8 = scmp.lt.s32.totalorder %s7861_s27, 3 }
   0xc   : > { %p241_p9 = pnand %p6006_p7, %p240_p8 }
   0xd   : > { %v7105_v0 = vld [vmem:[%s9549_s1 + $0x40] sm:$0xff] (!%p241_p9)   ;;  %v7109_v4 = vld [vmem:[%s9549_s1 + $0x48] sm:$0xff] (!%p241_p9)   ;;  %v7113_v8 = vld [vmem:[%s9549_s1 + $0x50] sm:$0xff] (!%p241_p9)   ;;  %p271_p10 = scmp.lt.s32.totalorder (!%p241_p9), %s7926_s28, 1  ;;  %vm634_vm0 = vcmask (!%p241_p9), 523264   ;;  %vm812_vm1 = vcmask (!%p241_p9), 516096  }
   0xe   : > { %244 = sbr.rel (%p241_p9) target bundleno = 1132 (0x46c), region = 48  ;;  %v7106_v1 = vld [vmem:[%s9549_s1] sm:$0xff] (!%p241_p9)   ;;  %6946 = vmatprep.subr.bf16.mxu0 (!%p241_p9), %v7105_v0  ;;  %v7110_v5 = vld [vmem:[%s9549_s1 + $0x8] sm:$0xff] (!%p241_p9)   ;;  %v7114_v9 = vld [vmem:[%s9549_s1 + $0x10] sm:$0xff] (!%p241_p9)   ;;  %v7863_v0 = vmov (!%p241_p9), 0   ;;  %vm808_vm3 = vcmask (!%p241_p9), 519168  }
   0xf   : > { %v7107_v2 = vld [vmem:[%s9549_s1 + $0xc0] sm:$0xff] (!%p241_p9)   ;;  %6947 = vmatpush3.bf16.msra.mxu0 (!%p241_p9), %v7106_v1  ;;  %v7111_v6 = vld [vmem:[%s9549_s1 + $0xc8] sm:$0xff] (!%p241_p9)   ;;  %v7115_v10 = vld [vmem:[%s9549_s1 + $0xd0] sm:$0xff] (!%p241_p9)   ;;  %vm813_vm2 = vsmask.f32 (!%p241_p9), 256  ;;  %s269_s21 = sand.u32 (!%p241_p9), 1, %s7853_s25  }
  0x10   : > { %v7108_v3 = vld [vmem:[%s9549_s1 + $0x80] sm:$0xff] (!%p241_p9)   ;;  %6974 = vmatprep.subr.bf16.mxu1 (!%p241_p9), %v7107_v2  ;;  %6948 = vmatprep.subr.bf16.mxu0 (!%p241_p9), %v7109_v4  ;;  %v7112_v7 = vld [vmem:[%s9549_s1 + $0x88] sm:$0xff] (!%p241_p9)   ;;  %v7116_v11 = vld [vmem:[%s9549_s1 + $0x90] sm:$0xff] (!%p241_p9)   ;;  %s270_s8 = scalar_lea.vmem (!%p241_p9), [#allocation3], %s269_s21  ;;  %vm5933_vm5 = vcmask (!%p241_p9), 40960   ;;  %s5936_s16 = scalar_lea.sflag (!%p241_p9), [#allocation4], %s269_s21 }
  0x11   : > { %6975 = vmatpush3.bf16.msra.mxu1 (!%p241_p9), %v7108_v3  ;;  %v7117_v12 = vld [vmem:[%s9549_s1 + $0x58] sm:$0xff] (!%p241_p9)   ;;  %v7121_v16 = vld [vmem:[%s9549_s1 + $0x60] sm:$0xff] (!%p241_p9)   ;;  %v7125_v20 = vld [vmem:[%s9549_s1 + $0x68] sm:$0xff] (!%p241_p9)   ;;  %s5948_s9 = sshll.u32 (!%p241_p9), %s270_s8, 4  ;;  %s9508_s9 = int_to_ptr.vmem [resolvable:$true] %s5948_s9 }
  0x12   : > { %6976 = vmatprep.subr.bf16.mxu1 (!%p241_p9), %v7111_v6  ;;  %v7118_v13 = vld [vmem:[%s9549_s1 + $0x18] sm:$0xff] (!%p241_p9)   ;;  %v7122_v17 = vld [vmem:[%s9549_s1 + $0x20] sm:$0xff] (!%p241_p9)   ;;  %v7126_v21 = vld [vmem:[%s9549_s1 + $0x28] sm:$0xff] (!%p241_p9)   ;;  %s7799_s17 = scalar_lea.vmem (!%p241_p9), %s9508_s9, 16 }
  0x13   : > { %6949 = vmatpush3.bf16.msra.mxu0 (!%p241_p9), %v7110_v5  ;;  %v7119_v14 = vld [vmem:[%s9549_s1 + $0xd8] sm:$0xff] (!%p241_p9)   ;;  %v7123_v18 = vld [vmem:[%s9549_s1 + $0xe0] sm:$0xff] (!%p241_p9)   ;;  %v7127_v22 = vld [vmem:[%s9549_s1 + $0xe8] sm:$0xff] (!%p241_p9)   ;;  %p7800_p11 = scmp.ne.s32.totalorder (!%p241_p9), %s9508_s9, %s7799_s17 }
  0x14   : > { %6950 = vmatprep.subr.bf16.mxu0 (!%p241_p9), %v7113_v8  ;;  %v7120_v15 = vld [vmem:[%s9549_s1 + $0x98] sm:$0xff] (!%p241_p9)   ;;  %v7124_v19 = vld [vmem:[%s9549_s1 + $0xa0] sm:$0xff] (!%p241_p9)   ;;  %v7128_v23 = vld [vmem:[%s9549_s1 + $0xa8] sm:$0xff] (!%p241_p9)  }
  0x15   : > { %6977 = vmatpush3.bf16.msra.mxu1 %v7112_v7  ;;  %s272_s13 = scalar_select %p271_p10, %s7926_s28, 1  ;;  %v7129_v24 = vld [vmem:[%s9549_s1 + $0x70] sm:$0xff]   ;;  %v7133_v28 = vld [vmem:[%s9549_s1 + $0x78] sm:$0xff]   ;;  %v7140_v34 = vld [vmem:[%s9549_s1 + $0x100] sm:$0xff]  }
  0x16   : > { %6978 = vmatprep.subr.bf16.mxu1 %v7115_v10  ;;  %v7130_v25 = vld [vmem:[%s9549_s1 + $0x30] sm:$0xff]   ;;  %v7134_v29 = vld [vmem:[%s9549_s1 + $0x38] sm:$0xff]   ;;  %v7144_v37 = vld [vmem:[%s9549_s1 + $0x108] sm:$0xff]   ;;  %p7801_p12 = pnand %p7800_p11, %p7943_p5 }
  0x17   : > { %6951 = vmatpush3.bf16.msra.mxu0 %v7114_v9  ;;  %s7064_s22 = smul.u32 80, %s272_s13  ;;  %v7131_v26 = vld [vmem:[%s9549_s1 + $0xf0] sm:$0xff]   ;;  %v7135_v30 = vld [vmem:[%s9549_s1 + $0xf8] sm:$0xff]   ;;  %v6008_v2 = vld [vmem:[%s9550_s2] ss:$0 sm:$0xff] }
  0x18   : > { %6952 = vmatprep.subr.bf16.mxu0 %v7117_v12  ;;  %v7132_v27 = vld [vmem:[%s9549_s1 + $0xb0] sm:$0xff]   ;;  %v7139_v33 = vld [vmem:[%s9549_s1 + $0xb8] sm:$0xff]   ;;  %vm814_vm4 = vmand %vm812_vm1, %vm813_vm2  ;;  %p7802_p13 = pneg %p7801_p12 }
  0x19   : > { %6979 = vmatpush3.bf16.msra.mxu1 %v7116_v11  ;;  %s8045_s19 = scalar_lea.vmem %s9548_s0, %s7064_s22  ;;  %v7148_v39 = vld [vmem:[%s9549_s1 + $0x110] sm:$0xff]   ;;  %v7152_v43 = vld [vmem:[%s9549_s1 + $0x118] sm:$0xff]   ;;  %s6939_s22 = sshll.u32 %s7926_s28, 4 }
  0x1a   : > { %6980 = vmatprep.subr.bf16.mxu1 %v7119_v14  ;;  %v7136_v31 = vld [vmem:[%s8045_s19] ss:$20 sps:$4 sm:$0xff]   ;;  %v7138_v32 = vld [vmem:[%s8045_s19 + $0x4] ss:$20 sps:$4 sm:$0xff]   ;;  %v7141_v35 = vld [vmem:[%s8045_s19 + $0x8] ss:$20 sps:$4 sm:$0xff]  }
  0x1b   : > { %6953 = vmatpush3.bf16.msra.mxu0 %v7118_v13  ;;  %673 = vmatprep.mubr.bf16.mxu0 %v7138_v32  ;;  %v7143_v36 = vld [vmem:[%s8045_s19 + $0xc] ss:$20 sps:$4 sm:$0xff]   ;;  %v7147_v40 = vld [vmem:[%s8045_s19 + $0x28] ss:$20 sps:$4 sm:$0x1f]   ;;  %s7864_s28 = smov [#allocation3]  }
  0x1c   : > { %6954 = vmatprep.subr.bf16.mxu0 %v7121_v16  ;;  %722 = vmatprep.mubr.bf16.mxu1 %v7143_v36  ;;  %v7145_v38 = vld [vmem:[%s8045_s19 + $0x2c] ss:$20 sps:$4 sm:$0x1f]   ;;  %v7149_v41 = vld [vmem:[%s8045_s19 + $0x34] ss:$20 sps:$4 sm:$0x1f]  }
  0x1d   : > { %6981 = vmatpush3.bf16.msra.mxu1 %v7120_v15  ;;  %v7151_v42 = vld [vmem:[%s8045_s19 + $0x30] ss:$20 sps:$4 sm:$0x1f]   ;;  %v7154_v45 = vld [vmem:[%s8045_s19 + $0x38] ss:$20 sps:$4 sm:$0x1f]  }
  0x1e   : > { %6982 = vmatprep.subr.bf16.mxu1 %v7123_v18  ;;  %v7153_v44 = vld [vmem:[%s8045_s19 + $0x10] ss:$20 sps:$4 sm:$0xff]   ;;  %v7160_v47 = vld [vmem:[%s9551_s3 + $0x8c] ss:$16 sps:$4 sm:$0xff]   ;;  %v7158_v49 = vld [vmem:[%s9551_s3 + $0x88] ss:$16 sps:$4 sm:$0xff]   ;;  %s9506_s19 = scalar_lea.hbm %s9555_s7, %s6939_s22 }
  0x1f   : > { %6955 = vmatpush3.bf16.msra.mxu0 %v7122_v17  ;;  %v7157_v46 = vld [vmem:[%s9551_s3 + $0x84] ss:$16 sps:$4 sm:$0xff]   ;;  %v7155_v48 = vld [vmem:[%s9551_s3 + $0x80] ss:$16 sps:$4 sm:$0xff]   ;;  %v7166_v51 = vld [vmem:[%s9551_s3 + $0xac] ss:$16 sps:$4 sm:$0xff]  }
  0x20   : > { %6956 = vmatprep.subr.bf16.mxu0 %v7125_v20  ;;  %v7163_v50 = vld [vmem:[%s9551_s3 + $0xa4] ss:$16 sps:$4 sm:$0xff]   ;;  %v7161_v52 = vld [vmem:[%s9551_s3 + $0xa0] ss:$16 sps:$4 sm:$0xff]   ;;  %v7164_v53 = vld [vmem:[%s9551_s3 + $0xa8] ss:$16 sps:$4 sm:$0xff]  }
  0x21   : > { %6983 = vmatpush3.bf16.msra.mxu1 %v7124_v19  ;;  %v7169_v54 = vld [vmem:[%s9551_s3 + $0xc4] ss:$16 sps:$4 sm:$0xff]   ;;  %v7172_v55 = vld [vmem:[%s9551_s3 + $0xcc] ss:$16 sps:$4 sm:$0xff]   ;;  %v7167_v56 = vld [vmem:[%s9551_s3 + $0xc0] ss:$16 sps:$4 sm:$0xff]  }
  0x22   : > { %6984 = vmatprep.subr.bf16.mxu1 %v7127_v22  ;;  %v7170_v57 = vld [vmem:[%s9551_s3 + $0xc8] ss:$16 sps:$4 sm:$0xff]   ;;  %v7175_v58 = vld [vmem:[%s9551_s3 + $0xe4] ss:$16 sps:$4 sm:$0xff]   ;;  %v7178_v59 = vld [vmem:[%s9551_s3 + $0xec] ss:$16 sps:$4 sm:$0xff]  }
  0x23   : > { %6957 = vmatpush3.bf16.msra.mxu0 %v7126_v21  ;;  %v7173_v60 = vld [vmem:[%s9551_s3 + $0xe0] ss:$16 sps:$4 sm:$0xff]   ;;  %v7176_v61 = vld [vmem:[%s9551_s3 + $0xe8] ss:$16 sps:$4 sm:$0xff]   ;;  %v7181_v62 = vld [vmem:[%s9551_s3 + $0x4] ss:$16 sps:$4 sm:$0xff]  }
  0x24   : > { %6958 = vmatprep.subr.bf16.mxu0 %v7129_v24  ;;  %v7184_v63 = vld [vmem:[%s9551_s3 + $0xc] ss:$16 sps:$4 sm:$0xff]   ;;  %s7803_s13 = sshll.u32 %s7864_s28, 4  ;;  %s7804_s13 = int_to_ptr.vmem [resolvable:$false] %s7803_s13 }
  0x25   : > { %6985 = vmatpush3.bf16.msra.mxu1 %v7128_v23  ;;  %s7805_s18 = scalar_lea.vmem %s7804_s13, 32  ;;  %p7806_p0 = scmp.lt.s32.totalorder %s9508_s9, %s7804_s13 }
  0x26   : > { %6986 = vmatprep.subr.bf16.mxu1 %v7131_v26  ;;  %p7807_p1 = scmp.lt.s32.totalorder %s7805_s18, %s7799_s17 }
  0x27   : > { %6959 = vmatpush3.bf16.msra.mxu0 %v7130_v25 }
  0x28   : > { %6960 = vmatprep.subr.bf16.mxu0 %v7133_v28  ;;  %p7808_p2 = por %p7807_p1, %p7806_p0 }
  0x29   : > { %6987 = vmatpush3.bf16.msra.mxu1 %v7132_v27 }
  0x2a   : > { %6988 = vmatprep.subr.bf16.mxu1 %v7135_v30  ;;  %p7809_p3 = pnand %p7808_p2, %p7802_p13 }
  0x2b   : > { %6961 = vmatpush3.bf16.msra.mxu0 %v7134_v29 }
  0x2c   : > { %7052 = vmatprep.subr.bf16.mxu0 %v7140_v34 }
  0x2d   : > { %6989 = vmatpush3.bf16.msra.mxu1 %v7139_v33 }
  0x2e   : > { %674 = vmatmul.mubr.bf16.vlgmr.msra.gmra.mrb[0].mxu0 %v7136_v31  ;;  %941 = vmatprep.subr.bf16.mxu1 %v7157_v46 }
  0x2f   : > { %7053 = vmatpush3.bf16.msra.mxu0 %v7140_v34  ;;  %681 = vmatprep.mubr.bf16.mxu0 %v7145_v38 }
  0x30   : > { %723 = vmatmul.mubr.bf16.vlgmr.msra.gmra.mrb[0].mxu1 %v7141_v35  ;;  %7054 = vmatprep.subr.bf16.mxu0 %v7144_v37 }
  0x31   : > { %730 = vmatprep.mubr.bf16.mxu1 %v7149_v41  ;;  %942 = vmatpush1.bf16.msra.mxu1 %v7155_v48 }
  0x32   : > { %943 = vmatprep.subr.bf16.mxu1 %v7163_v50 }
  0x33   : > { %7055 = vmatpush3.bf16.msra.mxu0 %v7144_v37 }
  0x34   : > { %7056 = vmatprep.subr.bf16.mxu0 %v7148_v39 }
  0x35   : > { %944 = vmatpush1.bf16.msra.mxu1 %v7161_v52 }
  0x36   : > { %682 = vmatmul.mubr.bf16.gmra.mrb[4].mxu0 %v7147_v40  ;;  %945 = vmatprep.subr.bf16.mxu1 %v7169_v54  ;;  %v7179_v54 = vld [vmem:[%s9551_s3] ss:$16 sps:$4 sm:$0xff]  }
  0x37   : > { %7060 = vmatprep.mubr.msk.bf16.mxu0 %vm634_vm0, %v7153_v44  ;;  %7057 = vmatpush3.bf16.msra.mxu0 %v7148_v39 }
  0x38   : > { %731 = vmatmul.mubr.bf16.gmra.mrb[4].mxu1 %v7151_v42  ;;  %7058 = vmatprep.subr.bf16.mxu0 %v7152_v43 }
  0x39   : > { %946 = vmatpush1.bf16.msra.mxu1 %v7167_v56  ;;  %973 = vmatprep.mubr.bf16.mxu1 %v7863_v0 }
  0x3a   : > { %947 = vmatprep.subr.bf16.mxu1 %v7175_v58  ;;  %v7191_v58 = vld [vmem:[%s9551_s3 + $0x2c] ss:$16 sps:$4 sm:$0xff]  }
  0x3b   : > { %7059 = vmatpush3.bf16.msra.mxu0 %v7152_v43 }
  0x3c   : > { %982 = vmatprep.subr.bf16.mxu0 %v7160_v47  ;;  %v815_v47 = vld [vmem:[#allocation2 + $0xc] sm:$0x1] }
  0x3d   : > { %948 = vmatpush1.bf16.msra.mxu1 %v7173_v60  ;;  %v7189_v60 = vld [vmem:[%s9551_s3 + $0x28] ss:$16 sps:$4 sm:$0xff]  }
  0x3e   : > { %7061 = vmatmul.mubr.msk.bf16.vlgmr.msra.gmra.mrb[8].mxu0 %vm634_vm0, %v7154_v45  ;;  %1106 = vmatprep.subr.bf16.mxu1 %v7181_v62  ;;  %v7197_v62 = vld [vmem:[%s9551_s3 + $0x4c] ss:$16 sps:$4 sm:$0xff]  }
  0x3f   : > { %983 = vmatpush1.bf16.msra.mxu0 %v7158_v49  ;;  %1014 = vmatprep.mubr.bf16.mxu0 %v7863_v0 }
  0x40   : > { %984 = vmatprep.subr.bf16.mxu0 %v7166_v51 }
  0x43   : > { %985 = vmatpush1.bf16.msra.mxu0 %v7164_v53 }
  0x44   : > { %986 = vmatprep.subr.bf16.mxu0 %v7172_v55  ;;  %v7182_v55 = vld [vmem:[%s9551_s3 + $0x8] ss:$16 sps:$4 sm:$0xff]  }
  0x47   : > { %987 = vmatpush1.bf16.msra.mxu0 %v7170_v57  ;;  %v7188_v57 = vld [vmem:[%s9551_s3 + $0x24] ss:$16 sps:$4 sm:$0xff]  }
  0x48   : > { %988 = vmatprep.subr.bf16.mxu0 %v7178_v59  ;;  %v7186_v59 = vld [vmem:[%s9551_s3 + $0x20] ss:$16 sps:$4 sm:$0xff]  }
  0x4b   : > { %989 = vmatpush1.bf16.msra.mxu0 %v7176_v61  ;;  %v7194_v61 = vld [vmem:[%s9551_s3 + $0x44] ss:$16 sps:$4 sm:$0xff]  }
  0x4c   : > { %1147 = vmatprep.subr.bf16.mxu0 %v7184_v63  ;;  %v7192_v63 = vld [vmem:[%s9551_s3 + $0x40] ss:$16 sps:$4 sm:$0xff]  }
 0x101   : > { %v6962_v1 = vpop.f32.mrb[0].mxu0 }
 0x102   : > { %v6963_v3 = vpop.f32.mrb[1].mxu0 }
 0x103   : > { %v6964_v4 = vadd.f32 %v6963_v3, %v6962_v1  ;;  %v6965_v5 = vpop.f32.mrb[2].mxu0  ;;  %v6990_v6 = vpop.f32.mrb[0].mxu1  ;;  %v7195_v1 = vld [vmem:[%s9551_s3 + $0x48] ss:$16 sps:$4 sm:$0xff]   ;;  %v7203_v3 = vld [vmem:[%s9551_s3 + $0x6c] ss:$16 sps:$4 sm:$0xff]  }
 0x104   : > { %v6966_v7 = vpop.f32.mrb[3].mxu0  ;;  %v6991_v10 = vpop.f32.mrb[1].mxu1 }
 0x105   : > { %v676_v8 = vadd.f32 %v6964_v4, %v6008_v2  ;;  %v6967_v9 = vadd.f32 %v6966_v7, %v6965_v5  ;;  %v6992_v11 = vadd.f32 %v6991_v10, %v6990_v6  ;;  %v6993_v12 = vpop.f32.mrb[2].mxu1  ;;  %v7198_v4 = vld [vmem:[%s9551_s3 + $0x60] ss:$16 sps:$4 sm:$0xff]   ;;  %v7201_v5 = vld [vmem:[%s9551_s3 + $0x68] ss:$16 sps:$4 sm:$0xff]  }
 0x106   : > { %v6994_v14 = vpop.f32.mrb[3].mxu1  ;;  %v7206_v6 = vld [vmem:[%s9551_s3 + $0x104] ss:$16 sps:$4 sm:$0xff]   ;;  %v7209_v7 = vld [vmem:[%s9551_s3 + $0x10c] ss:$16 sps:$4 sm:$0xff]  }
 0x107   : > { %v679_v13 = vadd.f32 %v6967_v9, %v6008_v2  ;;  %v6995_v15 = vadd.f32 %v6994_v14, %v6993_v12  ;;  %v725_v16 = vadd.f32 %v6992_v11, %v676_v8  ;;  %v7204_v8 = vld [vmem:[%s9551_s3 + $0x100] ss:$16 sps:$4 sm:$0xff]   ;;  %v7207_v9 = vld [vmem:[%s9551_s3 + $0x108] ss:$16 sps:$4 sm:$0xff]   ;;  %v7212_v10 = vld [vmem:[%s9551_s3 + $0x124] ss:$16 sps:$4 sm:$0xff]  }
 0x108   : > { %v7215_v11 = vld [vmem:[%s9551_s3 + $0x12c] ss:$16 sps:$4 sm:$0xff]   ;;  %v7210_v12 = vld [vmem:[%s9551_s3 + $0x120] ss:$16 sps:$4 sm:$0xff]   ;;  %v7218_v14 = vld [vmem:[%s9551_s3 + $0x144] ss:$16 sps:$4 sm:$0xff]  }
 0x109   : > { %v6968_v17 = vpop.f32.mrb[4].mxu0  ;;  %v728_v19 = vadd.f32 %v6995_v15, %v679_v13  ;;  %v7213_v13 = vld [vmem:[%s9551_s3 + $0x128] ss:$16 sps:$4 sm:$0xff]   ;;  %v7221_v15 = vld [vmem:[%s9551_s3 + $0x14c] ss:$16 sps:$4 sm:$0xff]  }
 0x10a   : > { %v6969_v18 = vpop.f32.mrb[5].mxu0 }
 0x10b   : > { %v6970_v20 = vadd.f32 %v6969_v18, %v6968_v17  ;;  %v6971_v21 = vpop.f32.mrb[6].mxu0  ;;  %v6996_v22 = vpop.f32.mrb[4].mxu1  ;;  %v7219_v17 = vld [vmem:[%s9551_s3 + $0x148] ss:$16 sps:$4 sm:$0xff]   ;;  %v7224_v18 = vld [vmem:[%s9551_s3 + $0x164] ss:$16 sps:$4 sm:$0xff]  }
 0x10c   : > { %v6972_v23 = vpop.f32.mrb[7].mxu0  ;;  %v6997_v26 = vpop.f32.mrb[5].mxu1 }
 0x10d   : > { %v684_v24 = vadd.f32 %v6970_v20, %v6008_v2  ;;  %v6973_v25 = vadd.f32 %v6972_v23, %v6971_v21  ;;  %v6998_v27 = vadd.f32 %v6997_v26, %v6996_v22  ;;  %v6999_v28 = vpop.f32.mrb[6].mxu1  ;;  %v7222_v20 = vld [vmem:[%s9551_s3 + $0x160] ss:$16 sps:$4 sm:$0xff]   ;;  %v7225_v21 = vld [vmem:[%s9551_s3 + $0x168] ss:$16 sps:$4 sm:$0xff]  }
 0x10e   : > { %v7000_v30 = vpop.f32.mrb[7].mxu1  ;;  %v7231_v22 = vld [vmem:[%s9551_s3 + $0x184] ss:$16 sps:$4 sm:$0xff]   ;;  %v7232_v26 = vld [vmem:[%s9551_s3 + $0x188] ss:$16 sps:$4 sm:$0xff]  }
 0x10f   : > { %v687_v29 = vadd.f32 %v6973_v25, %v6008_v2  ;;  %v7001_v31 = vadd.f32 %v7000_v30, %v6999_v28  ;;  %v733_v32 = vadd.f32 %v6998_v27, %v684_v24  ;;  %v7200_v2 = vld [vmem:[%s9551_s3 + $0x64] ss:$16 sps:$4 sm:$0xff]   ;;  %v7234_v24 = vld [vmem:[%s9551_s3 + $0x18c] ss:$16 sps:$4 sm:$0xff]   ;;  %v7229_v25 = vld [vmem:[%s9551_s3 + $0x180] ss:$16 sps:$4 sm:$0xff]  }
 0x110   : > { %v7237_v28 = vld [vmem:[%s9551_s3 + $0x1a4] ss:$16 sps:$4 sm:$0xff]   ;;  %v7235_v30 = vld [vmem:[%s9551_s3 + $0x1a0] ss:$16 sps:$4 sm:$0xff]  }
 0x111   : > { %v7062_v33 = vpop.f32.mrb[8].mxu0  ;;  %v736_v34 = vadd.f32 %v7001_v31, %v687_v29  ;;  %v7240_v29 = vld [vmem:[%s9551_s3 + $0x1ac] ss:$16 sps:$4 sm:$0xff]   ;;  %v7238_v31 = vld [vmem:[%s9551_s3 + $0x1a8] ss:$16 sps:$4 sm:$0xff]  }
 0x112   : > { %v782_v35 = vadd.f32 %v7062_v33, %v733_v32  ;;  %v773_v36 = vpop.f32.mrb[9].mxu0  ;;  %v7243_v32 = vld [vmem:[%s9551_s3 + $0x1c4] ss:$16 sps:$4 sm:$0xff]   ;;  %v7246_v33 = vld [vmem:[%s9551_s3 + $0x1cc] ss:$16 sps:$4 sm:$0xff]  }
 0x113   : > { %v774_v37 = vadd.f32 %v773_v36, %v725_v16  ;;  %v7063_v38 = vpop.f32.mrb[10].mxu0  ;;  %v7216_v16 = vld [vmem:[%s9551_s3 + $0x140] ss:$16 sps:$4 sm:$0xff]   ;;  %v7249_v36 = vld [vmem:[%s9551_s3 + $0x1e4] ss:$16 sps:$4 sm:$0xff]  }
 0x114   : > { %v790_v39 = vmax.f32 %v782_v35, 0.0  ;;  %v785_v40 = vadd.f32 %v7063_v38, %v736_v34  ;;  %v776_v41 = vpop.f32.mrb[11].mxu0  ;;  %v7241_v34 = vld [vmem:[%s9551_s3 + $0x1c0] ss:$16 sps:$4 sm:$0xff]   ;;  %v7244_v35 = vld [vmem:[%s9551_s3 + $0x1c8] ss:$16 sps:$4 sm:$0xff]  }
 0x115   : > { %v788_v42 = vmax.f32 %v774_v37, 0.0  ;;  %v777_v43 = vadd.f32 %v776_v41, %v728_v19  ;;  %v7227_v19 = vld [vmem:[%s9551_s3 + $0x16c] ss:$16 sps:$4 sm:$0xff]   ;;  %v7247_v38 = vld [vmem:[%s9551_s3 + $0x1e0] ss:$16 sps:$4 sm:$0xff]  }
 0x116   : > { %v6944_v44 = vpack.c.bf16 %v790_v39, %v790_v39  ;;  %v791_v45 = vmax.f32 %v785_v40, 0.0  ;;  %v7252_v37 = vld [vmem:[%s9551_s3 + $0x1ec] ss:$16 sps:$4 sm:$0xff]   ;;  %v7250_v39 = vld [vmem:[%s9551_s3 + $0x1e8] ss:$16 sps:$4 sm:$0xff]  }
 0x117   : > { %v6942_v46 = vpack.c.bf16 %v788_v42, %v788_v42  ;;  %v789_v48 = vmax.f32 %v777_v43, 0.0  ;;  %v7255_v41 = vld [vmem:[%s9551_s3 + $0x204] ss:$16 sps:$4 sm:$0xff]   ;;  %v7258_v42 = vld [vmem:[%s9551_s3 + $0x20c] ss:$16 sps:$4 sm:$0xff]  }
 0x118   : > { %811 = vst.msk [vmem:[#allocation2 + $0x8] sm:$0xf] %vm808_vm3, %v6944_v44  ;;  %v6945_v49 = vpack.c.bf16 %v791_v45, %v791_v45  ;;  %v7253_v43 = vld [vmem:[%s9551_s3 + $0x200] ss:$16 sps:$4 sm:$0xff]   ;;  %v7256_v44 = vld [vmem:[%s9551_s3 + $0x208] ss:$16 sps:$4 sm:$0xff]  }
 0x119   : > { %809 = vst.msk [vmem:[#allocation2] sm:$0xf] %vm808_vm3, %v6942_v46  ;;  %v6943_v50 = vpack.c.bf16 %v789_v48, %v789_v48  ;;  %v7261_v46 = vld [vmem:[%s9551_s3 + $0x224] ss:$16 sps:$4 sm:$0xff]   ;;  %v7259_v48 = vld [vmem:[%s9551_s3 + $0x220] ss:$16 sps:$4 sm:$0xff]  }
 0x11a   : > { %v816_v51 = vsel %vm814_vm4, %v6945_v49, %v815_v47  ;;  %v7264_v47 = vld [vmem:[%s9551_s3 + $0x22c] ss:$16 sps:$4 sm:$0xff]   ;;  %v7262_v49 = vld [vmem:[%s9551_s3 + $0x228] ss:$16 sps:$4 sm:$0xff]  }
 0x11b   : > { %817 = vst [vmem:[#allocation2 + $0xc] sm:$0x1] %v816_v51  ;;  %810 = vst.msk [vmem:[#allocation2 + $0x4] sm:$0xf] %vm808_vm3, %v6943_v50  ;;  %v7267_v50 = vld [vmem:[%s9551_s3 + $0x244] ss:$16 sps:$4 sm:$0xff]  }
 0x11c   : > { %v7270_v51 = vld [vmem:[%s9551_s3 + $0x24c] ss:$16 sps:$4 sm:$0xff]  }
 0x120   : > { %v818_v52 = vld [vmem:[#allocation2] sm:$0x1] }
 0x121   : > { %v6077_v53 = vcombine.low %v818_v52, %v818_v52  ;;  %v7228_v23 = vld [vmem:[#allocation2] ss:$0 sps:$4 sm:$0x22]  }
 0x122   : > { %v1209_v27 = vrot.slane %v7228_v23, 1  ;;  %v1397_v40 = vshrl.u32 %v7228_v23, 16  ;;  %v7316_v23 = vld [vmem:[%s9551_s3 + $0x344] ss:$16 sps:$4 sm:$0xff]  }
 0x123   : > { %v856_v56 = vshrl.u32 %v6077_v53, 16  ;;  %v7268_v53 = vld [vmem:[%s9551_s3 + $0x248] ss:$16 sps:$4 sm:$0xff]  }
 0x124   : > { %v1399_v45 = vrot.slane %v1397_v40, 1  ;;  %v7336_v40 = vld [vmem:[%s9551_s3 + $0x3a8] ss:$16 sps:$4 sm:$0xff]  }
 0x125   : > { %6094 = vmatmul.mubr.msk.bf16.vlgmr.msra.gmra.mrb[8].mxu1 %vm634_vm0, %v856_v56  ;;  %6095 = vmatmul.mubr.msk.bf16.vlgmr.msra.gmra.mrb[12].mxu0 %vm634_vm0, %v856_v56  ;;  %v7271_v56 = vld [vmem:[%s9551_s3 + $0x260] ss:$16 sps:$4 sm:$0xff]  }
 0x126   : > { %1107 = vmatpush1.bf16.msra.mxu1 %v7179_v54  ;;  %1148 = vmatpush1.bf16.msra.mxu0 %v7182_v55  ;;  %v7273_v54 = vld [vmem:[%s9551_s3 + $0x264] ss:$16 sps:$4 sm:$0xff]   ;;  %v7276_v55 = vld [vmem:[%s9551_s3 + $0x26c] ss:$16 sps:$4 sm:$0xff]  }
 0x127   : > { %1108 = vmatprep.subr.bf16.mxu1 %v7188_v57  ;;  %1149 = vmatprep.subr.bf16.mxu0 %v7191_v58  ;;  %v7274_v57 = vld [vmem:[%s9551_s3 + $0x268] ss:$16 sps:$4 sm:$0xff]   ;;  %v7280_v58 = vld [vmem:[%s9551_s3 + $0x284] ss:$16 sps:$4 sm:$0xff]  }
 0x128   : > { %1138 = vmatprep.mubr.bf16.mxu1 %v7863_v0  ;;  %1179 = vmatprep.mubr.bf16.mxu0 %v7863_v0 }
 0x12a   : > { %1109 = vmatpush1.bf16.msra.mxu1 %v7186_v59  ;;  %1150 = vmatpush1.bf16.msra.mxu0 %v7189_v60  ;;  %v7277_v59 = vld [vmem:[#allocation2] ss:$0 sps:$4 sm:$0x44]   ;;  %v7283_v60 = vld [vmem:[%s9551_s3 + $0x28c] ss:$16 sps:$4 sm:$0xff]  }
 0x12b   : > { %1110 = vmatprep.subr.bf16.mxu1 %v7194_v61  ;;  %1151 = vmatprep.subr.bf16.mxu0 %v7197_v62  ;;  %v7278_v61 = vld [vmem:[%s9551_s3 + $0x280] ss:$16 sps:$4 sm:$0xff]   ;;  %v7281_v62 = vld [vmem:[%s9551_s3 + $0x288] ss:$16 sps:$4 sm:$0xff]  }
 0x12e   : > { %1111 = vmatpush1.bf16.msra.mxu1 %v7192_v63  ;;  %1152 = vmatpush1.bf16.msra.mxu0 %v7195_v1  ;;  %v1590_v63 = vrot.slane %v7277_v59, 2  ;;  %v7286_v1 = vld [vmem:[%s9551_s3 + $0x2a4] ss:$16 sps:$4 sm:$0xff]  }
 0x12f   : > { %1112 = vmatprep.subr.bf16.mxu1 %v7200_v2  ;;  %1153 = vmatprep.subr.bf16.mxu0 %v7203_v3  ;;  %v7289_v2 = vld [vmem:[%s9551_s3 + $0x2ac] ss:$16 sps:$4 sm:$0xff]   ;;  %v7284_v3 = vld [vmem:[%s9551_s3 + $0x2a0] ss:$16 sps:$4 sm:$0xff]  }
 0x132   : > { %1113 = vmatpush1.bf16.msra.mxu1 %v7198_v4  ;;  %1154 = vmatpush1.bf16.msra.mxu0 %v7201_v5  ;;  %v7287_v4 = vld [vmem:[%s9551_s3 + $0x2a8] ss:$16 sps:$4 sm:$0xff]   ;;  %v7292_v5 = vld [vmem:[%s9551_s3 + $0x2c4] ss:$16 sps:$4 sm:$0xff]  }
 0x133   : > { %1293 = vmatprep.subr.bf16.mxu1 %v7206_v6  ;;  %1334 = vmatprep.subr.bf16.mxu0 %v7209_v7  ;;  %v7295_v6 = vld [vmem:[%s9551_s3 + $0x2cc] ss:$16 sps:$4 sm:$0xff]   ;;  %v7290_v7 = vld [vmem:[%s9551_s3 + $0x2c0] ss:$16 sps:$4 sm:$0xff]  }
 0x135   : > { %6112 = vmatmul.mubr.msk.bf16.vlgmr.msra.gmra.mrb[12].mxu1 %vm634_vm0, %v818_v52  ;;  %6113 = vmatmul.mubr.msk.bf16.vlgmr.msra.gmra.mrb[16].mxu0 %vm634_vm0, %v818_v52  ;;  %v7265_v52 = vld [vmem:[%s9551_s3 + $0x240] ss:$16 sps:$4 sm:$0xff]  }
 0x136   : > { %1294 = vmatpush1.bf16.msra.mxu1 %v7204_v8  ;;  %1335 = vmatpush1.bf16.msra.mxu0 %v7207_v9  ;;  %v7293_v8 = vld [vmem:[%s9551_s3 + $0x2c8] ss:$16 sps:$4 sm:$0xff]   ;;  %v7298_v9 = vld [vmem:[%s9551_s3 + $0x2e4] ss:$16 sps:$4 sm:$0xff]  }
 0x137   : > { %1295 = vmatprep.subr.bf16.mxu1 %v7212_v10  ;;  %1336 = vmatprep.subr.bf16.mxu0 %v7215_v11  ;;  %v7301_v10 = vld [vmem:[%s9551_s3 + $0x2ec] ss:$16 sps:$4 sm:$0xff]   ;;  %v7296_v11 = vld [vmem:[%s9551_s3 + $0x2e0] ss:$16 sps:$4 sm:$0xff]  }
 0x138   : > { %1325 = vmatprep.mubr.bf16.mxu1 %v7863_v0  ;;  %1366 = vmatprep.mubr.bf16.mxu0 %v7863_v0 }
 0x13a   : > { %1296 = vmatpush1.bf16.msra.mxu1 %v7210_v12  ;;  %1337 = vmatpush1.bf16.msra.mxu0 %v7213_v13  ;;  %v7299_v12 = vld [vmem:[%s9551_s3 + $0x2e8] ss:$16 sps:$4 sm:$0xff]   ;;  %v1778_v13 = vshrl.u32 %v7277_v59, 16  ;;  %v7365_v59 = vld [vmem:[%s9551_s3 + $0x444] ss:$16 sps:$4 sm:$0xff]  }
 0x13b   : > { %1297 = vmatprep.subr.bf16.mxu1 %v7218_v14  ;;  %1338 = vmatprep.subr.bf16.mxu0 %v7221_v15  ;;  %v7304_v14 = vld [vmem:[%s9551_s3 + $0x304] ss:$16 sps:$4 sm:$0xff]   ;;  %v7307_v15 = vld [vmem:[%s9551_s3 + $0x30c] ss:$16 sps:$4 sm:$0xff]  }
 0x13e   : > { %1298 = vmatpush1.bf16.msra.mxu1 %v7216_v16  ;;  %1339 = vmatpush1.bf16.msra.mxu0 %v7219_v17  ;;  %v7302_v16 = vld [vmem:[%s9551_s3 + $0x300] ss:$16 sps:$4 sm:$0xff]   ;;  %v7305_v17 = vld [vmem:[%s9551_s3 + $0x308] ss:$16 sps:$4 sm:$0xff]  }
 0x13f   : > { %1299 = vmatprep.subr.bf16.mxu1 %v7224_v18  ;;  %1340 = vmatprep.subr.bf16.mxu0 %v7227_v19  ;;  %v1780_v18 = vrot.slane %v1778_v13, 2  ;;  %v7310_v19 = vld [vmem:[%s9551_s3 + $0x324] ss:$16 sps:$4 sm:$0xff]  }
 0x140   : > { %v7390_v13 = vld [vmem:[%s9551_s3 + $0x4c4] ss:$16 sps:$4 sm:$0xff]  }
 0x142   : > { %1300 = vmatpush1.bf16.msra.mxu1 %v7222_v20  ;;  %1341 = vmatpush1.bf16.msra.mxu0 %v7225_v21  ;;  %v7313_v20 = vld [vmem:[%s9551_s3 + $0x32c] ss:$16 sps:$4 sm:$0xff]   ;;  %v7308_v21 = vld [vmem:[%s9551_s3 + $0x320] ss:$16 sps:$4 sm:$0xff]  }
 0x143   : > { %1483 = vmatprep.subr.bf16.mxu1 %v7231_v22  ;;  %1524 = vmatprep.subr.bf16.mxu0 %v7234_v24  ;;  %v7311_v22 = vld [vmem:[%s9551_s3 + $0x328] ss:$16 sps:$4 sm:$0xff]   ;;  %v7319_v24 = vld [vmem:[%s9551_s3 + $0x34c] ss:$16 sps:$4 sm:$0xff]  }
 0x145   : > { %6147 = vmatmul.mubr.msk.bf16.vlgmr.msra.gmra.mrb[16].mxu1 %vm634_vm0, %v1209_v27  ;;  %6148 = vmatmul.mubr.msk.bf16.vlgmr.msra.gmra.mrb[20].mxu0 %vm634_vm0, %v1209_v27  ;;  %v7322_v27 = vld [vmem:[%s9551_s3 + $0x364] ss:$16 sps:$4 sm:$0xff]  }
 0x146   : > { %1484 = vmatpush1.bf16.msra.mxu1 %v7229_v25  ;;  %1525 = vmatpush1.bf16.msra.mxu0 %v7232_v26  ;;  %v7314_v25 = vld [vmem:[%s9551_s3 + $0x340] ss:$16 sps:$4 sm:$0xff]   ;;  %v7317_v26 = vld [vmem:[%s9551_s3 + $0x348] ss:$16 sps:$4 sm:$0xff]  }
 0x147   : > { %1485 = vmatprep.subr.bf16.mxu1 %v7237_v28  ;;  %1526 = vmatprep.subr.bf16.mxu0 %v7240_v29  ;;  %v7325_v28 = vld [vmem:[%s9551_s3 + $0x36c] ss:$16 sps:$4 sm:$0xff]   ;;  %v7320_v29 = vld [vmem:[%s9551_s3 + $0x360] ss:$16 sps:$4 sm:$0xff]  }
 0x148   : > { %1515 = vmatprep.mubr.bf16.mxu1 %v7863_v0  ;;  %1556 = vmatprep.mubr.bf16.mxu0 %v7863_v0 }
 0x14a   : > { %1486 = vmatpush1.bf16.msra.mxu1 %v7235_v30  ;;  %1527 = vmatpush1.bf16.msra.mxu0 %v7238_v31  ;;  %v7323_v30 = vld [vmem:[%s9551_s3 + $0x368] ss:$16 sps:$4 sm:$0xff]   ;;  %v7329_v31 = vld [vmem:[%s9551_s3 + $0x384] ss:$16 sps:$4 sm:$0xff]  }
 0x14b   : > { %1487 = vmatprep.subr.bf16.mxu1 %v7243_v32  ;;  %1528 = vmatprep.subr.bf16.mxu0 %v7246_v33  ;;  %v7326_v32 = vld [vmem:[#allocation2] ss:$0 sps:$4 sm:$0x88]   ;;  %v7332_v33 = vld [vmem:[%s9551_s3 + $0x38c] ss:$16 sps:$4 sm:$0xff]  }
 0x14e   : > { %1488 = vmatpush1.bf16.msra.mxu1 %v7241_v34  ;;  %1529 = vmatpush1.bf16.msra.mxu0 %v7244_v35  ;;  %v7327_v34 = vld [vmem:[%s9551_s3 + $0x380] ss:$16 sps:$4 sm:$0xff]   ;;  %v7330_v35 = vld [vmem:[%s9551_s3 + $0x388] ss:$16 sps:$4 sm:$0xff]  }
 0x14f   : > { %1489 = vmatprep.subr.bf16.mxu1 %v7249_v36  ;;  %1530 = vmatprep.subr.bf16.mxu0 %v7252_v37  ;;  %v1971_v36 = vrot.slane %v7326_v32, 3  ;;  %v7335_v37 = vld [vmem:[%s9551_s3 + $0x3a4] ss:$16 sps:$4 sm:$0xff]  }
 0x152   : > { %1490 = vmatpush1.bf16.msra.mxu1 %v7247_v38  ;;  %1531 = vmatpush1.bf16.msra.mxu0 %v7250_v39  ;;  %v7338_v38 = vld [vmem:[%s9551_s3 + $0x3ac] ss:$16 sps:$4 sm:$0xff]   ;;  %v7333_v39 = vld [vmem:[%s9551_s3 + $0x3a0] ss:$16 sps:$4 sm:$0xff]  }
 0x153   : > { %1674 = vmatprep.subr.bf16.mxu1 %v7255_v41  ;;  %1715 = vmatprep.subr.bf16.mxu0 %v7258_v42  ;;  %v7341_v41 = vld [vmem:[%s9551_s3 + $0x3c4] ss:$16 sps:$4 sm:$0xff]   ;;  %v7344_v42 = vld [vmem:[%s9551_s3 + $0x3cc] ss:$16 sps:$4 sm:$0xff]  }
 0x155   : > { %6181 = vmatmul.mubr.msk.bf16.vlgmr.msra.gmra.mrb[20].mxu1 %vm634_vm0, %v1399_v45  ;;  %6182 = vmatmul.mubr.msk.bf16.vlgmr.msra.gmra.mrb[24].mxu0 %vm634_vm0, %v1399_v45  ;;  %v7347_v45 = vld [vmem:[%s9551_s3 + $0x3e4] ss:$16 sps:$4 sm:$0xff]  }
 0x156   : > { %1675 = vmatpush1.bf16.msra.mxu1 %v7253_v43  ;;  %1716 = vmatpush1.bf16.msra.mxu0 %v7256_v44  ;;  %v7339_v43 = vld [vmem:[%s9551_s3 + $0x3c0] ss:$16 sps:$4 sm:$0xff]   ;;  %v7342_v44 = vld [vmem:[%s9551_s3 + $0x3c8] ss:$16 sps:$4 sm:$0xff]  }
 0x157   : > { %1676 = vmatprep.subr.bf16.mxu1 %v7261_v46  ;;  %1717 = vmatprep.subr.bf16.mxu0 %v7264_v47  ;;  %v7350_v46 = vld [vmem:[%s9551_s3 + $0x3ec] ss:$16 sps:$4 sm:$0xff]   ;;  %v7345_v47 = vld [vmem:[%s9551_s3 + $0x3e0] ss:$16 sps:$4 sm:$0xff]  }
 0x158   : > { %1706 = vmatprep.mubr.bf16.mxu1 %v7863_v0  ;;  %1747 = vmatprep.mubr.bf16.mxu0 %v7863_v0 }
 0x15a   : > { %1677 = vmatpush1.bf16.msra.mxu1 %v7259_v48  ;;  %1718 = vmatpush1.bf16.msra.mxu0 %v7262_v49  ;;  %v7348_v48 = vld [vmem:[%s9551_s3 + $0x3e8] ss:$16 sps:$4 sm:$0xff]   ;;  %v2159_v49 = vshrl.u32 %v7326_v32, 16  ;;  %v7417_v32 = vld [vmem:[%s9551_s3 + $0x54c] ss:$16 sps:$4 sm:$0xff]  }
 0x15b   : > { %1678 = vmatprep.subr.bf16.mxu1 %v7267_v50  ;;  %1719 = vmatprep.subr.bf16.mxu0 %v7270_v51  ;;  %v7353_v50 = vld [vmem:[%s9551_s3 + $0x404] ss:$16 sps:$4 sm:$0xff]   ;;  %v7356_v51 = vld [vmem:[%s9551_s3 + $0x40c] ss:$16 sps:$4 sm:$0xff]  }
 0x15e   : > { %1679 = vmatpush1.bf16.msra.mxu1 %v7265_v52  ;;  %1720 = vmatpush1.bf16.msra.mxu0 %v7268_v53  ;;  %v7351_v52 = vld [vmem:[%s9551_s3 + $0x400] ss:$16 sps:$4 sm:$0xff]   ;;  %v7354_v53 = vld [vmem:[%s9551_s3 + $0x408] ss:$16 sps:$4 sm:$0xff]  }
 0x15f   : > { %1680 = vmatprep.subr.bf16.mxu1 %v7273_v54  ;;  %1721 = vmatprep.subr.bf16.mxu0 %v7276_v55  ;;  %v2161_v54 = vrot.slane %v2159_v49, 3  ;;  %v7359_v55 = vld [vmem:[%s9551_s3 + $0x424] ss:$16 sps:$4 sm:$0xff]  }
 0x160   : > { %v7439_v49 = vld [vmem:[%s9551_s3 + $0x5c4] ss:$16 sps:$4 sm:$0xff]  }
 0x162   : > { %1681 = vmatpush1.bf16.msra.mxu1 %v7271_v56  ;;  %1722 = vmatpush1.bf16.msra.mxu0 %v7274_v57  ;;  %v7362_v56 = vld [vmem:[%s9551_s3 + $0x42c] ss:$16 sps:$4 sm:$0xff]   ;;  %v7357_v57 = vld [vmem:[%s9551_s3 + $0x420] ss:$16 sps:$4 sm:$0xff]  }
 0x163   : > { %1864 = vmatprep.subr.bf16.mxu1 %v7280_v58  ;;  %1905 = vmatprep.subr.bf16.mxu0 %v7283_v60  ;;  %v7360_v58 = vld [vmem:[%s9551_s3 + $0x428] ss:$16 sps:$4 sm:$0xff]   ;;  %v7368_v60 = vld [vmem:[%s9551_s3 + $0x44c] ss:$16 sps:$4 sm:$0xff]  }
 0x165   : > { %6216 = vmatmul.mubr.msk.bf16.vlgmr.msra.gmra.mrb[24].mxu1 %vm634_vm0, %v1590_v63  ;;  %6217 = vmatmul.mubr.msk.bf16.vlgmr.msra.gmra.mrb[28].mxu0 %vm634_vm0, %v1590_v63  ;;  %v7371_v63 = vld [vmem:[%s9551_s3 + $0x464] ss:$16 sps:$4 sm:$0xff]  }
 0x166   : > { %1865 = vmatpush1.bf16.msra.mxu1 %v7278_v61  ;;  %1906 = vmatpush1.bf16.msra.mxu0 %v7281_v62  ;;  %v7363_v61 = vld [vmem:[%s9551_s3 + $0x440] ss:$16 sps:$4 sm:$0xff]   ;;  %v7366_v62 = vld [vmem:[%s9551_s3 + $0x448] ss:$16 sps:$4 sm:$0xff]  }
 0x167   : > { %1866 = vmatprep.subr.bf16.mxu1 %v7286_v1  ;;  %1907 = vmatprep.subr.bf16.mxu0 %v7289_v2  ;;  %v7374_v1 = vld [vmem:[%s9551_s3 + $0x46c] ss:$16 sps:$4 sm:$0xff]   ;;  %v7369_v2 = vld [vmem:[%s9551_s3 + $0x460] ss:$16 sps:$4 sm:$0xff]  }
 0x168   : > { %1896 = vmatprep.mubr.bf16.mxu1 %v7863_v0  ;;  %1937 = vmatprep.mubr.bf16.mxu0 %v7863_v0 }
 0x16a   : > { %1867 = vmatpush1.bf16.msra.mxu1 %v7284_v3  ;;  %1908 = vmatpush1.bf16.msra.mxu0 %v7287_v4  ;;  %v7372_v3 = vld [vmem:[%s9551_s3 + $0x468] ss:$16 sps:$4 sm:$0xff]   ;;  %v7378_v4 = vld [vmem:[%s9551_s3 + $0x484] ss:$16 sps:$4 sm:$0xff]  }
 0x16b   : > { %1868 = vmatprep.subr.bf16.mxu1 %v7292_v5  ;;  %1909 = vmatprep.subr.bf16.mxu0 %v7295_v6  ;;  %v7381_v5 = vld [vmem:[%s9551_s3 + $0x48c] ss:$16 sps:$4 sm:$0xff]   ;;  %v7376_v6 = vld [vmem:[%s9551_s3 + $0x480] ss:$16 sps:$4 sm:$0xff]  }
 0x16e   : > { %1869 = vmatpush1.bf16.msra.mxu1 %v7290_v7  ;;  %1910 = vmatpush1.bf16.msra.mxu0 %v7293_v8  ;;  %v7379_v7 = vld [vmem:[%s9551_s3 + $0x488] ss:$16 sps:$4 sm:$0xff]   ;;  %v7384_v8 = vld [vmem:[%s9551_s3 + $0x4a4] ss:$16 sps:$4 sm:$0xff]  }
 0x16f   : > { %1870 = vmatprep.subr.bf16.mxu1 %v7298_v9  ;;  %1911 = vmatprep.subr.bf16.mxu0 %v7301_v10  ;;  %v7387_v9 = vld [vmem:[%s9551_s3 + $0x4ac] ss:$16 sps:$4 sm:$0xff]   ;;  %v2331_v10 = vld [vmem:[#allocation2 + $0x4] sm:$0x1] }
 0x172   : > { %1871 = vmatpush1.bf16.msra.mxu1 %v7296_v11  ;;  %1912 = vmatpush1.bf16.msra.mxu0 %v7299_v12  ;;  %v7382_v11 = vld [vmem:[%s9551_s3 + $0x4a0] ss:$16 sps:$4 sm:$0xff]   ;;  %v7385_v12 = vld [vmem:[%s9551_s3 + $0x4a8] ss:$16 sps:$4 sm:$0xff]  }
 0x173   : > { %2055 = vmatprep.subr.bf16.mxu1 %v7304_v14  ;;  %2096 = vmatprep.subr.bf16.mxu0 %v7307_v15  ;;  %v7393_v14 = vld [vmem:[%s9551_s3 + $0x4cc] ss:$16 sps:$4 sm:$0xff]   ;;  %v7388_v15 = vld [vmem:[%s9551_s3 + $0x4c0] ss:$16 sps:$4 sm:$0xff]  }
 0x175   : > { %6250 = vmatmul.mubr.msk.bf16.vlgmr.msra.gmra.mrb[28].mxu1 %vm634_vm0, %v1780_v18  ;;  %6251 = vmatmul.mubr.msk.bf16.vlgmr.msra.gmra.mrb[32].mxu0 %vm634_vm0, %v1780_v18  ;;  %v7399_v18 = vld [vmem:[%s9551_s3 + $0x4ec] ss:$16 sps:$4 sm:$0xff]  }
 0x176   : > { %2056 = vmatpush1.bf16.msra.mxu1 %v7302_v16  ;;  %2097 = vmatpush1.bf16.msra.mxu0 %v7305_v17  ;;  %v7391_v16 = vld [vmem:[%s9551_s3 + $0x4c8] ss:$16 sps:$4 sm:$0xff]   ;;  %v7396_v17 = vld [vmem:[%s9551_s3 + $0x4e4] ss:$16 sps:$4 sm:$0xff]  }
 0x177   : > { %2057 = vmatprep.subr.bf16.mxu1 %v7310_v19  ;;  %2098 = vmatprep.subr.bf16.mxu0 %v7313_v20  ;;  %v7394_v19 = vld [vmem:[%s9551_s3 + $0x4e0] ss:$16 sps:$4 sm:$0xff]   ;;  %v7397_v20 = vld [vmem:[%s9551_s3 + $0x4e8] ss:$16 sps:$4 sm:$0xff]  }
 0x178   : > { %2087 = vmatprep.mubr.bf16.mxu1 %v7863_v0  ;;  %2128 = vmatprep.mubr.bf16.mxu0 %v7863_v0 }
 0x17a   : > { %2058 = vmatpush1.bf16.msra.mxu1 %v7308_v21  ;;  %2099 = vmatpush1.bf16.msra.mxu0 %v7311_v22  ;;  %v6371_v21 = vcombine.low %v2331_v10, %v2331_v10  ;;  %v7402_v22 = vld [vmem:[%s9551_s3 + $0x504] ss:$16 sps:$4 sm:$0xff]  }
 0x17b   : > { %2059 = vmatprep.subr.bf16.mxu1 %v7316_v23  ;;  %2100 = vmatprep.subr.bf16.mxu0 %v7319_v24  ;;  %v7405_v23 = vld [vmem:[%s9551_s3 + $0x50c] ss:$16 sps:$4 sm:$0xff]   ;;  %v7400_v24 = vld [vmem:[%s9551_s3 + $0x500] ss:$16 sps:$4 sm:$0xff]  }
 0x17e   : > { %2060 = vmatpush1.bf16.msra.mxu1 %v7314_v25  ;;  %2101 = vmatpush1.bf16.msra.mxu0 %v7317_v26  ;;  %v7403_v25 = vld [vmem:[%s9551_s3 + $0x508] ss:$16 sps:$4 sm:$0xff]   ;;  %v2539_v26 = vshrl.u32 %v6371_v21, 16 }
 0x17f   : > { %2061 = vmatprep.subr.bf16.mxu1 %v7322_v27  ;;  %2102 = vmatprep.subr.bf16.mxu0 %v7325_v28  ;;  %v7408_v27 = vld [vmem:[%s9551_s3 + $0x524] ss:$16 sps:$4 sm:$0xff]   ;;  %v7411_v28 = vld [vmem:[%s9551_s3 + $0x52c] ss:$16 sps:$4 sm:$0xff]   ;;  %v7483_v21 = vld [vmem:[%s9551_s3 + $0x6a8] ss:$16 sps:$4 sm:$0xff]  }
 0x182   : > { %2062 = vmatpush1.bf16.msra.mxu1 %v7320_v29  ;;  %2103 = vmatpush1.bf16.msra.mxu0 %v7323_v30  ;;  %v7406_v29 = vld [vmem:[%s9551_s3 + $0x520] ss:$16 sps:$4 sm:$0xff]   ;;  %v7409_v30 = vld [vmem:[%s9551_s3 + $0x528] ss:$16 sps:$4 sm:$0xff]  }
 0x183   : > { %2245 = vmatprep.subr.bf16.mxu1 %v7329_v31  ;;  %2286 = vmatprep.subr.bf16.mxu0 %v7332_v33  ;;  %v7414_v31 = vld [vmem:[%s9551_s3 + $0x544] ss:$16 sps:$4 sm:$0xff]   ;;  %v7412_v33 = vld [vmem:[%s9551_s3 + $0x540] ss:$16 sps:$4 sm:$0xff]  }
 0x185   : > { %6285 = vmatmul.mubr.msk.bf16.vlgmr.msra.gmra.mrb[32].mxu1 %vm634_vm0, %v1971_v36  ;;  %6286 = vmatmul.mubr.msk.bf16.vlgmr.msra.gmra.mrb[36].mxu0 %vm634_vm0, %v1971_v36  ;;  %v7423_v36 = vld [vmem:[%s9551_s3 + $0x56c] ss:$16 sps:$4 sm:$0xff]  }
 0x186   : > { %2246 = vmatpush1.bf16.msra.mxu1 %v7327_v34  ;;  %2287 = vmatpush1.bf16.msra.mxu0 %v7330_v35  ;;  %v7415_v34 = vld [vmem:[%s9551_s3 + $0x548] ss:$16 sps:$4 sm:$0xff]   ;;  %v7420_v35 = vld [vmem:[%s9551_s3 + $0x564] ss:$16 sps:$4 sm:$0xff]  }
 0x187   : > { %2247 = vmatprep.subr.bf16.mxu1 %v7335_v37  ;;  %2288 = vmatprep.subr.bf16.mxu0 %v7338_v38  ;;  %v7424_v37 = vld [vmem:[#allocation2 + $0x4] ss:$0 sps:$4 sm:$0x22]   ;;  %v7418_v38 = vld [vmem:[%s9551_s3 + $0x560] ss:$16 sps:$4 sm:$0xff]  }
 0x188   : > { %2277 = vmatprep.mubr.bf16.mxu1 %v7863_v0  ;;  %2318 = vmatprep.mubr.bf16.mxu0 %v7863_v0 }
 0x18a   : > { %2248 = vmatpush1.bf16.msra.mxu1 %v7333_v39  ;;  %2289 = vmatpush1.bf16.msra.mxu0 %v7336_v40  ;;  %v7421_v39 = vld [vmem:[%s9551_s3 + $0x568] ss:$16 sps:$4 sm:$0xff]   ;;  %v7427_v40 = vld [vmem:[%s9551_s3 + $0x584] ss:$16 sps:$4 sm:$0xff]  }
 0x18b   : > { %2249 = vmatprep.subr.bf16.mxu1 %v7341_v41  ;;  %2290 = vmatprep.subr.bf16.mxu0 %v7344_v42  ;;  %v7430_v41 = vld [vmem:[%s9551_s3 + $0x58c] ss:$16 sps:$4 sm:$0xff]   ;;  %v7425_v42 = vld [vmem:[%s9551_s3 + $0x580] ss:$16 sps:$4 sm:$0xff]  }
 0x18e   : > { %2250 = vmatpush1.bf16.msra.mxu1 %v7339_v43  ;;  %2291 = vmatpush1.bf16.msra.mxu0 %v7342_v44  ;;  %v7428_v43 = vld [vmem:[%s9551_s3 + $0x588] ss:$16 sps:$4 sm:$0xff]   ;;  %v2731_v44 = vrot.slane %v7424_v37, 1 }
 0x18f   : > { %2251 = vmatprep.subr.bf16.mxu1 %v7347_v45  ;;  %2292 = vmatprep.subr.bf16.mxu0 %v7350_v46  ;;  %v7433_v45 = vld [vmem:[%s9551_s3 + $0x5a4] ss:$16 sps:$4 sm:$0xff]   ;;  %v7436_v46 = vld [vmem:[%s9551_s3 + $0x5ac] ss:$16 sps:$4 sm:$0xff]  }
 0x192   : > { %2252 = vmatpush1.bf16.msra.mxu1 %v7345_v47  ;;  %2293 = vmatpush1.bf16.msra.mxu0 %v7348_v48  ;;  %v7431_v47 = vld [vmem:[%s9551_s3 + $0x5a0] ss:$16 sps:$4 sm:$0xff]   ;;  %v7434_v48 = vld [vmem:[%s9551_s3 + $0x5a8] ss:$16 sps:$4 sm:$0xff]  }
 0x193   : > { %2432 = vmatprep.subr.bf16.mxu1 %v7353_v50  ;;  %2473 = vmatprep.subr.bf16.mxu0 %v7356_v51  ;;  %v7442_v50 = vld [vmem:[%s9551_s3 + $0x5cc] ss:$16 sps:$4 sm:$0xff]   ;;  %v7437_v51 = vld [vmem:[%s9551_s3 + $0x5c0] ss:$16 sps:$4 sm:$0xff]  }
 0x195   : > { %6319 = vmatmul.mubr.msk.bf16.vlgmr.msra.gmra.mrb[36].mxu1 %vm634_vm0, %v2161_v54  ;;  %6320 = vmatmul.mubr.msk.bf16.vlgmr.msra.gmra.mrb[40].mxu0 %vm634_vm0, %v2161_v54  ;;  %v7448_v54 = vld [vmem:[%s9551_s3 + $0x5ec] ss:$16 sps:$4 sm:$0xff]  }
 0x196   : > { %2433 = vmatpush1.bf16.msra.mxu1 %v7351_v52  ;;  %2474 = vmatpush1.bf16.msra.mxu0 %v7354_v53  ;;  %v7440_v52 = vld [vmem:[%s9551_s3 + $0x5c8] ss:$16 sps:$4 sm:$0xff]   ;;  %v7445_v53 = vld [vmem:[%s9551_s3 + $0x5e4] ss:$16 sps:$4 sm:$0xff]  }
 0x197   : > { %2434 = vmatprep.subr.bf16.mxu1 %v7359_v55  ;;  %2475 = vmatprep.subr.bf16.mxu0 %v7362_v56  ;;  %v7443_v55 = vld [vmem:[%s9551_s3 + $0x5e0] ss:$16 sps:$4 sm:$0xff]   ;;  %v7446_v56 = vld [vmem:[%s9551_s3 + $0x5e8] ss:$16 sps:$4 sm:$0xff]  }
 0x198   : > { %2464 = vmatprep.mubr.bf16.mxu1 %v7863_v0  ;;  %2505 = vmatprep.mubr.bf16.mxu0 %v7863_v0 }
 0x19a   : > { %2435 = vmatpush1.bf16.msra.mxu1 %v7357_v57  ;;  %2476 = vmatpush1.bf16.msra.mxu0 %v7360_v58  ;;  %v2919_v57 = vshrl.u32 %v7424_v37, 16  ;;  %v7451_v58 = vld [vmem:[%s9551_s3 + $0x604] ss:$16 sps:$4 sm:$0xff]   ;;  %v7509_v37 = vld [vmem:[%s9551_s3 + $0x72c] ss:$16 sps:$4 sm:$0xff]  }
 0x19b   : > { %2436 = vmatprep.subr.bf16.mxu1 %v7365_v59  ;;  %2477 = vmatprep.subr.bf16.mxu0 %v7368_v60  ;;  %v7454_v59 = vld [vmem:[%s9551_s3 + $0x60c] ss:$16 sps:$4 sm:$0xff]   ;;  %v7449_v60 = vld [vmem:[%s9551_s3 + $0x600] ss:$16 sps:$4 sm:$0xff]  }
 0x19e   : > { %2437 = vmatpush1.bf16.msra.mxu1 %v7363_v61  ;;  %2478 = vmatpush1.bf16.msra.mxu0 %v7366_v62  ;;  %v7452_v61 = vld [vmem:[%s9551_s3 + $0x608] ss:$16 sps:$4 sm:$0xff]   ;;  %v2921_v62 = vrot.slane %v2919_v57, 1  ;;  %v7525_v57 = vld [vmem:[%s9551_s3 + $0x784] ss:$16 sps:$4 sm:$0xff]  }
 0x19f   : > { %2438 = vmatprep.subr.bf16.mxu1 %v7371_v63  ;;  %2479 = vmatprep.subr.bf16.mxu0 %v7374_v1  ;;  %v7457_v63 = vld [vmem:[%s9551_s3 + $0x624] ss:$16 sps:$4 sm:$0xff]   ;;  %v7460_v1 = vld [vmem:[%s9551_s3 + $0x62c] ss:$16 sps:$4 sm:$0xff]  }
 0x1a2   : > { %2439 = vmatpush1.bf16.msra.mxu1 %v7369_v2  ;;  %2480 = vmatpush1.bf16.msra.mxu0 %v7372_v3  ;;  %v7455_v2 = vld [vmem:[%s9551_s3 + $0x620] ss:$16 sps:$4 sm:$0xff]   ;;  %v7458_v3 = vld [vmem:[%s9551_s3 + $0x628] ss:$16 sps:$4 sm:$0xff]  }
 0x1a3   : > { %2624 = vmatprep.subr.bf16.mxu1 %v7378_v4  ;;  %2665 = vmatprep.subr.bf16.mxu0 %v7381_v5  ;;  %v7463_v4 = vld [vmem:[%s9551_s3 + $0x644] ss:$16 sps:$4 sm:$0xff]   ;;  %v7466_v5 = vld [vmem:[%s9551_s3 + $0x64c] ss:$16 sps:$4 sm:$0xff]  }
 0x1a5   : > { %6353 = vmatmul.mubr.msk.bf16.vlgmr.msra.gmra.mrb[40].mxu1 %vm634_vm0, %v2331_v10  ;;  %6354 = vmatmul.mubr.msk.bf16.vlgmr.msra.gmra.mrb[44].mxu0 %vm634_vm0, %v2331_v10  ;;  %v7473_v10 = vld [vmem:[#allocation2 + $0x4] ss:$0 sps:$4 sm:$0x44]  }
 0x1a6   : > { %2625 = vmatpush1.bf16.msra.mxu1 %v7376_v6  ;;  %2666 = vmatpush1.bf16.msra.mxu0 %v7379_v7  ;;  %v7461_v6 = vld [vmem:[%s9551_s3 + $0x640] ss:$16 sps:$4 sm:$0xff]   ;;  %v7464_v7 = vld [vmem:[%s9551_s3 + $0x648] ss:$16 sps:$4 sm:$0xff]  }
 0x1a7   : > { %2626 = vmatprep.subr.bf16.mxu1 %v7384_v8  ;;  %2667 = vmatprep.subr.bf16.mxu0 %v7387_v9  ;;  %v7469_v8 = vld [vmem:[%s9551_s3 + $0x664] ss:$16 sps:$4 sm:$0xff]   ;;  %v7472_v9 = vld [vmem:[%s9551_s3 + $0x66c] ss:$16 sps:$4 sm:$0xff]  }
 0x1a8   : > { %2656 = vmatprep.mubr.bf16.mxu1 %v7863_v0  ;;  %2697 = vmatprep.mubr.bf16.mxu0 %v7863_v0 }
 0x1aa   : > { %2627 = vmatpush1.bf16.msra.mxu1 %v7382_v11  ;;  %2668 = vmatpush1.bf16.msra.mxu0 %v7385_v12  ;;  %v7467_v11 = vld [vmem:[%s9551_s3 + $0x660] ss:$16 sps:$4 sm:$0xff]   ;;  %v7470_v12 = vld [vmem:[%s9551_s3 + $0x668] ss:$16 sps:$4 sm:$0xff]  }
 0x1ab   : > { %2628 = vmatprep.subr.bf16.mxu1 %v7390_v13  ;;  %2669 = vmatprep.subr.bf16.mxu0 %v7393_v14  ;;  %v7476_v13 = vld [vmem:[%s9551_s3 + $0x684] ss:$16 sps:$4 sm:$0xff]   ;;  %v7479_v14 = vld [vmem:[%s9551_s3 + $0x68c] ss:$16 sps:$4 sm:$0xff]  }
 0x1ae   : > { %2629 = vmatpush1.bf16.msra.mxu1 %v7388_v15  ;;  %2670 = vmatpush1.bf16.msra.mxu0 %v7391_v16  ;;  %v7474_v15 = vld [vmem:[%s9551_s3 + $0x680] ss:$16 sps:$4 sm:$0xff]   ;;  %v7477_v16 = vld [vmem:[%s9551_s3 + $0x688] ss:$16 sps:$4 sm:$0xff]  }
 0x1af   : > { %2630 = vmatprep.subr.bf16.mxu1 %v7396_v17  ;;  %2671 = vmatprep.subr.bf16.mxu0 %v7399_v18  ;;  %v3112_v17 = vrot.slane %v7473_v10, 2  ;;  %v7482_v18 = vld [vmem:[%s9551_s3 + $0x6a4] ss:$16 sps:$4 sm:$0xff]  }
 0x1b2   : > { %2631 = vmatpush1.bf16.msra.mxu1 %v7394_v19  ;;  %2672 = vmatpush1.bf16.msra.mxu0 %v7397_v20  ;;  %v7485_v19 = vld [vmem:[%s9551_s3 + $0x6ac] ss:$16 sps:$4 sm:$0xff]   ;;  %v7480_v20 = vld [vmem:[%s9551_s3 + $0x6a0] ss:$16 sps:$4 sm:$0xff]  }
 0x1b3   : > { %2815 = vmatprep.subr.bf16.mxu1 %v7402_v22  ;;  %2856 = vmatprep.subr.bf16.mxu0 %v7405_v23  ;;  %v7488_v22 = vld [vmem:[%s9551_s3 + $0x6c4] ss:$16 sps:$4 sm:$0xff]   ;;  %v7491_v23 = vld [vmem:[%s9551_s3 + $0x6cc] ss:$16 sps:$4 sm:$0xff]  }
 0x1b5   : > { %6388 = vmatmul.mubr.msk.bf16.vlgmr.msra.gmra.mrb[44].mxu1 %vm634_vm0, %v2539_v26  ;;  %6389 = vmatmul.mubr.msk.bf16.vlgmr.msra.gmra.mrb[48].mxu0 %vm634_vm0, %v2539_v26  ;;  %v7494_v26 = vld [vmem:[%s9551_s3 + $0x6e4] ss:$16 sps:$4 sm:$0xff]  }
 0x1b6   : > { %2816 = vmatpush1.bf16.msra.mxu1 %v7400_v24  ;;  %2857 = vmatpush1.bf16.msra.mxu0 %v7403_v25  ;;  %v7486_v24 = vld [vmem:[%s9551_s3 + $0x6c0] ss:$16 sps:$4 sm:$0xff]   ;;  %v7489_v25 = vld [vmem:[%s9551_s3 + $0x6c8] ss:$16 sps:$4 sm:$0xff]  }
 0x1b7   : > { %2817 = vmatprep.subr.bf16.mxu1 %v7408_v27  ;;  %2858 = vmatprep.subr.bf16.mxu0 %v7411_v28  ;;  %v7497_v27 = vld [vmem:[%s9551_s3 + $0x6ec] ss:$16 sps:$4 sm:$0xff]   ;;  %v7492_v28 = vld [vmem:[%s9551_s3 + $0x6e0] ss:$16 sps:$4 sm:$0xff]  }
 0x1b8   : > { %2847 = vmatprep.mubr.bf16.mxu1 %v7863_v0  ;;  %2888 = vmatprep.mubr.bf16.mxu0 %v7863_v0 }
 0x1ba   : > { %2818 = vmatpush1.bf16.msra.mxu1 %v7406_v29  ;;  %2859 = vmatpush1.bf16.msra.mxu0 %v7409_v30  ;;  %v7495_v29 = vld [vmem:[%s9551_s3 + $0x6e8] ss:$16 sps:$4 sm:$0xff]   ;;  %v3300_v30 = vshrl.u32 %v7473_v10, 16 }
 0x1bb   : > { %2819 = vmatprep.subr.bf16.mxu1 %v7414_v31  ;;  %2860 = vmatprep.subr.bf16.mxu0 %v7417_v32  ;;  %v7500_v31 = vld [vmem:[%s9551_s3 + $0x704] ss:$16 sps:$4 sm:$0xff]   ;;  %v7503_v32 = vld [vmem:[%s9551_s3 + $0x70c] ss:$16 sps:$4 sm:$0xff]  }
 0x1be   : > { %2820 = vmatpush1.bf16.msra.mxu1 %v7412_v33  ;;  %2861 = vmatpush1.bf16.msra.mxu0 %v7415_v34  ;;  %v7498_v33 = vld [vmem:[%s9551_s3 + $0x700] ss:$16 sps:$4 sm:$0xff]   ;;  %v7501_v34 = vld [vmem:[%s9551_s3 + $0x708] ss:$16 sps:$4 sm:$0xff]  }
 0x1bf   : > { %2821 = vmatprep.subr.bf16.mxu1 %v7420_v35  ;;  %2862 = vmatprep.subr.bf16.mxu0 %v7423_v36  ;;  %v3302_v35 = vrot.slane %v3300_v30, 2  ;;  %v7506_v36 = vld [vmem:[%s9551_s3 + $0x724] ss:$16 sps:$4 sm:$0xff]   ;;  %v7558_v30 = vld [vmem:[%s9551_s3 + $0x82c] ss:$16 sps:$4 sm:$0xff]  }
 0x1c2   : > { %2822 = vmatpush1.bf16.msra.mxu1 %v7418_v38  ;;  %2863 = vmatpush1.bf16.msra.mxu0 %v7421_v39  ;;  %v7504_v38 = vld [vmem:[%s9551_s3 + $0x720] ss:$16 sps:$4 sm:$0xff]   ;;  %v7507_v39 = vld [vmem:[%s9551_s3 + $0x728] ss:$16 sps:$4 sm:$0xff]  }
 0x1c3   : > { %3005 = vmatprep.subr.bf16.mxu1 %v7427_v40  ;;  %3046 = vmatprep.subr.bf16.mxu0 %v7430_v41  ;;  %v7512_v40 = vld [vmem:[%s9551_s3 + $0x744] ss:$16 sps:$4 sm:$0xff]   ;;  %v7515_v41 = vld [vmem:[%s9551_s3 + $0x74c] ss:$16 sps:$4 sm:$0xff]  }
 0x1c5   : > { %6423 = vmatmul.mubr.msk.bf16.vlgmr.msra.gmra.mrb[48].mxu1 %vm634_vm0, %v2731_v44  ;;  %6424 = vmatmul.mubr.msk.bf16.vlgmr.msra.gmra.mrb[52].mxu0 %vm634_vm0, %v2731_v44 }
 0x1c6   : > { %3006 = vmatpush1.bf16.msra.mxu1 %v7425_v42  ;;  %3047 = vmatpush1.bf16.msra.mxu0 %v7428_v43 }
 0x1c7   : > { %3007 = vmatprep.subr.bf16.mxu1 %v7433_v45  ;;  %3048 = vmatprep.subr.bf16.mxu0 %v7436_v46 }
 0x1c8   : > { %3037 = vmatprep.mubr.bf16.mxu1 %v7863_v0  ;;  %3078 = vmatprep.mubr.bf16.mxu0 %v7863_v0 }
 0x1ca   : > { %3008 = vmatpush1.bf16.msra.mxu1 %v7431_v47  ;;  %3049 = vmatpush1.bf16.msra.mxu0 %v7434_v48  ;;  %v7510_v48 = vld [vmem:[%s9551_s3 + $0x740] ss:$16 sps:$4 sm:$0xff]  }
 0x1cb   : > { %3009 = vmatprep.subr.bf16.mxu1 %v7439_v49  ;;  %3050 = vmatprep.subr.bf16.mxu0 %v7442_v50  ;;  %v7513_v49 = vld [vmem:[%s9551_s3 + $0x748] ss:$16 sps:$4 sm:$0xff]  }
 0x1ce   : > { %3010 = vmatpush1.bf16.msra.mxu1 %v7437_v51  ;;  %3051 = vmatpush1.bf16.msra.mxu0 %v7440_v52  ;;  %v7518_v52 = vld [vmem:[%s9551_s3 + $0x764] ss:$16 sps:$4 sm:$0xff]  }
 0x1cf   : > { %3011 = vmatprep.subr.bf16.mxu1 %v7445_v53  ;;  %3052 = vmatprep.subr.bf16.mxu0 %v7448_v54  ;;  %v7521_v53 = vld [vmem:[%s9551_s3 + $0x76c] ss:$16 sps:$4 sm:$0xff]   ;;  %v8855_v54 = vld [vmem:[#allocation2 + $0x4] ss:$0 sps:$4 sm:$0x88]  }
 0x1d2   : > { %3012 = vmatpush1.bf16.msra.mxu1 %v7443_v55  ;;  %3053 = vmatpush1.bf16.msra.mxu0 %v7446_v56  ;;  %v7516_v55 = vld [vmem:[%s9551_s3 + $0x760] ss:$16 sps:$4 sm:$0xff]   ;;  %v7519_v56 = vld [vmem:[%s9551_s3 + $0x768] ss:$16 sps:$4 sm:$0xff]  }
 0x1d3   : > { %3196 = vmatprep.subr.bf16.mxu1 %v7451_v58  ;;  %3237 = vmatprep.subr.bf16.mxu0 %v7454_v59  ;;  %v7528_v58 = vld [vmem:[%s9551_s3 + $0x78c] ss:$16 sps:$4 sm:$0xff]   ;;  %v7523_v59 = vld [vmem:[%s9551_s3 + $0x780] ss:$16 sps:$4 sm:$0xff]  }
 0x1d5   : > { %6457 = vmatmul.mubr.msk.bf16.vlgmr.msra.gmra.mrb[52].mxu1 %vm634_vm0, %v2921_v62  ;;  %6458 = vmatmul.mubr.msk.bf16.vlgmr.msra.gmra.mrb[56].mxu0 %vm634_vm0, %v2921_v62  ;;  %v7531_v62 = vld [vmem:[%s9551_s3 + $0x7a4] ss:$16 sps:$4 sm:$0xff]  }
 0x1d6   : > { %3197 = vmatpush1.bf16.msra.mxu1 %v7449_v60  ;;  %3238 = vmatpush1.bf16.msra.mxu0 %v7452_v61  ;;  %v7526_v60 = vld [vmem:[%s9551_s3 + $0x788] ss:$16 sps:$4 sm:$0xff]   ;;  %v3493_v61 = vrot.slane %v8855_v54, 3 }
 0x1d7   : > { %3198 = vmatprep.subr.bf16.mxu1 %v7457_v63  ;;  %3239 = vmatprep.subr.bf16.mxu0 %v7460_v1  ;;  %v7534_v63 = vld [vmem:[%s9551_s3 + $0x7ac] ss:$16 sps:$4 sm:$0xff]   ;;  %v7529_v1 = vld [vmem:[%s9551_s3 + $0x7a0] ss:$16 sps:$4 sm:$0xff]  }
 0x1d8   : > { %3228 = vmatprep.mubr.bf16.mxu1 %v7863_v0  ;;  %3269 = vmatprep.mubr.bf16.mxu0 %v7863_v0 }
 0x1da   : > { %3199 = vmatpush1.bf16.msra.mxu1 %v7455_v2  ;;  %3240 = vmatpush1.bf16.msra.mxu0 %v7458_v3  ;;  %v7532_v2 = vld [vmem:[%s9551_s3 + $0x7a8] ss:$16 sps:$4 sm:$0xff]   ;;  %v7537_v3 = vld [vmem:[%s9551_s3 + $0x7c4] ss:$16 sps:$4 sm:$0xff]  }
 0x1db   : > { %3200 = vmatprep.subr.bf16.mxu1 %v7463_v4  ;;  %3241 = vmatprep.subr.bf16.mxu0 %v7466_v5  ;;  %v7540_v4 = vld [vmem:[%s9551_s3 + $0x7cc] ss:$16 sps:$4 sm:$0xff]  }
 0x1de   : > { %3201 = vmatpush1.bf16.msra.mxu1 %v7461_v6  ;;  %3242 = vmatpush1.bf16.msra.mxu0 %v7464_v7 }
 0x1df   : > { %3202 = vmatprep.subr.bf16.mxu1 %v7469_v8  ;;  %3243 = vmatprep.subr.bf16.mxu0 %v7472_v9 }
 0x1e2   : > { %3203 = vmatpush1.bf16.msra.mxu1 %v7467_v11  ;;  %3244 = vmatpush1.bf16.msra.mxu0 %v7470_v12 }
 0x1e3   : > { %3386 = vmatprep.subr.bf16.mxu1 %v7476_v13  ;;  %3427 = vmatprep.subr.bf16.mxu0 %v7479_v14 }
 0x1e5   : > { %6492 = vmatmul.mubr.msk.bf16.vlgmr.msra.gmra.mrb[56].mxu1 %vm634_vm0, %v3112_v17  ;;  %6493 = vmatmul.mubr.msk.bf16.vlgmr.msra.gmra.mrb[60].mxu0 %vm634_vm0, %v3112_v17 }
 0x1e6   : > { %3387 = vmatpush1.bf16.msra.mxu1 %v7474_v15  ;;  %3428 = vmatpush1.bf16.msra.mxu0 %v7477_v16  ;;  %v7535_v15 = vld [vmem:[%s9551_s3 + $0x7c0] ss:$16 sps:$4 sm:$0xff]   ;;  %v7538_v16 = vld [vmem:[%s9551_s3 + $0x7c8] ss:$16 sps:$4 sm:$0xff]  }
 0x1e7   : > { %3388 = vmatprep.subr.bf16.mxu1 %v7482_v18  ;;  %3429 = vmatprep.subr.bf16.mxu0 %v7485_v19  ;;  %v7543_v19 = vld [vmem:[%s9551_s3 + $0x7e4] ss:$16 sps:$4 sm:$0xff]  }
 0x1e8   : > { %3418 = vmatprep.mubr.bf16.mxu1 %v7863_v0  ;;  %3459 = vmatprep.mubr.bf16.mxu0 %v7863_v0 }
 0x1ea   : > { %3389 = vmatpush1.bf16.msra.mxu1 %v7480_v20  ;;  %3430 = vmatpush1.bf16.msra.mxu0 %v7483_v21  ;;  %v7546_v20 = vld [vmem:[%s9551_s3 + $0x7ec] ss:$16 sps:$4 sm:$0xff]   ;;  %v7541_v21 = vld [vmem:[%s9551_s3 + $0x7e0] ss:$16 sps:$4 sm:$0xff]  }
 0x1eb   : > { %3390 = vmatprep.subr.bf16.mxu1 %v7488_v22  ;;  %3431 = vmatprep.subr.bf16.mxu0 %v7491_v23  ;;  %v7544_v22 = vld [vmem:[%s9551_s3 + $0x7e8] ss:$16 sps:$4 sm:$0xff]   ;;  %v3681_v23 = vshrl.u32 %v8855_v54, 16  ;;  %v7577_v54 = vld [vmem:[%s9551_s3 + $0x88c] ss:$16 sps:$4 sm:$0xff]  }
 0x1ee   : > { %3391 = vmatpush1.bf16.msra.mxu1 %v7486_v24  ;;  %3432 = vmatpush1.bf16.msra.mxu0 %v7489_v25  ;;  %v7549_v24 = vld [vmem:[%s9551_s3 + $0x804] ss:$16 sps:$4 sm:$0xff]   ;;  %v7552_v25 = vld [vmem:[%s9551_s3 + $0x80c] ss:$16 sps:$4 sm:$0xff]  }
 0x1ef   : > { %3392 = vmatprep.subr.bf16.mxu1 %v7494_v26  ;;  %3433 = vmatprep.subr.bf16.mxu0 %v7497_v27  ;;  %v7547_v26 = vld [vmem:[%s9551_s3 + $0x800] ss:$16 sps:$4 sm:$0xff]   ;;  %v7550_v27 = vld [vmem:[%s9551_s3 + $0x808] ss:$16 sps:$4 sm:$0xff]  }
 0x1f2   : > { %3393 = vmatpush1.bf16.msra.mxu1 %v7492_v28  ;;  %3434 = vmatpush1.bf16.msra.mxu0 %v7495_v29  ;;  %v3683_v28 = vrot.slane %v3681_v23, 3  ;;  %v7555_v29 = vld [vmem:[%s9551_s3 + $0x824] ss:$16 sps:$4 sm:$0xff]   ;;  %v7599_v23 = vld [vmem:[%s9551_s3 + $0x908] ss:$16 sps:$4 sm:$0xff]  }
 0x1f3   : > { %3577 = vmatprep.subr.bf16.mxu1 %v7500_v31  ;;  %3618 = vmatprep.subr.bf16.mxu0 %v7503_v32  ;;  %v7553_v31 = vld [vmem:[%s9551_s3 + $0x820] ss:$16 sps:$4 sm:$0xff]   ;;  %v7556_v32 = vld [vmem:[%s9551_s3 + $0x828] ss:$16 sps:$4 sm:$0xff]  }
 0x1f5   : > { %6526 = vmatmul.mubr.msk.bf16.vlgmr.msra.gmra.mrb[60].mxu1 %vm634_vm0, %v3302_v35  ;;  %6527 = vmatmul.mubr.msk.bf16.vlgmr.msra.gmra.mrb[64].mxu0 %vm634_vm0, %v3302_v35 }
 0x1f6   : > { %3578 = vmatpush1.bf16.msra.mxu1 %v7498_v33  ;;  %3619 = vmatpush1.bf16.msra.mxu0 %v7501_v34  ;;  %v7561_v33 = vld [vmem:[%s9551_s3 + $0x844] ss:$16 sps:$4 sm:$0xff]   ;;  %v7564_v34 = vld [vmem:[%s9551_s3 + $0x84c] ss:$16 sps:$4 sm:$0xff]  }
 0x1f7   : > { %3579 = vmatprep.subr.bf16.mxu1 %v7506_v36  ;;  %3620 = vmatprep.subr.bf16.mxu0 %v7509_v37 }
 0x1f8   : > { %v975_v42 = vpop.f32.mrb[8].mxu1  ;;  %v1016_v43 = vpop.f32.mrb[12].mxu0  ;;  %3609 = vmatprep.mubr.bf16.mxu1 %v7863_v0  ;;  %3650 = vmatprep.mubr.bf16.mxu0 %v7863_v0 }
 0x1f9   : > { %v977_v44 = vpop.f32.mrb[9].mxu1  ;;  %v1018_v45 = vpop.f32.mrb[13].mxu0 }
 0x1fa   : > { %3580 = vmatpush1.bf16.msra.mxu1 %v7504_v38  ;;  %3621 = vmatpush1.bf16.msra.mxu0 %v7507_v39  ;;  %v979_v46 = vpop.f32.mrb[10].mxu1  ;;  %v1020_v47 = vpop.f32.mrb[14].mxu0 }
 0x1fb   : > { %v980_v50 = vpop.f32.mrb[11].mxu1  ;;  %v1021_v51 = vpop.f32.mrb[15].mxu0  ;;  %3581 = vmatprep.subr.bf16.mxu1 %v7512_v40  ;;  %3622 = vmatprep.subr.bf16.mxu0 %v7515_v41  ;;  %v7562_v46 = vld [vmem:[%s9551_s3 + $0x848] ss:$16 sps:$4 sm:$0xff]  }
 0x1fc   : > { %v7570_v50 = vld [vmem:[%s9551_s3 + $0x86c] ss:$16 sps:$4 sm:$0xff]   ;;  %v7565_v51 = vld [vmem:[%s9551_s3 + $0x860] ss:$16 sps:$4 sm:$0xff]  }
 0x1fe   : > { %3582 = vmatpush1.bf16.msra.mxu1 %v7510_v48  ;;  %3623 = vmatpush1.bf16.msra.mxu0 %v7513_v49  ;;  %v7567_v49 = vld [vmem:[%s9551_s3 + $0x864] ss:$16 sps:$4 sm:$0xff]  }
 0x1ff   : > { %3583 = vmatprep.subr.bf16.mxu1 %v7518_v52  ;;  %3624 = vmatprep.subr.bf16.mxu0 %v7521_v53  ;;  %v7568_v52 = vld [vmem:[%s9551_s3 + $0x868] ss:$16 sps:$4 sm:$0xff]   ;;  %v7574_v53 = vld [vmem:[%s9551_s3 + $0x884] ss:$16 sps:$4 sm:$0xff]  }
 0x202   : > { %3584 = vmatpush1.bf16.msra.mxu1 %v7516_v55  ;;  %3625 = vmatpush1.bf16.msra.mxu0 %v7519_v56  ;;  %v7572_v55 = vld [vmem:[%s9551_s3 + $0x880] ss:$16 sps:$4 sm:$0xff]   ;;  %v7575_v56 = vld [vmem:[%s9551_s3 + $0x888] ss:$16 sps:$4 sm:$0xff]  }
 0x203   : > { %3767 = vmatprep.subr.bf16.mxu1 %v7525_v57  ;;  %3808 = vmatprep.subr.bf16.mxu0 %v7528_v58  ;;  %v7580_v57 = vld [vmem:[%s9551_s3 + $0x8a4] ss:$16 sps:$4 sm:$0xff]   ;;  %v7583_v58 = vld [vmem:[%s9551_s3 + $0x8ac] ss:$16 sps:$4 sm:$0xff]  }
 0x205   : > { %6561 = vmatmul.mubr.msk.bf16.vlgmr.msra.gmra.mrb[64].mxu1 %vm634_vm0, %v3493_v61  ;;  %6562 = vmatmul.mubr.msk.bf16.vlgmr.msra.gmra.mrb[68].mxu0 %vm634_vm0, %v3493_v61  ;;  %v7581_v61 = vld [vmem:[%s9551_s3 + $0x8a8] ss:$16 sps:$4 sm:$0xff]  }
 0x206   : > { %3768 = vmatpush1.bf16.msra.mxu1 %v7523_v59  ;;  %3809 = vmatpush1.bf16.msra.mxu0 %v7526_v60  ;;  %v3853_v59 = vld [vmem:[#allocation2 + $0x8] sm:$0x1]  ;;  %v7578_v60 = vld [vmem:[%s9551_s3 + $0x8a0] ss:$16 sps:$4 sm:$0xff]  }
 0x207   : > { %3769 = vmatprep.subr.bf16.mxu1 %v7531_v62  ;;  %3810 = vmatprep.subr.bf16.mxu0 %v7534_v63  ;;  %v7586_v62 = vld [vmem:[%s9551_s3 + $0x8c4] ss:$16 sps:$4 sm:$0xff]   ;;  %v7589_v63 = vld [vmem:[%s9551_s3 + $0x8cc] ss:$16 sps:$4 sm:$0xff]  }
 0x208   : > { %v1140_v5 = vpop.f32.mrb[12].mxu1  ;;  %v1181_v6 = vpop.f32.mrb[16].mxu0  ;;  %3799 = vmatprep.mubr.bf16.mxu1 %v7863_v0  ;;  %3840 = vmatprep.mubr.bf16.mxu0 %v7863_v0 }
 0x209   : > { %v1141_v7 = vadd.f32 %v1140_v5, %v975_v42  ;;  %v1182_v8 = vadd.f32 %v1181_v6, %v1016_v43  ;;  %v1142_v9 = vpop.f32.mrb[13].mxu1  ;;  %v1183_v10 = vpop.f32.mrb[17].mxu0 }
 0x20a   : > { %v1143_v11 = vadd.f32 %v1142_v9, %v977_v44  ;;  %v1184_v12 = vadd.f32 %v1183_v10, %v1018_v45  ;;  %v1144_v13 = vpop.f32.mrb[14].mxu1  ;;  %v1185_v14 = vpop.f32.mrb[18].mxu0  ;;  %3770 = vmatpush1.bf16.msra.mxu1 %v7529_v1  ;;  %3811 = vmatpush1.bf16.msra.mxu0 %v7532_v2  ;;  %v7559_v45 = vld [vmem:[%s9551_s3 + $0x840] ss:$16 sps:$4 sm:$0xff]  }
 0x20b   : > { %v1145_v17 = vpop.f32.mrb[15].mxu1  ;;  %v1186_v18 = vpop.f32.mrb[19].mxu0  ;;  %3771 = vmatprep.subr.bf16.mxu1 %v7537_v3  ;;  %3812 = vmatprep.subr.bf16.mxu0 %v7540_v4 }
 0x20c   : > { %v7590_v17 = vld [vmem:[%s9551_s3 + $0x8e0] ss:$16 sps:$4 sm:$0xff]   ;;  %v7593_v18 = vld [vmem:[%s9551_s3 + $0x8e8] ss:$16 sps:$4 sm:$0xff]  }
 0x20e   : > { %3772 = vmatpush1.bf16.msra.mxu1 %v7535_v15  ;;  %3813 = vmatpush1.bf16.msra.mxu0 %v7538_v16  ;;  %v7592_v15 = vld [vmem:[%s9551_s3 + $0x8e4] ss:$16 sps:$4 sm:$0xff]   ;;  %v7595_v16 = vld [vmem:[%s9551_s3 + $0x8ec] ss:$16 sps:$4 sm:$0xff]  }
 0x20f   : > { %3773 = vmatprep.subr.bf16.mxu1 %v7543_v19  ;;  %3814 = vmatprep.subr.bf16.mxu0 %v7546_v20  ;;  %v6647_v19 = vcombine.low %v3853_v59, %v3853_v59  ;;  %v7598_v20 = vld [vmem:[%s9551_s3 + $0x904] ss:$16 sps:$4 sm:$0xff]  }
 0x212   : > { %3774 = vmatpush1.bf16.msra.mxu1 %v7541_v21  ;;  %3815 = vmatpush1.bf16.msra.mxu0 %v7544_v22  ;;  %v7601_v21 = vld [vmem:[%s9551_s3 + $0x90c] ss:$16 sps:$4 sm:$0xff]   ;;  %v7596_v22 = vld [vmem:[%s9551_s3 + $0x900] ss:$16 sps:$4 sm:$0xff]  }
 0x213   : > { %3954 = vmatprep.subr.bf16.mxu1 %v7549_v24  ;;  %3995 = vmatprep.subr.bf16.mxu0 %v7552_v25  ;;  %v4061_v24 = vshrl.u32 %v6647_v19, 16  ;;  %v7604_v25 = vld [vmem:[%s9551_s3 + $0x924] ss:$16 sps:$4 sm:$0xff]   ;;  %v7645_v19 = vld [vmem:[%s9551_s3 + $0xa00] ss:$16 sps:$4 sm:$0xff]  }
 0x215   : > { %6595 = vmatmul.mubr.msk.bf16.vlgmr.msra.gmra.mrb[68].mxu1 %vm634_vm0, %v3683_v28  ;;  %6596 = vmatmul.mubr.msk.bf16.vlgmr.msra.gmra.mrb[72].mxu0 %vm634_vm0, %v3683_v28  ;;  %v7605_v28 = vld [vmem:[%s9551_s3 + $0x928] ss:$16 sps:$4 sm:$0xff]  }
 0x216   : > { %3955 = vmatpush1.bf16.msra.mxu1 %v7547_v26  ;;  %3996 = vmatpush1.bf16.msra.mxu0 %v7550_v27  ;;  %v7607_v26 = vld [vmem:[%s9551_s3 + $0x92c] ss:$16 sps:$4 sm:$0xff]   ;;  %v7602_v27 = vld [vmem:[%s9551_s3 + $0x920] ss:$16 sps:$4 sm:$0xff]  }
 0x217   : > { %3956 = vmatprep.subr.bf16.mxu1 %v7555_v29  ;;  %3997 = vmatprep.subr.bf16.mxu0 %v7558_v30  ;;  %v7610_v29 = vld [vmem:[%s9551_s3 + $0x944] ss:$16 sps:$4 sm:$0xff]   ;;  %v7613_v30 = vld [vmem:[%s9551_s3 + $0x94c] ss:$16 sps:$4 sm:$0xff]  }
 0x218   : > { %v1327_v35 = vpop.f32.mrb[16].mxu1  ;;  %v1368_v36 = vpop.f32.mrb[20].mxu0  ;;  %3986 = vmatprep.mubr.bf16.mxu1 %v7863_v0  ;;  %4027 = vmatprep.mubr.bf16.mxu0 %v7863_v0 }
 0x219   : > { %v1375_v37 = vadd.f32 %v1327_v35, %v1141_v7  ;;  %v1377_v38 = vadd.f32 %v1368_v36, %v1182_v8  ;;  %v1329_v39 = vpop.f32.mrb[17].mxu1  ;;  %v1370_v40 = vpop.f32.mrb[21].mxu0 }
 0x21a   : > { %v1376_v41 = vadd.f32 %v1329_v39, %v1143_v11  ;;  %v1378_v42 = vadd.f32 %v1370_v40, %v1184_v12  ;;  %v1331_v43 = vpop.f32.mrb[18].mxu1  ;;  %v1372_v44 = vpop.f32.mrb[22].mxu0  ;;  %3957 = vmatpush1.bf16.msra.mxu1 %v7553_v31  ;;  %3998 = vmatpush1.bf16.msra.mxu0 %v7556_v32  ;;  %v7584_v11 = vld [vmem:[%s9551_s3 + $0x8c0] ss:$16 sps:$4 sm:$0xff]   ;;  %v7587_v12 = vld [vmem:[%s9551_s3 + $0x8c8] ss:$16 sps:$4 sm:$0xff]  }
 0x21b   : > { %v1332_v47 = vpop.f32.mrb[19].mxu1  ;;  %v1373_v48 = vpop.f32.mrb[23].mxu0  ;;  %3958 = vmatprep.subr.bf16.mxu1 %v7561_v33  ;;  %3999 = vmatprep.subr.bf16.mxu0 %v7564_v34 }
 0x21c   : > { %v9067_v47 = vld [vmem:[#allocation2 + $0x8] ss:$0 sps:$4 sm:$0x22]   ;;  %v7614_v48 = vld [vmem:[%s9551_s3 + $0x960] ss:$16 sps:$4 sm:$0xff]  }
 0x21e   : > { %3959 = vmatpush1.bf16.msra.mxu1 %v7559_v45  ;;  %4000 = vmatpush1.bf16.msra.mxu0 %v7562_v46  ;;  %v7616_v45 = vld [vmem:[%s9551_s3 + $0x964] ss:$16 sps:$4 sm:$0xff]   ;;  %v7619_v46 = vld [vmem:[%s9551_s3 + $0x96c] ss:$16 sps:$4 sm:$0xff]  }
 0x21f   : > { %3960 = vmatprep.subr.bf16.mxu1 %v7567_v49  ;;  %4001 = vmatprep.subr.bf16.mxu0 %v7570_v50  ;;  %v7617_v49 = vld [vmem:[%s9551_s3 + $0x968] ss:$16 sps:$4 sm:$0xff]   ;;  %v7623_v50 = vld [vmem:[%s9551_s3 + $0x984] ss:$16 sps:$4 sm:$0xff]  }
 0x222   : > { %3961 = vmatpush1.bf16.msra.mxu1 %v7565_v51  ;;  %4002 = vmatpush1.bf16.msra.mxu0 %v7568_v52  ;;  %v7626_v51 = vld [vmem:[%s9551_s3 + $0x98c] ss:$16 sps:$4 sm:$0xff]   ;;  %v7621_v52 = vld [vmem:[%s9551_s3 + $0x980] ss:$16 sps:$4 sm:$0xff]  }
 0x223   : > { %4146 = vmatprep.subr.bf16.mxu1 %v7574_v53  ;;  %4187 = vmatprep.subr.bf16.mxu0 %v7577_v54  ;;  %v7624_v53 = vld [vmem:[%s9551_s3 + $0x988] ss:$16 sps:$4 sm:$0xff]   ;;  %v4253_v54 = vrot.slane %v9067_v47, 1 }
 0x225   : > { %6629 = vmatmul.mubr.msk.bf16.vlgmr.msra.gmra.mrb[72].mxu1 %vm634_vm0, %v3853_v59  ;;  %6630 = vmatmul.mubr.msk.bf16.vlgmr.msra.gmra.mrb[76].mxu0 %vm634_vm0, %v3853_v59  ;;  %v7635_v59 = vld [vmem:[%s9551_s3 + $0x9c4] ss:$16 sps:$4 sm:$0xff]  }
 0x226   : > { %4147 = vmatpush1.bf16.msra.mxu1 %v7572_v55  ;;  %4188 = vmatpush1.bf16.msra.mxu0 %v7575_v56  ;;  %v7629_v55 = vld [vmem:[%s9551_s3 + $0x9a4] ss:$16 sps:$4 sm:$0xff]   ;;  %v7632_v56 = vld [vmem:[%s9551_s3 + $0x9ac] ss:$16 sps:$4 sm:$0xff]  }
 0x227   : > { %4148 = vmatprep.subr.bf16.mxu1 %v7580_v57  ;;  %4189 = vmatprep.subr.bf16.mxu0 %v7583_v58  ;;  %v7627_v57 = vld [vmem:[%s9551_s3 + $0x9a0] ss:$16 sps:$4 sm:$0xff]   ;;  %v7630_v58 = vld [vmem:[%s9551_s3 + $0x9a8] ss:$16 sps:$4 sm:$0xff]  }
 0x228   : > { %v1517_v1 = vpop.f32.mrb[20].mxu1  ;;  %v1558_v2 = vpop.f32.mrb[24].mxu0  ;;  %4178 = vmatprep.mubr.bf16.mxu1 %v7863_v0  ;;  %4219 = vmatprep.mubr.bf16.mxu0 %v7863_v0 }
 0x229   : > { %v1565_v3 = vadd.f32 %v1517_v1, %v1375_v37  ;;  %v1567_v4 = vadd.f32 %v1558_v2, %v1377_v38  ;;  %v1519_v5 = vpop.f32.mrb[21].mxu1  ;;  %v1560_v6 = vpop.f32.mrb[25].mxu0 }
 0x22a   : > { %v1566_v7 = vadd.f32 %v1519_v5, %v1376_v41  ;;  %v1568_v8 = vadd.f32 %v1560_v6, %v1378_v42  ;;  %v1521_v9 = vpop.f32.mrb[22].mxu1  ;;  %v1562_v10 = vpop.f32.mrb[26].mxu0  ;;  %4149 = vmatpush1.bf16.msra.mxu1 %v7578_v60  ;;  %4190 = vmatpush1.bf16.msra.mxu0 %v7581_v61  ;;  %v7608_v41 = vld [vmem:[%s9551_s3 + $0x940] ss:$16 sps:$4 sm:$0xff]   ;;  %v7611_v42 = vld [vmem:[%s9551_s3 + $0x948] ss:$16 sps:$4 sm:$0xff]  }
 0x22b   : > { %v1522_v13 = vpop.f32.mrb[23].mxu1  ;;  %v1563_v14 = vpop.f32.mrb[27].mxu0  ;;  %4150 = vmatprep.subr.bf16.mxu1 %v7586_v62  ;;  %4191 = vmatprep.subr.bf16.mxu0 %v7589_v63  ;;  %v7638_v60 = vld [vmem:[%s9551_s3 + $0x9cc] ss:$16 sps:$4 sm:$0xff]   ;;  %v7636_v9 = vld [vmem:[%s9551_s3 + $0x9c8] ss:$16 sps:$4 sm:$0xff]  }
 0x22c   : > { %v7644_v13 = vld [vmem:[%s9551_s3 + $0x9ec] ss:$16 sps:$4 sm:$0xff]   ;;  %v7639_v14 = vld [vmem:[%s9551_s3 + $0x9e0] ss:$16 sps:$4 sm:$0xff]  }
 0x22e   : > { %4151 = vmatpush1.bf16.msra.mxu1 %v7584_v11  ;;  %4192 = vmatpush1.bf16.msra.mxu0 %v7587_v12  ;;  %v7641_v12 = vld [vmem:[%s9551_s3 + $0x9e4] ss:$16 sps:$4 sm:$0xff]  }
 0x22f   : > { %4152 = vmatprep.subr.bf16.mxu1 %v7592_v15  ;;  %4193 = vmatprep.subr.bf16.mxu0 %v7595_v16  ;;  %v7642_v15 = vld [vmem:[%s9551_s3 + $0x9e8] ss:$16 sps:$4 sm:$0xff]   ;;  %v4441_v16 = vshrl.u32 %v9067_v47, 16  ;;  %v7672_v47 = vld [vmem:[%s9551_s3 + $0xa84] ss:$16 sps:$4 sm:$0xff]  }
 0x232   : > { %4153 = vmatpush1.bf16.msra.mxu1 %v7590_v17  ;;  %4194 = vmatpush1.bf16.msra.mxu0 %v7593_v18  ;;  %v7647_v17 = vld [vmem:[%s9551_s3 + $0xa04] ss:$16 sps:$4 sm:$0xff]   ;;  %v7650_v18 = vld [vmem:[%s9551_s3 + $0xa0c] ss:$16 sps:$4 sm:$0xff]  }
 0x233   : > { %4337 = vmatprep.subr.bf16.mxu1 %v7598_v20  ;;  %4378 = vmatprep.subr.bf16.mxu0 %v7601_v21  ;;  %v7648_v20 = vld [vmem:[%s9551_s3 + $0xa08] ss:$16 sps:$4 sm:$0xff]   ;;  %v4443_v21 = vrot.slane %v4441_v16, 1  ;;  %v7694_v16 = vld [vmem:[%s9551_s3 + $0xb00] ss:$16 sps:$4 sm:$0xff]  }
 0x235   : > { %6664 = vmatmul.mubr.msk.bf16.vlgmr.msra.gmra.mrb[76].mxu1 %vm634_vm0, %v4061_v24  ;;  %6665 = vmatmul.mubr.msk.bf16.vlgmr.msra.gmra.mrb[80].mxu0 %vm634_vm0, %v4061_v24  ;;  %v7651_v24 = vld [vmem:[%s9551_s3 + $0xa20] ss:$16 sps:$4 sm:$0xff]  }
 0x236   : > { %4338 = vmatpush1.bf16.msra.mxu1 %v7596_v22  ;;  %4379 = vmatpush1.bf16.msra.mxu0 %v7599_v23  ;;  %v7653_v22 = vld [vmem:[%s9551_s3 + $0xa24] ss:$16 sps:$4 sm:$0xff]   ;;  %v7656_v23 = vld [vmem:[%s9551_s3 + $0xa2c] ss:$16 sps:$4 sm:$0xff]  }
 0x237   : > { %4339 = vmatprep.subr.bf16.mxu1 %v7604_v25  ;;  %4380 = vmatprep.subr.bf16.mxu0 %v7607_v26  ;;  %v7654_v25 = vld [vmem:[%s9551_s3 + $0xa28] ss:$16 sps:$4 sm:$0xff]   ;;  %v7659_v26 = vld [vmem:[%s9551_s3 + $0xa44] ss:$16 sps:$4 sm:$0xff]  }
 0x238   : > { %v1708_v31 = vpop.f32.mrb[24].mxu1  ;;  %v1749_v32 = vpop.f32.mrb[28].mxu0  ;;  %4369 = vmatprep.mubr.bf16.mxu1 %v7863_v0  ;;  %4410 = vmatprep.mubr.bf16.mxu0 %v7863_v0 }
 0x239   : > { %v1756_v33 = vadd.f32 %v1708_v31, %v1565_v3  ;;  %v1758_v34 = vadd.f32 %v1749_v32, %v1567_v4  ;;  %v1710_v35 = vpop.f32.mrb[25].mxu1  ;;  %v1751_v36 = vpop.f32.mrb[29].mxu0 }
 0x23a   : > { %v1757_v37 = vadd.f32 %v1710_v35, %v1566_v7  ;;  %v1759_v38 = vadd.f32 %v1751_v36, %v1568_v8  ;;  %v1712_v39 = vpop.f32.mrb[26].mxu1  ;;  %v1753_v40 = vpop.f32.mrb[30].mxu0  ;;  %4340 = vmatpush1.bf16.msra.mxu1 %v7602_v27  ;;  %4381 = vmatpush1.bf16.msra.mxu0 %v7605_v28  ;;  %v7633_v8 = vld [vmem:[%s9551_s3 + $0x9c0] ss:$16 sps:$4 sm:$0xff]   ;;  %v7662_v27 = vld [vmem:[%s9551_s3 + $0xa4c] ss:$16 sps:$4 sm:$0xff]  }
 0x23b   : > { %v1713_v43 = vpop.f32.mrb[27].mxu1  ;;  %v1754_v44 = vpop.f32.mrb[31].mxu0  ;;  %4341 = vmatprep.subr.bf16.mxu1 %v7610_v29  ;;  %4382 = vmatprep.subr.bf16.mxu0 %v7613_v30  ;;  %v7660_v39 = vld [vmem:[%s9551_s3 + $0xa48] ss:$16 sps:$4 sm:$0xff]  }
 0x23c   : > { %v7668_v43 = vld [vmem:[%s9551_s3 + $0xa6c] ss:$16 sps:$4 sm:$0xff]   ;;  %v9175_v44 = vld [vmem:[#allocation2 + $0x8] ss:$0 sps:$4 sm:$0x44]  }
 0x23e   : > { %4342 = vmatpush1.bf16.msra.mxu1 %v7608_v41  ;;  %4383 = vmatpush1.bf16.msra.mxu0 %v7611_v42  ;;  %v7665_v42 = vld [vmem:[%s9551_s3 + $0xa64] ss:$16 sps:$4 sm:$0xff]  }
 0x23f   : > { %4343 = vmatprep.subr.bf16.mxu1 %v7616_v45  ;;  %4384 = vmatprep.subr.bf16.mxu0 %v7619_v46  ;;  %v7663_v45 = vld [vmem:[%s9551_s3 + $0xa60] ss:$16 sps:$4 sm:$0xff]   ;;  %v7666_v46 = vld [vmem:[%s9551_s3 + $0xa68] ss:$16 sps:$4 sm:$0xff]  }
 0x242   : > { %4344 = vmatpush1.bf16.msra.mxu1 %v7614_v48  ;;  %4385 = vmatpush1.bf16.msra.mxu0 %v7617_v49  ;;  %v7675_v48 = vld [vmem:[%s9551_s3 + $0xa8c] ss:$16 sps:$4 sm:$0xff]   ;;  %v7670_v49 = vld [vmem:[%s9551_s3 + $0xa80] ss:$16 sps:$4 sm:$0xff]  }
 0x243   : > { %4527 = vmatprep.subr.bf16.mxu1 %v7623_v50  ;;  %4568 = vmatprep.subr.bf16.mxu0 %v7626_v51  ;;  %v7673_v50 = vld [vmem:[%s9551_s3 + $0xa88] ss:$16 sps:$4 sm:$0xff]   ;;  %v4634_v51 = vrot.slane %v9175_v44, 2 }
 0x245   : > { %6699 = vmatmul.mubr.msk.bf16.vlgmr.msra.gmra.mrb[80].mxu1 %vm634_vm0, %v4253_v54  ;;  %6700 = vmatmul.mubr.msk.bf16.vlgmr.msra.gmra.mrb[84].mxu0 %vm634_vm0, %v4253_v54  ;;  %v7676_v54 = vld [vmem:[%s9551_s3 + $0xaa0] ss:$16 sps:$4 sm:$0xff]  }
 0x246   : > { %4528 = vmatpush1.bf16.msra.mxu1 %v7621_v52  ;;  %4569 = vmatpush1.bf16.msra.mxu0 %v7624_v53  ;;  %v7678_v52 = vld [vmem:[%s9551_s3 + $0xaa4] ss:$16 sps:$4 sm:$0xff]   ;;  %v7681_v53 = vld [vmem:[%s9551_s3 + $0xaac] ss:$16 sps:$4 sm:$0xff]  }
 0x247   : > { %4529 = vmatprep.subr.bf16.mxu1 %v7629_v55  ;;  %4570 = vmatprep.subr.bf16.mxu0 %v7632_v56  ;;  %v7679_v55 = vld [vmem:[%s9551_s3 + $0xaa8] ss:$16 sps:$4 sm:$0xff]   ;;  %v7684_v56 = vld [vmem:[%s9551_s3 + $0xac4] ss:$16 sps:$4 sm:$0xff]  }
 0x248   : > { %v1898_v61 = vpop.f32.mrb[28].mxu1  ;;  %v1939_v62 = vpop.f32.mrb[32].mxu0  ;;  %4559 = vmatprep.mubr.bf16.mxu1 %v7863_v0  ;;  %4600 = vmatprep.mubr.bf16.mxu0 %v7863_v0 }
 0x249   : > { %v1946_v63 = vadd.f32 %v1898_v61, %v1756_v33  ;;  %v1948_v1 = vadd.f32 %v1939_v62, %v1758_v34  ;;  %v1900_v2 = vpop.f32.mrb[29].mxu1  ;;  %v1941_v3 = vpop.f32.mrb[33].mxu0 }
 0x24a   : > { %v1947_v4 = vadd.f32 %v1900_v2, %v1757_v37  ;;  %v1949_v5 = vadd.f32 %v1941_v3, %v1759_v38  ;;  %v1902_v6 = vpop.f32.mrb[30].mxu1  ;;  %v1943_v7 = vpop.f32.mrb[34].mxu0  ;;  %4530 = vmatpush1.bf16.msra.mxu1 %v7627_v57  ;;  %4571 = vmatpush1.bf16.msra.mxu0 %v7630_v58  ;;  %v7657_v38 = vld [vmem:[%s9551_s3 + $0xa40] ss:$16 sps:$4 sm:$0xff]   ;;  %v7687_v57 = vld [vmem:[%s9551_s3 + $0xacc] ss:$16 sps:$4 sm:$0xff]  }
 0x24b   : > { %v1903_v10 = vpop.f32.mrb[31].mxu1  ;;  %v1944_v11 = vpop.f32.mrb[35].mxu0  ;;  %4531 = vmatprep.subr.bf16.mxu1 %v7635_v59  ;;  %4572 = vmatprep.subr.bf16.mxu0 %v7638_v60  ;;  %v7685_v6 = vld [vmem:[%s9551_s3 + $0xac8] ss:$16 sps:$4 sm:$0xff]  }
 0x24c   : > { %v7693_v10 = vld [vmem:[%s9551_s3 + $0xaec] ss:$16 sps:$4 sm:$0xff]   ;;  %v7688_v11 = vld [vmem:[%s9551_s3 + $0xae0] ss:$16 sps:$4 sm:$0xff]  }
 0x24e   : > { %4532 = vmatpush1.bf16.msra.mxu1 %v7633_v8  ;;  %4573 = vmatpush1.bf16.msra.mxu0 %v7636_v9  ;;  %v7690_v9 = vld [vmem:[%s9551_s3 + $0xae4] ss:$16 sps:$4 sm:$0xff]  }
 0x24f   : > { %4533 = vmatprep.subr.bf16.mxu1 %v7641_v12  ;;  %4574 = vmatprep.subr.bf16.mxu0 %v7644_v13  ;;  %v7691_v12 = vld [vmem:[%s9551_s3 + $0xae8] ss:$16 sps:$4 sm:$0xff]   ;;  %v4822_v13 = vshrl.u32 %v9175_v44, 16  ;;  %v7721_v44 = vld [vmem:[%s9551_s3 + $0xb84] ss:$16 sps:$4 sm:$0xff]  }
 0x252   : > { %4534 = vmatpush1.bf16.msra.mxu1 %v7639_v14  ;;  %4575 = vmatpush1.bf16.msra.mxu0 %v7642_v15  ;;  %v7696_v14 = vld [vmem:[%s9551_s3 + $0xb04] ss:$16 sps:$4 sm:$0xff]   ;;  %v7699_v15 = vld [vmem:[%s9551_s3 + $0xb0c] ss:$16 sps:$4 sm:$0xff]  }
 0x253   : > { %4718 = vmatprep.subr.bf16.mxu1 %v7647_v17  ;;  %4759 = vmatprep.subr.bf16.mxu0 %v7650_v18  ;;  %v7697_v17 = vld [vmem:[%s9551_s3 + $0xb08] ss:$16 sps:$4 sm:$0xff]   ;;  %v4824_v18 = vrot.slane %v4822_v13, 2  ;;  %v7743_v13 = vld [vmem:[%s9551_s3 + $0xc00] ss:$16 sps:$4 sm:$0xff]  }
 0x255   : > { %6733 = vmatmul.mubr.msk.bf16.vlgmr.msra.gmra.mrb[84].mxu1 %vm634_vm0, %v4443_v21  ;;  %6734 = vmatmul.mubr.msk.bf16.vlgmr.msra.gmra.mrb[88].mxu0 %vm634_vm0, %v4443_v21  ;;  %v7700_v21 = vld [vmem:[%s9551_s3 + $0xb20] ss:$16 sps:$4 sm:$0xff]  }
 0x256   : > { %4719 = vmatpush1.bf16.msra.mxu1 %v7645_v19  ;;  %4760 = vmatpush1.bf16.msra.mxu0 %v7648_v20  ;;  %v7702_v19 = vld [vmem:[%s9551_s3 + $0xb24] ss:$16 sps:$4 sm:$0xff]   ;;  %v7705_v20 = vld [vmem:[%s9551_s3 + $0xb2c] ss:$16 sps:$4 sm:$0xff]  }
 0x257   : > { %4720 = vmatprep.subr.bf16.mxu1 %v7653_v22  ;;  %4761 = vmatprep.subr.bf16.mxu0 %v7656_v23  ;;  %v7703_v22 = vld [vmem:[%s9551_s3 + $0xb28] ss:$16 sps:$4 sm:$0xff]   ;;  %v7708_v23 = vld [vmem:[%s9551_s3 + $0xb44] ss:$16 sps:$4 sm:$0xff]  }
 0x258   : > { %v2089_v28 = vpop.f32.mrb[32].mxu1  ;;  %v2130_v29 = vpop.f32.mrb[36].mxu0  ;;  %4750 = vmatprep.mubr.bf16.mxu1 %v7863_v0  ;;  %4791 = vmatprep.mubr.bf16.mxu0 %v7863_v0 }
 0x259   : > { %v2137_v30 = vadd.f32 %v2089_v28, %v1946_v63  ;;  %v2139_v31 = vadd.f32 %v2130_v29, %v1948_v1  ;;  %v2091_v32 = vpop.f32.mrb[33].mxu1  ;;  %v2132_v33 = vpop.f32.mrb[37].mxu0 }
 0x25a   : > { %v2138_v34 = vadd.f32 %v2091_v32, %v1947_v4  ;;  %v2140_v35 = vadd.f32 %v2132_v33, %v1949_v5  ;;  %v2093_v36 = vpop.f32.mrb[34].mxu1  ;;  %v2134_v37 = vpop.f32.mrb[38].mxu0  ;;  %4721 = vmatpush1.bf16.msra.mxu1 %v7651_v24  ;;  %4762 = vmatpush1.bf16.msra.mxu0 %v7654_v25  ;;  %v7682_v5 = vld [vmem:[%s9551_s3 + $0xac0] ss:$16 sps:$4 sm:$0xff]   ;;  %v7711_v24 = vld [vmem:[%s9551_s3 + $0xb4c] ss:$16 sps:$4 sm:$0xff]  }
 0x25b   : > { %v2094_v40 = vpop.f32.mrb[35].mxu1  ;;  %v2135_v41 = vpop.f32.mrb[39].mxu0  ;;  %4722 = vmatprep.subr.bf16.mxu1 %v7659_v26  ;;  %4763 = vmatprep.subr.bf16.mxu0 %v7662_v27  ;;  %v7709_v36 = vld [vmem:[%s9551_s3 + $0xb48] ss:$16 sps:$4 sm:$0xff]  }
 0x25c   : > { %v7717_v40 = vld [vmem:[%s9551_s3 + $0xb6c] ss:$16 sps:$4 sm:$0xff]   ;;  %v9283_v41 = vld [vmem:[#allocation2 + $0x8] ss:$0 sps:$4 sm:$0x88]  }
 0x25e   : > { %4723 = vmatpush1.bf16.msra.mxu1 %v7657_v38  ;;  %4764 = vmatpush1.bf16.msra.mxu0 %v7660_v39  ;;  %v7714_v39 = vld [vmem:[%s9551_s3 + $0xb64] ss:$16 sps:$4 sm:$0xff]  }
 0x25f   : > { %4724 = vmatprep.subr.bf16.mxu1 %v7665_v42  ;;  %4765 = vmatprep.subr.bf16.mxu0 %v7668_v43  ;;  %v7712_v42 = vld [vmem:[%s9551_s3 + $0xb60] ss:$16 sps:$4 sm:$0xff]   ;;  %v7715_v43 = vld [vmem:[%s9551_s3 + $0xb68] ss:$16 sps:$4 sm:$0xff]  }
 0x262   : > { %4725 = vmatpush1.bf16.msra.mxu1 %v7663_v45  ;;  %4766 = vmatpush1.bf16.msra.mxu0 %v7666_v46  ;;  %v7724_v45 = vld [vmem:[%s9551_s3 + $0xb8c] ss:$16 sps:$4 sm:$0xff]   ;;  %v7719_v46 = vld [vmem:[%s9551_s3 + $0xb80] ss:$16 sps:$4 sm:$0xff]  }
 0x263   : > { %4908 = vmatprep.subr.bf16.mxu1 %v7672_v47  ;;  %4949 = vmatprep.subr.bf16.mxu0 %v7675_v48  ;;  %v7722_v47 = vld [vmem:[%s9551_s3 + $0xb88] ss:$16 sps:$4 sm:$0xff]   ;;  %v5015_v48 = vrot.slane %v9283_v41, 3 }
 0x265   : > { %6768 = vmatmul.mubr.msk.bf16.vlgmr.msra.gmra.mrb[88].mxu1 %vm634_vm0, %v4634_v51  ;;  %6769 = vmatmul.mubr.msk.bf16.vlgmr.msra.gmra.mrb[92].mxu0 %vm634_vm0, %v4634_v51  ;;  %v7725_v51 = vld [vmem:[%s9551_s3 + $0xba0] ss:$16 sps:$4 sm:$0xff]  }
 0x266   : > { %4909 = vmatpush1.bf16.msra.mxu1 %v7670_v49  ;;  %4950 = vmatpush1.bf16.msra.mxu0 %v7673_v50  ;;  %v7727_v49 = vld [vmem:[%s9551_s3 + $0xba4] ss:$16 sps:$4 sm:$0xff]   ;;  %v7730_v50 = vld [vmem:[%s9551_s3 + $0xbac] ss:$16 sps:$4 sm:$0xff]  }
 0x267   : > { %4910 = vmatprep.subr.bf16.mxu1 %v7678_v52  ;;  %4951 = vmatprep.subr.bf16.mxu0 %v7681_v53  ;;  %v7728_v52 = vld [vmem:[%s9551_s3 + $0xba8] ss:$16 sps:$4 sm:$0xff]   ;;  %v7733_v53 = vld [vmem:[%s9551_s3 + $0xbc4] ss:$16 sps:$4 sm:$0xff]  }
 0x268   : > { %v2279_v58 = vpop.f32.mrb[36].mxu1  ;;  %v2320_v59 = vpop.f32.mrb[40].mxu0  ;;  %4940 = vmatprep.mubr.bf16.mxu1 %v7863_v0  ;;  %4981 = vmatprep.mubr.bf16.mxu0 %v7863_v0 }
 0x269   : > { %v2327_v60 = vadd.f32 %v2279_v58, %v2137_v30  ;;  %v2329_v61 = vadd.f32 %v2320_v59, %v2139_v31  ;;  %v2281_v62 = vpop.f32.mrb[37].mxu1  ;;  %v2322_v63 = vpop.f32.mrb[41].mxu0 }
 0x26a   : > { %v2328_v1 = vadd.f32 %v2281_v62, %v2138_v34  ;;  %v2330_v2 = vadd.f32 %v2322_v63, %v2140_v35  ;;  %v2283_v3 = vpop.f32.mrb[38].mxu1  ;;  %v2324_v4 = vpop.f32.mrb[42].mxu0  ;;  %4911 = vmatpush1.bf16.msra.mxu1 %v7676_v54  ;;  %4952 = vmatpush1.bf16.msra.mxu0 %v7679_v55  ;;  %v7706_v35 = vld [vmem:[%s9551_s3 + $0xb40] ss:$16 sps:$4 sm:$0xff]   ;;  %v7736_v54 = vld [vmem:[%s9551_s3 + $0xbcc] ss:$16 sps:$4 sm:$0xff]  }
 0x26b   : > { %v2284_v7 = vpop.f32.mrb[39].mxu1  ;;  %v2325_v8 = vpop.f32.mrb[43].mxu0  ;;  %4912 = vmatprep.subr.bf16.mxu1 %v7684_v56  ;;  %4953 = vmatprep.subr.bf16.mxu0 %v7687_v57  ;;  %v7734_v3 = vld [vmem:[%s9551_s3 + $0xbc8] ss:$16 sps:$4 sm:$0xff]  }
 0x26c   : > { %v7742_v7 = vld [vmem:[%s9551_s3 + $0xbec] ss:$16 sps:$4 sm:$0xff]   ;;  %v7737_v8 = vld [vmem:[%s9551_s3 + $0xbe0] ss:$16 sps:$4 sm:$0xff]  }
 0x26e   : > { %4913 = vmatpush1.bf16.msra.mxu1 %v7682_v5  ;;  %4954 = vmatpush1.bf16.msra.mxu0 %v7685_v6  ;;  %v7739_v6 = vld [vmem:[%s9551_s3 + $0xbe4] ss:$16 sps:$4 sm:$0xff]  }
 0x26f   : > { %4914 = vmatprep.subr.bf16.mxu1 %v7690_v9  ;;  %4955 = vmatprep.subr.bf16.mxu0 %v7693_v10  ;;  %v7740_v9 = vld [vmem:[%s9551_s3 + $0xbe8] ss:$16 sps:$4 sm:$0xff]   ;;  %v5203_v10 = vshrl.u32 %v9283_v41, 16 }
 0x272   : > { %4915 = vmatpush1.bf16.msra.mxu1 %v7688_v11  ;;  %4956 = vmatpush1.bf16.msra.mxu0 %v7691_v12  ;;  %v7745_v11 = vld [vmem:[%s9551_s3 + $0xc04] ss:$16 sps:$4 sm:$0xff]   ;;  %v7748_v12 = vld [vmem:[%s9551_s3 + $0xc0c] ss:$16 sps:$4 sm:$0xff]  }
 0x273   : > { %5099 = vmatprep.subr.bf16.mxu1 %v7696_v14  ;;  %5140 = vmatprep.subr.bf16.mxu0 %v7699_v15  ;;  %v7746_v14 = vld [vmem:[%s9551_s3 + $0xc08] ss:$16 sps:$4 sm:$0xff]   ;;  %v5205_v15 = vrot.slane %v5203_v10, 3 }
 0x275   : > { %6802 = vmatmul.mubr.msk.bf16.vlgmr.msra.gmra.mrb[92].mxu1 %vm634_vm0, %v4824_v18  ;;  %6803 = vmatmul.mubr.msk.bf16.vlgmr.msra.gmra.mrb[96].mxu0 %vm634_vm0, %v4824_v18  ;;  %v7749_v18 = vld [vmem:[%s9551_s3 + $0xc20] ss:$16 sps:$4 sm:$0xff]  }
 0x276   : > { %5100 = vmatpush1.bf16.msra.mxu1 %v7694_v16  ;;  %5141 = vmatpush1.bf16.msra.mxu0 %v7697_v17  ;;  %v7751_v16 = vld [vmem:[%s9551_s3 + $0xc24] ss:$16 sps:$4 sm:$0xff]   ;;  %v7754_v17 = vld [vmem:[%s9551_s3 + $0xc2c] ss:$16 sps:$4 sm:$0xff]  }
 0x277   : > { %5101 = vmatprep.subr.bf16.mxu1 %v7702_v19  ;;  %5142 = vmatprep.subr.bf16.mxu0 %v7705_v20  ;;  %v7752_v19 = vld [vmem:[%s9551_s3 + $0xc28] ss:$16 sps:$4 sm:$0xff]   ;;  %v7757_v20 = vld [vmem:[%s9551_s3 + $0xc44] ss:$16 sps:$4 sm:$0xff]  }
 0x278   : > { %v2466_v25 = vpop.f32.mrb[40].mxu1  ;;  %v2507_v26 = vpop.f32.mrb[44].mxu0  ;;  %5131 = vmatprep.mubr.bf16.mxu1 %v7863_v0  ;;  %5172 = vmatprep.mubr.bf16.mxu0 %v7863_v0 }
 0x279   : > { %v2514_v27 = vadd.f32 %v2466_v25, %v2327_v60  ;;  %v2516_v28 = vadd.f32 %v2507_v26, %v2329_v61  ;;  %v2468_v29 = vpop.f32.mrb[41].mxu1  ;;  %v2509_v30 = vpop.f32.mrb[45].mxu0 }
 0x27a   : > { %v2515_v31 = vadd.f32 %v2468_v29, %v2328_v1  ;;  %v2517_v32 = vadd.f32 %v2509_v30, %v2330_v2  ;;  %v2470_v33 = vpop.f32.mrb[42].mxu1  ;;  %v2511_v34 = vpop.f32.mrb[46].mxu0  ;;  %5102 = vmatpush1.bf16.msra.mxu1 %v7700_v21  ;;  %5143 = vmatpush1.bf16.msra.mxu0 %v7703_v22  ;;  %v7731_v2 = vld [vmem:[%s9551_s3 + $0xbc0] ss:$16 sps:$4 sm:$0xff]   ;;  %v7760_v21 = vld [vmem:[%s9551_s3 + $0xc4c] ss:$16 sps:$4 sm:$0xff]  }
 0x27b   : > { %v2471_v37 = vpop.f32.mrb[43].mxu1  ;;  %v2512_v38 = vpop.f32.mrb[47].mxu0  ;;  %5103 = vmatprep.subr.bf16.mxu1 %v7708_v23  ;;  %5144 = vmatprep.subr.bf16.mxu0 %v7711_v24  ;;  %v7758_v33 = vld [vmem:[%s9551_s3 + $0xc48] ss:$16 sps:$4 sm:$0xff]  }
 0x27c   : > { %v7761_v37 = vld [vmem:[%s9551_s3 + $0xc60] ss:$16 sps:$4 sm:$0xff]   ;;  %v7764_v38 = vld [vmem:[%s9551_s3 + $0xc68] ss:$16 sps:$4 sm:$0xff]  }
 0x27e   : > { %5104 = vmatpush1.bf16.msra.mxu1 %v7706_v35  ;;  %5145 = vmatpush1.bf16.msra.mxu0 %v7709_v36  ;;  %v7763_v35 = vld [vmem:[%s9551_s3 + $0xc64] ss:$16 sps:$4 sm:$0xff]   ;;  %v7766_v36 = vld [vmem:[%s9551_s3 + $0xc6c] ss:$16 sps:$4 sm:$0xff]  }
 0x27f   : > { %5105 = vmatprep.subr.bf16.mxu1 %v7714_v39  ;;  %5146 = vmatprep.subr.bf16.mxu0 %v7717_v40  ;;  %v5375_v39 = vld [vmem:[#allocation2 + $0xc] sm:$0x1] }
 0x282   : > { %5106 = vmatpush1.bf16.msra.mxu1 %v7712_v42  ;;  %5147 = vmatpush1.bf16.msra.mxu0 %v7715_v43 }
 0x283   : > { %5289 = vmatprep.subr.bf16.mxu1 %v7721_v44  ;;  %5330 = vmatprep.subr.bf16.mxu0 %v7724_v45 }
 0x285   : > { %6837 = vmatmul.mubr.msk.bf16.vlgmr.msra.gmra.mrb[96].mxu1 %vm634_vm0, %v5015_v48  ;;  %6838 = vmatmul.mubr.msk.bf16.vlgmr.msra.gmra.mrb[100].mxu0 %vm634_vm0, %v5015_v48 }
 0x286   : > { %5290 = vmatpush1.bf16.msra.mxu1 %v7719_v46  ;;  %5331 = vmatpush1.bf16.msra.mxu0 %v7722_v47 }
 0x287   : > { %5291 = vmatprep.subr.bf16.mxu1 %v7727_v49  ;;  %5332 = vmatprep.subr.bf16.mxu0 %v7730_v50 }
 0x288   : > { %v2658_v55 = vpop.f32.mrb[44].mxu1  ;;  %v2699_v56 = vpop.f32.mrb[48].mxu0  ;;  %5321 = vmatprep.mubr.bf16.mxu1 %v7863_v0  ;;  %5362 = vmatprep.mubr.bf16.mxu0 %v7863_v0 }
 0x289   : > { %v2706_v57 = vadd.f32 %v2658_v55, %v2514_v27  ;;  %v2708_v58 = vadd.f32 %v2699_v56, %v2516_v28  ;;  %v2660_v59 = vpop.f32.mrb[45].mxu1  ;;  %v2701_v60 = vpop.f32.mrb[49].mxu0 }
 0x28a   : > { %v2707_v61 = vadd.f32 %v2660_v59, %v2515_v31  ;;  %v2709_v62 = vadd.f32 %v2701_v60, %v2517_v32  ;;  %v2662_v63 = vpop.f32.mrb[46].mxu1  ;;  %v2703_v1 = vpop.f32.mrb[50].mxu0  ;;  %5292 = vmatpush1.bf16.msra.mxu1 %v7725_v51  ;;  %5333 = vmatpush1.bf16.msra.mxu0 %v7728_v52  ;;  %v7755_v32 = vld [vmem:[%s9551_s3 + $0xc40] ss:$16 sps:$4 sm:$0xff]  }
 0x28b   : > { %v2663_v4 = vpop.f32.mrb[47].mxu1  ;;  %v2704_v5 = vpop.f32.mrb[51].mxu0  ;;  %5293 = vmatprep.subr.bf16.mxu1 %v7733_v53  ;;  %5334 = vmatprep.subr.bf16.mxu0 %v7736_v54 }
 0x28e   : > { %5294 = vmatpush1.bf16.msra.mxu1 %v7731_v2  ;;  %5335 = vmatpush1.bf16.msra.mxu0 %v7734_v3 }
 0x28f   : > { %5295 = vmatprep.subr.bf16.mxu1 %v7739_v6  ;;  %5336 = vmatprep.subr.bf16.mxu0 %v7742_v7 }
 0x292   : > { %5296 = vmatpush1.bf16.msra.mxu1 %v7737_v8  ;;  %5337 = vmatpush1.bf16.msra.mxu0 %v7740_v9 }
 0x293   : > { %5476 = vmatprep.subr.bf16.mxu1 %v7745_v11  ;;  %5517 = vmatprep.subr.bf16.mxu0 %v7748_v12 }
 0x295   : > { %6871 = vmatmul.mubr.msk.bf16.vlgmr.msra.gmra.mrb[100].mxu1 %vm634_vm0, %v5205_v15  ;;  %6872 = vmatmul.mubr.msk.bf16.vlgmr.msra.gmra.mrb[104].mxu0 %vm634_vm0, %v5205_v15 }
 0x296   : > { %5477 = vmatpush1.bf16.msra.mxu1 %v7743_v13  ;;  %5518 = vmatpush1.bf16.msra.mxu0 %v7746_v14 }
 0x297   : > { %5478 = vmatprep.subr.bf16.mxu1 %v7751_v16  ;;  %5519 = vmatprep.subr.bf16.mxu0 %v7754_v17 }
 0x298   : > { %v2849_v22 = vpop.f32.mrb[48].mxu1  ;;  %v2890_v23 = vpop.f32.mrb[52].mxu0  ;;  %5508 = vmatprep.mubr.bf16.mxu1 %v7863_v0  ;;  %5549 = vmatprep.mubr.bf16.mxu0 %v7863_v0 }
 0x299   : > { %v2897_v24 = vadd.f32 %v2849_v22, %v2706_v57  ;;  %v2899_v25 = vadd.f32 %v2890_v23, %v2708_v58  ;;  %v2851_v26 = vpop.f32.mrb[49].mxu1  ;;  %v2892_v27 = vpop.f32.mrb[53].mxu0 }
 0x29a   : > { %v2898_v28 = vadd.f32 %v2851_v26, %v2707_v61  ;;  %v2900_v29 = vadd.f32 %v2892_v27, %v2709_v62  ;;  %v2853_v30 = vpop.f32.mrb[50].mxu1  ;;  %v2894_v31 = vpop.f32.mrb[54].mxu0  ;;  %5479 = vmatpush1.bf16.msra.mxu1 %v7749_v18  ;;  %5520 = vmatpush1.bf16.msra.mxu0 %v7752_v19  ;;  %v7768_v26 = vld [vmem:[%s9553_s5 + $0xc0] sm:$0xff]  }
 0x29b   : > { %v2854_v34 = vpop.f32.mrb[51].mxu1  ;;  %v2895_v0 = vpop.f32.mrb[55].mxu0  ;;  %5480 = vmatprep.subr.bf16.mxu1 %v7757_v20  ;;  %5521 = vmatprep.subr.bf16.mxu0 %v7760_v21  ;;  %v7769_v27 = vld [vmem:[%s9553_s5] sm:$0xff]   ;;  %v7772_v30 = vld [vmem:[%s9553_s5 + $0xc8] sm:$0xff]  }
 0x29e   : > { %5481 = vmatpush1.bf16.msra.mxu1 %v7755_v32  ;;  %5522 = vmatpush1.bf16.msra.mxu0 %v7758_v33 }
 0x29f   : > { %5482 = vmatprep.subr.bf16.mxu1 %v7763_v35  ;;  %5523 = vmatprep.subr.bf16.mxu0 %v7766_v36  ;;  %v7773_v36 = vld [vmem:[%s9553_s5 + $0x8] sm:$0xff]  }
 0x2a2   : > { %5483 = vmatpush1.bf16.msra.mxu1 %v7761_v37  ;;  %5524 = vmatpush1.bf16.msra.mxu0 %v7764_v38  ;;  %v7774_v37 = vld [vmem:[%s9553_s5 + $0x88] sm:$0xff]  }
 0x2a3   : > { %7030 = vmatprep.subr.bf16.mxu0 %v7768_v26 }
 0x2a5   : > { %6905 = vmatmul.mubr.msk.bf16.vlgmr.msra.gmra.mrb[104].mxu1 %vm634_vm0, %v5375_v39  ;;  %6906 = vmatmul.mubr.msk.bf16.vlgmr.msra.gmra.mrb[108].mxu0 %vm634_vm0, %v5375_v39 }
 0x2a8   : > { %v3039_v40 = vpop.f32.mrb[52].mxu1  ;;  %v3080_v41 = vpop.f32.mrb[56].mxu0 }
 0x2a9   : > { %v3087_v42 = vadd.f32 %v3039_v40, %v2897_v24  ;;  %v3089_v43 = vadd.f32 %v3080_v41, %v2899_v25  ;;  %v3041_v44 = vpop.f32.mrb[53].mxu1  ;;  %v3082_v45 = vpop.f32.mrb[57].mxu0  ;;  %v7767_v25 = vld [vmem:[%s9553_s5 + $0x40] sm:$0xff]  }
 0x2aa   : > { %v3088_v46 = vadd.f32 %v3041_v44, %v2898_v28  ;;  %v3090_v47 = vadd.f32 %v3082_v45, %v2900_v29  ;;  %v3043_v48 = vpop.f32.mrb[54].mxu1  ;;  %v3084_v49 = vpop.f32.mrb[58].mxu0  ;;  %v7770_v28 = vld [vmem:[%s9553_s5 + $0x80] sm:$0xff]   ;;  %v7771_v29 = vld [vmem:[%s9553_s5 + $0x48] sm:$0xff]   ;;  %7008 = vmatprep.subr.bf16.mxu1 %v7767_v25  ;;  %v7775_v44 = vld [vmem:[%s9553_s5 + $0x50] sm:$0xff]  }
 0x2ab   : > { %v3044_v50 = vpop.f32.mrb[55].mxu1  ;;  %v3085_v51 = vpop.f32.mrb[59].mxu0  ;;  %7009 = vmatpush3.bf16.msra.mxu1 %v7769_v27  ;;  %7031 = vmatpush3.bf16.msra.mxu0 %v7770_v28  ;;  %v7776_v45 = vld [vmem:[%s9553_s5 + $0xd0] sm:$0xff]   ;;  %v7779_v48 = vld [vmem:[%s9553_s5 + $0x58] sm:$0xff]  }
 0x2ac   : > { %7010 = vmatprep.subr.bf16.mxu1 %v7771_v29  ;;  %7032 = vmatprep.subr.bf16.mxu0 %v7772_v30  ;;  %v7780_v49 = vld [vmem:[%s9553_s5 + $0xd8] sm:$0xff]  }
 0x2ad   : > { %v7781_v50 = vld [vmem:[%s9553_s5 + $0x18] sm:$0xff]  }
 0x2ae   : > { %v7782_v51 = vld [vmem:[%s9553_s5 + $0x98] sm:$0xff]  }
 0x2af   : > { %7011 = vmatpush3.bf16.msra.mxu1 %v7773_v36  ;;  %7033 = vmatpush3.bf16.msra.mxu0 %v7774_v37 }
 0x2b0   : > { %7012 = vmatprep.subr.bf16.mxu1 %v7775_v44  ;;  %7034 = vmatprep.subr.bf16.mxu0 %v7776_v45 }
 0x2b8   : > { %v3230_v52 = vpop.f32.mrb[56].mxu1  ;;  %v3271_v53 = vpop.f32.mrb[60].mxu0 }
 0x2b9   : > { %v3278_v54 = vadd.f32 %v3230_v52, %v3087_v42  ;;  %v3280_v55 = vadd.f32 %v3271_v53, %v3089_v43  ;;  %v3232_v56 = vpop.f32.mrb[57].mxu1  ;;  %v3273_v57 = vpop.f32.mrb[61].mxu0  ;;  %v7783_v52 = vld [vmem:[%s9553_s5 + $0x60] sm:$0xff]  }
 0x2ba   : > { %v3279_v58 = vadd.f32 %v3232_v56, %v3088_v46  ;;  %v3281_v59 = vadd.f32 %v3273_v57, %v3090_v47  ;;  %v3234_v60 = vpop.f32.mrb[58].mxu1  ;;  %v3275_v61 = vpop.f32.mrb[62].mxu0  ;;  %v7777_v46 = vld [vmem:[%s9553_s5 + $0x10] sm:$0xff]   ;;  %v7784_v53 = vld [vmem:[%s9553_s5 + $0xe0] sm:$0xff]   ;;  %v7787_v56 = vld [vmem:[%s9553_s5 + $0x68] sm:$0xff]  }
 0x2bb   : > { %v3235_v62 = vpop.f32.mrb[59].mxu1  ;;  %v3276_v63 = vpop.f32.mrb[63].mxu0  ;;  %v7778_v47 = vld [vmem:[%s9553_s5 + $0x90] sm:$0xff]   ;;  %7013 = vmatpush3.bf16.msra.mxu1 %v7777_v46  ;;  %v7788_v57 = vld [vmem:[%s9553_s5 + $0xe8] sm:$0xff]  }
 0x2bc   : > { %7035 = vmatpush3.bf16.msra.mxu0 %v7778_v47  ;;  %7014 = vmatprep.subr.bf16.mxu1 %v7779_v48 }
 0x2bd   : > { %7036 = vmatprep.subr.bf16.mxu0 %v7780_v49 }
 0x2bf   : > { %7015 = vmatpush3.bf16.msra.mxu1 %v7781_v50 }
 0x2c0   : > { %7037 = vmatpush3.bf16.msra.mxu0 %v7782_v51  ;;  %7016 = vmatprep.subr.bf16.mxu1 %v7783_v52 }
 0x2c1   : > { %7038 = vmatprep.subr.bf16.mxu0 %v7784_v53 }
 0x2c8   : > { %v3420_v1 = vpop.f32.mrb[60].mxu1  ;;  %v3461_v2 = vpop.f32.mrb[64].mxu0 }
 0x2c9   : > { %v3468_v3 = vadd.f32 %v3420_v1, %v3278_v54  ;;  %v3470_v4 = vadd.f32 %v3461_v2, %v3280_v55  ;;  %v3422_v5 = vpop.f32.mrb[61].mxu1  ;;  %v3463_v6 = vpop.f32.mrb[65].mxu0  ;;  %v7785_v54 = vld [vmem:[%s9553_s5 + $0x20] sm:$0xff]  }
 0x2ca   : > { %v3469_v7 = vadd.f32 %v3422_v5, %v3279_v58  ;;  %v3471_v8 = vadd.f32 %v3463_v6, %v3281_v59  ;;  %v3424_v9 = vpop.f32.mrb[62].mxu1  ;;  %v3465_v10 = vpop.f32.mrb[66].mxu0  ;;  %v7786_v55 = vld [vmem:[%s9553_s5 + $0xa0] sm:$0xff]   ;;  %7017 = vmatpush3.bf16.msra.mxu1 %v7785_v54 }
 0x2cb   : > { %v3425_v11 = vpop.f32.mrb[63].mxu1  ;;  %v3466_v12 = vpop.f32.mrb[67].mxu0  ;;  %7039 = vmatpush3.bf16.msra.mxu0 %v7786_v55  ;;  %7018 = vmatprep.subr.bf16.mxu1 %v7787_v56  ;;  %v7791_v9 = vld [vmem:[%s9553_s5 + $0x70] sm:$0xff]  }
 0x2cc   : > { %7040 = vmatprep.subr.bf16.mxu0 %v7788_v57  ;;  %v7792_v10 = vld [vmem:[%s9553_s5 + $0xf0] sm:$0xff]  }
 0x2cd   : > { %v7793_v11 = vld [vmem:[%s9553_s5 + $0x30] sm:$0xff]  }
 0x2ce   : > { %v7794_v12 = vld [vmem:[%s9553_s5 + $0xb0] sm:$0xff]  }
 0x2d8   : > { %v3611_v13 = vpop.f32.mrb[64].mxu1  ;;  %v3652_v14 = vpop.f32.mrb[68].mxu0 }
 0x2d9   : > { %v3659_v15 = vadd.f32 %v3611_v13, %v3468_v3  ;;  %v3661_v16 = vadd.f32 %v3652_v14, %v3470_v4  ;;  %v3613_v17 = vpop.f32.mrb[65].mxu1  ;;  %v3654_v18 = vpop.f32.mrb[69].mxu0  ;;  %v7795_v13 = vld [vmem:[%s9553_s5 + $0x78] sm:$0xff]  }
 0x2da   : > { %v3660_v19 = vadd.f32 %v3613_v17, %v3469_v7  ;;  %v3662_v20 = vadd.f32 %v3654_v18, %v3471_v8  ;;  %v3615_v21 = vpop.f32.mrb[66].mxu1  ;;  %v3656_v22 = vpop.f32.mrb[70].mxu0  ;;  %v7789_v7 = vld [vmem:[%s9553_s5 + $0x28] sm:$0xff]   ;;  %v7796_v14 = vld [vmem:[%s9553_s5 + $0xf8] sm:$0xff]  }
 0x2db   : > { %v3616_v23 = vpop.f32.mrb[67].mxu1  ;;  %v3657_v24 = vpop.f32.mrb[71].mxu0  ;;  %v7790_v8 = vld [vmem:[%s9553_s5 + $0xa8] sm:$0xff]   ;;  %7019 = vmatpush3.bf16.msra.mxu1 %v7789_v7 }
 0x2dc   : > { %7041 = vmatpush3.bf16.msra.mxu0 %v7790_v8  ;;  %7020 = vmatprep.subr.bf16.mxu1 %v7791_v9 }
 0x2dd   : > { %7042 = vmatprep.subr.bf16.mxu0 %v7792_v10 }
 0x2df   : > { %7021 = vmatpush3.bf16.msra.mxu1 %v7793_v11 }
 0x2e0   : > { %7043 = vmatpush3.bf16.msra.mxu0 %v7794_v12  ;;  %7022 = vmatprep.subr.bf16.mxu1 %v7795_v13 }
 0x2e1   : > { %7044 = vmatprep.subr.bf16.mxu0 %v7796_v14 }
 0x2e8   : > { %v3801_v31 = vpop.f32.mrb[68].mxu1  ;;  %v3842_v32 = vpop.f32.mrb[72].mxu0 }
 0x2e9   : > { %v3849_v33 = vadd.f32 %v3801_v31, %v3659_v15  ;;  %v3851_v34 = vadd.f32 %v3842_v32, %v3661_v16  ;;  %v3803_v0 = vpop.f32.mrb[69].mxu1  ;;  %v3844_v35 = vpop.f32.mrb[73].mxu0  ;;  %v7797_v15 = vld [vmem:[%s9553_s5 + $0x38] sm:$0xff]  }
 0x2ea   : > { %v3850_v38 = vadd.f32 %v3803_v0, %v3660_v19  ;;  %v3852_v39 = vadd.f32 %v3844_v35, %v3662_v20  ;;  %v3805_v40 = vpop.f32.mrb[70].mxu1  ;;  %v3846_v41 = vpop.f32.mrb[74].mxu0  ;;  %v7798_v16 = vld [vmem:[%s9553_s5 + $0xb8] sm:$0xff]   ;;  %7023 = vmatpush3.bf16.msra.mxu1 %v7797_v15 }
 0x2eb   : > { %v3806_v42 = vpop.f32.mrb[71].mxu1  ;;  %v3847_v43 = vpop.f32.mrb[75].mxu0  ;;  %7045 = vmatpush3.bf16.msra.mxu0 %v7798_v16 }
 0x2f8   : > { %v3988_v58 = vpop.f32.mrb[72].mxu1  ;;  %v4029_v59 = vpop.f32.mrb[76].mxu0 }
 0x2f9   : > { %v4036_v60 = vadd.f32 %v3988_v58, %v3849_v33  ;;  %v4038_v61 = vadd.f32 %v4029_v59, %v3851_v34  ;;  %v3990_v62 = vpop.f32.mrb[73].mxu1  ;;  %v4031_v63 = vpop.f32.mrb[77].mxu0 }
 0x2fa   : > { %v4037_v1 = vadd.f32 %v3990_v62, %v3850_v38  ;;  %v4039_v2 = vadd.f32 %v4031_v63, %v3852_v39  ;;  %v3992_v3 = vpop.f32.mrb[74].mxu1  ;;  %v4033_v4 = vpop.f32.mrb[78].mxu0 }
 0x2fb   : > { %v3993_v5 = vpop.f32.mrb[75].mxu1  ;;  %v4034_v6 = vpop.f32.mrb[79].mxu0 }
 0x308   : > { %v4180_v17 = vpop.f32.mrb[76].mxu1  ;;  %v4221_v18 = vpop.f32.mrb[80].mxu0 }
 0x309   : > { %v4228_v19 = vadd.f32 %v4180_v17, %v4036_v60  ;;  %v4230_v20 = vadd.f32 %v4221_v18, %v4038_v61  ;;  %v4182_v21 = vpop.f32.mrb[77].mxu1  ;;  %v4223_v22 = vpop.f32.mrb[81].mxu0 }
 0x30a   : > { %v4229_v23 = vadd.f32 %v4182_v21, %v4037_v1  ;;  %v4231_v24 = vadd.f32 %v4223_v22, %v4039_v2  ;;  %v4184_v25 = vpop.f32.mrb[78].mxu1  ;;  %v4225_v26 = vpop.f32.mrb[82].mxu0 }
 0x30b   : > { %v4185_v27 = vpop.f32.mrb[79].mxu1  ;;  %v4226_v28 = vpop.f32.mrb[83].mxu0 }
 0x318   : > { %v4371_v29 = vpop.f32.mrb[80].mxu1  ;;  %v4412_v30 = vpop.f32.mrb[84].mxu0 }
 0x319   : > { %v4419_v31 = vadd.f32 %v4371_v29, %v4228_v19  ;;  %v4421_v32 = vadd.f32 %v4412_v30, %v4230_v20  ;;  %v4373_v33 = vpop.f32.mrb[81].mxu1  ;;  %v4414_v34 = vpop.f32.mrb[85].mxu0 }
 0x31a   : > { %v4420_v0 = vadd.f32 %v4373_v33, %v4229_v23  ;;  %v4422_v35 = vadd.f32 %v4414_v34, %v4231_v24  ;;  %v4375_v36 = vpop.f32.mrb[82].mxu1  ;;  %v4416_v37 = vpop.f32.mrb[86].mxu0 }
 0x31b   : > { %v4376_v38 = vpop.f32.mrb[83].mxu1  ;;  %v4417_v39 = vpop.f32.mrb[87].mxu0  ;;  %v5564_v36 = vlaneseq }
 0x31d   : > { %v5565_v37 = vshrl.u32 %v5564_v36, 7 }
 0x31f   : > { %v5566_v38 = vsub.s32 0, %v5565_v37  ;;  %v5574_v39 = vsub.s32 2, %v5565_v37 }
 0x328   : > { %v4561_v40 = vpop.f32.mrb[84].mxu1  ;;  %v4602_v41 = vpop.f32.mrb[88].mxu0 }
 0x329   : > { %v4609_v42 = vadd.f32 %v4561_v40, %v4419_v31  ;;  %v4611_v43 = vadd.f32 %v4602_v41, %v4421_v32  ;;  %v4563_v44 = vpop.f32.mrb[85].mxu1  ;;  %v4604_v45 = vpop.f32.mrb[89].mxu0  ;;  %v5562_v40 = vld [vmem:[%s9552_s4] sm:$0xf]  ;;  %v5570_v41 = vsub.s32 1, %v5565_v37 }
 0x32a   : > { %v4610_v46 = vadd.f32 %v4563_v44, %v4420_v0  ;;  %v4612_v47 = vadd.f32 %v4604_v45, %v4422_v35  ;;  %v4565_v48 = vpop.f32.mrb[86].mxu1  ;;  %v4606_v49 = vpop.f32.mrb[90].mxu0  ;;  %v5575_v44 = vrot.slane %v5562_v40, %v5574_v39 }
 0x32b   : > { %v4566_v50 = vpop.f32.mrb[87].mxu1  ;;  %v4607_v51 = vpop.f32.mrb[91].mxu0 }
 0x338   : > { %v4752_v52 = vpop.f32.mrb[88].mxu1  ;;  %v4793_v53 = vpop.f32.mrb[92].mxu0 }
 0x339   : > { %v4800_v54 = vadd.f32 %v4752_v52, %v4609_v42  ;;  %v4802_v55 = vadd.f32 %v4793_v53, %v4611_v43  ;;  %v4754_v56 = vpop.f32.mrb[89].mxu1  ;;  %v4795_v57 = vpop.f32.mrb[93].mxu0  ;;  %v5578_v42 = vsub.s32 3, %v5565_v37  ;;  %v5567_v43 = vrot.slane %v5562_v40, %v5566_v38 }
 0x33a   : > { %v4801_v58 = vadd.f32 %v4754_v56, %v4610_v46  ;;  %v4803_v59 = vadd.f32 %v4795_v57, %v4612_v47  ;;  %v4756_v60 = vpop.f32.mrb[90].mxu1  ;;  %v4797_v61 = vpop.f32.mrb[94].mxu0  ;;  %v5571_v47 = vrot.slane %v5562_v40, %v5570_v41 }
 0x33b   : > { %v4757_v62 = vpop.f32.mrb[91].mxu1  ;;  %v4798_v63 = vpop.f32.mrb[95].mxu0  ;;  %v5579_v48 = vrot.slane %v5562_v40, %v5578_v42 }
 0x348   : > { %v4942_v1 = vpop.f32.mrb[92].mxu1  ;;  %v4983_v2 = vpop.f32.mrb[96].mxu0 }
 0x349   : > { %v4990_v3 = vadd.f32 %v4942_v1, %v4800_v54  ;;  %v4992_v4 = vadd.f32 %v4983_v2, %v4802_v55  ;;  %v4944_v5 = vpop.f32.mrb[93].mxu1  ;;  %v4985_v6 = vpop.f32.mrb[97].mxu0 }
 0x34a   : > { %v4991_v7 = vadd.f32 %v4944_v5, %v4801_v58  ;;  %v4993_v8 = vadd.f32 %v4985_v6, %v4803_v59  ;;  %v4946_v9 = vpop.f32.mrb[94].mxu1  ;;  %v4987_v10 = vpop.f32.mrb[98].mxu0 }
 0x34b   : > { %v4947_v11 = vpop.f32.mrb[95].mxu1  ;;  %v4988_v12 = vpop.f32.mrb[99].mxu0  ;;  %v5660_v10 = vld [vmem:[%s9554_s6] sm:$0x1] }
 0x358   : > { %v5133_v13 = vpop.f32.mrb[96].mxu1  ;;  %v5174_v14 = vpop.f32.mrb[100].mxu0 }
 0x359   : > { %v5181_v15 = vadd.f32 %v5133_v13, %v4990_v3  ;;  %v5183_v16 = vadd.f32 %v5174_v14, %v4992_v4  ;;  %v5135_v17 = vpop.f32.mrb[97].mxu1  ;;  %v5176_v18 = vpop.f32.mrb[101].mxu0 }
 0x35a   : > { %v5182_v19 = vadd.f32 %v5135_v17, %v4991_v7  ;;  %v5184_v20 = vadd.f32 %v5176_v18, %v4993_v8  ;;  %v5137_v21 = vpop.f32.mrb[98].mxu1  ;;  %v5178_v22 = vpop.f32.mrb[102].mxu0 }
 0x35b   : > { %v5138_v23 = vpop.f32.mrb[99].mxu1  ;;  %v5179_v24 = vpop.f32.mrb[103].mxu0 }
 0x368   : > { %v5323_v25 = vpop.f32.mrb[100].mxu1  ;;  %v5364_v26 = vpop.f32.mrb[104].mxu0 }
 0x369   : > { %v5371_v27 = vadd.f32 %v5323_v25, %v5181_v15  ;;  %v5373_v28 = vadd.f32 %v5364_v26, %v5183_v16  ;;  %v5325_v29 = vpop.f32.mrb[101].mxu1  ;;  %v5366_v30 = vpop.f32.mrb[105].mxu0 }
 0x36a   : > { %v5372_v31 = vadd.f32 %v5325_v29, %v5182_v19  ;;  %v5374_v32 = vadd.f32 %v5366_v30, %v5184_v20  ;;  %v5327_v33 = vpop.f32.mrb[102].mxu1  ;;  %v5368_v34 = vpop.f32.mrb[106].mxu0 }
 0x36b   : > { %v5328_v0 = vpop.f32.mrb[103].mxu1  ;;  %v5369_v35 = vpop.f32.mrb[107].mxu0 }
 0x378   : > { %v5510_v45 = vpop.f32.mrb[104].mxu1  ;;  %v5551_v46 = vpop.f32.mrb[108].mxu0 }
 0x379   : > { %v5558_v49 = vadd.f32 %v5510_v45, %v5371_v27  ;;  %v5560_v50 = vadd.f32 %v5551_v46, %v5373_v28  ;;  %v5512_v51 = vpop.f32.mrb[105].mxu1  ;;  %v5553_v52 = vpop.f32.mrb[109].mxu0 }
 0x37a   : > { %v5559_v53 = vadd.f32 %v5512_v51, %v5372_v31  ;;  %v5561_v54 = vadd.f32 %v5553_v52, %v5374_v32  ;;  %v5514_v55 = vpop.f32.mrb[106].mxu1  ;;  %v5555_v56 = vpop.f32.mrb[110].mxu0 }
 0x37b   : > { %v5584_v57 = vadd.f32 %v5567_v43, %v5558_v49  ;;  %v5586_v58 = vadd.f32 %v5575_v44, %v5560_v50  ;;  %v5515_v59 = vpop.f32.mrb[107].mxu1  ;;  %v5556_v60 = vpop.f32.mrb[111].mxu0 }
 0x37c   : > { %v5585_v61 = vadd.f32 %v5571_v47, %v5559_v53  ;;  %v5587_v62 = vadd.f32 %v5579_v48, %v5561_v54 }
 0x37d   : > { %v5588_v63 = vmax.f32 %v5584_v57, 0.0  ;;  %v5590_v1 = vmax.f32 %v5586_v58, 0.0 }
 0x37e   : > { %v5589_v2 = vmax.f32 %v5585_v61, 0.0  ;;  %v5591_v3 = vmax.f32 %v5587_v62, 0.0 }
 0x37f   : > { %v5592_v6 = vpack.c.bf16 %v5588_v63, %v5588_v63  ;;  %v5594_v7 = vpack.c.bf16 %v5590_v1, %v5590_v1 }
 0x380   : > { %v5593_v4 = vpack.c.bf16 %v5589_v2, %v5589_v2  ;;  %v5595_v5 = vpack.c.bf16 %v5591_v3, %v5591_v3 }
 0x382   : > { %5885 = vmatprep.mubr.bf16.mxu1 %v5593_v4  ;;  %5925 = vmatprep.mubr.bf16.mxu0 %v5595_v5 }
 0x383   : > { %5886 = vmatmul.mubr.bf16.vlgmr.msra.gmra.mrb[108].mxu1 %v5592_v6  ;;  %5926 = vmatmul.mubr.bf16.vlgmr.msra.gmra.mrb[112].mxu0 %v5594_v7 }
 0x456   : > { %v7024_v8 = vpop.f32.mrb[108].mxu1  ;;  %v7046_v9 = vpop.f32.mrb[112].mxu0 }
 0x457   : > { %v7025_v11 = vpop.f32.mrb[109].mxu1  ;;  %v7047_v12 = vpop.f32.mrb[113].mxu0 }
 0x458   : > { %v7026_v13 = vadd.f32 %v7025_v11, %v7024_v8  ;;  %v7048_v14 = vadd.f32 %v7047_v12, %v7046_v9  ;;  %v7027_v15 = vpop.f32.mrb[110].mxu1  ;;  %v7049_v16 = vpop.f32.mrb[114].mxu0 }
 0x459   : > { %v7028_v17 = vpop.f32.mrb[111].mxu1  ;;  %v7050_v18 = vpop.f32.mrb[115].mxu0 }
 0x45a   : > { %v5888_v19 = vadd.f32 %v7026_v13, %v5660_v10 }
 0x45c   : > { %v5928_v20 = vadd.f32 %v7048_v14, %v5888_v19 }
 0x45e   : > { %5934 = vst.msk [vmem:[%s270_s8] sm:$0x1] %vm5933_vm5, %v5928_v20 }
 0x45f   : > { %7812 = shalt.err (!%p7809_p3)
}
 0x460   : > { %s7813_s20 = scalar_lea.hbm %s9506_s19, 16  ;;  %s7817_s29 = scalar_lea.hbm %s9555_s7, 32 }
 0x461   : > { %p7814_p4 = scmp.ne.s32.totalorder %s9506_s19, %s7813_s20  ;;  %p7818_p9 = scmp.lt.u32.totalorder %s9506_s19, %s9555_s7 }
 0x462   : > { %p7819_p10 = scmp.lt.u32.totalorder %s7817_s29, %s7813_s20  ;;  %p7821_p12 = scmp.lt.u32.totalorder %s7813_s20, %s9506_s19 }
 0x463   : > { %p7815_p7 = pnand %p7814_p4, %p7943_p5 }
 0x464   : > { %p7820_p11 = por %p7819_p10, %p7818_p9 }
 0x465   : > { %p7816_p8 = pneg %p7815_p7 }
 0x466   : > { %p7822_p13 = por %p7821_p12, %p7820_p11 }
 0x468   : > { %p7823_p0 = pnand %p7822_p13, %p7816_p8 }
 0x46a   : > { %7826 = shalt.err (!%p7823_p0)
}
 0x46b   : > { %7065 = dma.vmem_to_hbm [thread:$0]  (%p7943_p5), %s9508_s9, 16, %s9506_s19, %s5936_s16  }
 0x46c PF: > { %p7071_p1 = scmp.ge.s32.totalorder %s7861_s27, 2  ;;  %s5960_s14 = sand.u32 1, %s7849_s24  }
 0x46d   : > { %s5961_s15 = scalar_lea.sflag [#allocation4], %s5960_s14 }
 0x46e   : > { %p7068_p2 = pnand %p7071_p1, %p7947_p6 }
 0x470   : > { %7844 = dma.done.wait (!%p7068_p2), %s5961_s15, 16  }
 0x471   : > { %7846 = vsyncadd (!%p7068_p2), %s5961_s15, 4294967280  ;;  %p17_p3 = scmp.ge.s32.totalorder %s7930_s30, 4   ;;  %s9558_s24 = smov %s7853_s25 }
 0x472   : > { %s9559_s25 = smov %s7857_s26  ;;  %s9560_s26 = smov %s7941_s10 }
 0x473   : > { %s9561_s27 = smov %s7930_s30  ;;  %19 = sbr.rel (!%p17_p3) target bundleno = 3 (0x3), region = 107 }
 0x47a   :  { %5965 = vsyncpa [#allocation4], 1 }
 0x47b   :  { %5967 = vsyncpa [#allocation4 + $0x1], 1 }

</bundles_post_ra>
